<compile_context>
chip_gen: v6e
topology: v6e:2x2x1
jax: 0.10.0
libtpu: 0.0.40
codegen_flags: <defaults>
</compile_context>

<pallas_src>
import functools

import jax
import jax.numpy as jnp
from jax.experimental import pallas as pl
from jax.experimental.pallas import tpu as pltpu


_VMEM_LIMIT = 48 * 1024 * 1024   # fits v7x's 64 MiB, plenty on v5e/v6e 128 MiB


def _round_up(x, m):
    return (x + m - 1) // m * m


# ----------------------------------------------------------------------------
# Pallas kernel: (TM x K) @ (K x N) with the whole packed W (+ bias) resident
# in VMEM; optional bias-add + LeakyReLU(0.2) epilogue.  Grid = (M / TM,).
# ----------------------------------------------------------------------------
def _mm_kernel(*refs, act, has_bias):
    if has_bias:
        a_ref, w_ref, b_ref, o_ref = refs
    else:
        a_ref, w_ref, o_ref = refs
    acc = jnp.dot(a_ref[...], w_ref[...], preferred_element_type=jnp.float32)
    if has_bias:
        acc = acc + b_ref[...]
    if act == "lrelu":
        acc = jnp.where(acc > 0, acc, 0.2 * acc)
    o_ref[...] = acc.astype(o_ref.dtype)


def matmul_bias_act(a_bf16, w_bf16, b_f32=None, act="none",
                    out_dtype=jnp.float32):
    """act(a @ w [+ b]); a (M, Kp) bf16, w (Kp, Np) bf16, b (1, Np) f32.

    Returns (M, Np) in out_dtype (channel padding kept; rows padded to the
    tile size are sliced off).
    """
    m, k_pad = a_bf16.shape
    k_pad_w, n_pad = w_bf16.shape
    assert k_pad == k_pad_w and n_pad % 128 == 0 and k_pad % 128 == 0

    tm = min(512, _round_up(m, 128))          # MXU / bf16-sublane aligned
    m_pad = _round_up(m, tm)
    if m_pad != m:
        a_bf16 = jnp.pad(a_bf16, ((0, m_pad - m), (0, 0)))

    has_bias = b_f32 is not None
    in_specs = [
        pl.BlockSpec((tm, k_pad), lambda i: (i, 0)),      # A tile: streamed
        pl.BlockSpec((k_pad, n_pad), lambda i: (0, 0)),   # W: VMEM-resident
    ]
    operands = [a_bf16, w_bf16]
    if has_bias:
        in_specs.append(pl.BlockSpec((1, n_pad), lambda i: (0, 0)))
        operands.append(b_f32)

    out_bytes = jnp.dtype(out_dtype).itemsize
    out = pl.pallas_call(
        functools.partial(_mm_kernel, act=act, has_bias=has_bias),
        out_shape=jax.ShapeDtypeStruct((m_pad, n_pad), out_dtype),
        grid_spec=pltpu.PrefetchScalarGridSpec(
            num_scalar_prefetch=0,
            grid=(m_pad // tm,),
            in_specs=in_specs,
            out_specs=pl.BlockSpec((tm, n_pad), lambda i: (i, 0)),
        ),
        compiler_params=pltpu.CompilerParams(
            dimension_semantics=("parallel",),
            vmem_limit_bytes=_VMEM_LIMIT),
        cost_estimate=pl.CostEstimate(
            flops=2 * m_pad * k_pad * n_pad,
            transcendentals=0,
            bytes_accessed=(m_pad * k_pad * 2            # A read once
                            + k_pad * n_pad * 2          # W read once
                            + (n_pad * 4 if has_bias else 0)
                            + m_pad * n_pad * out_bytes)),
    )(*operands)

    return out[:m] if m_pad != m else out


# ----------------------------------------------------------------------------
# Pallas kernel: InstanceNorm2d(affine=False, eps=1e-5) + LeakyReLU(0.2)
# One-pass stats (sum / sum-sq), bf16 output.
# ----------------------------------------------------------------------------
def _in_lrelu_kernel(x_ref, o_ref):
    x = x_ref[...]                                        # (1, P, TC) f32
    inv_p = 1.0 / x.shape[1]
    mean = jnp.sum(x, axis=1, keepdims=True) * inv_p
    mean_sq = jnp.sum(x * x, axis=1, keepdims=True) * inv_p
    var = jnp.maximum(mean_sq - mean * mean, 0.0)         # biased (torch)
    y = (x - mean) * jax.lax.rsqrt(var + 1e-5)
    o_ref[...] = jnp.where(y > 0, y, 0.2 * y).astype(o_ref.dtype)


def instancenorm_lrelu(x_nhwc, out_dtype=jnp.bfloat16):
    n, h, w, c = x_nhwc.shape
    p = h * w
    x = x_nhwc.reshape(n, p, c)
    # Lane-dense 128-wide channel tiles when C allows it; otherwise take the
    # full channel extent (toy configs) to avoid extra pad/slice passes.
    tc = 128 if c % 128 == 0 else c
    # TODO(synk): tile the P axis (running sum/sum-sq) for large-resolution
    # inputs so the (1, P, TC) f32 block stays well within v7x's 64 MiB VMEM.
    out = pl.pallas_call(
        _in_lrelu_kernel,
        out_shape=jax.ShapeDtypeStruct((n, p, c), out_dtype),
        grid_spec=pltpu.PrefetchScalarGridSpec(
            num_scalar_prefetch=0,
            grid=(n, c // tc),
            in_specs=[pl.BlockSpec((1, p, tc), lambda i, j: (i, 0, j))],
            out_specs=pl.BlockSpec((1, p, tc), lambda i, j: (i, 0, j)),
        ),
        compiler_params=pltpu.CompilerParams(
            dimension_semantics=("parallel", "parallel"),
            vmem_limit_bytes=_VMEM_LIMIT),
    )(x)
    return out.reshape(n, h, w, c)


# ----------------------------------------------------------------------------
# Conv2d = reflect pad + im2col (XLA glue, bf16) + Pallas resident-W matmul
# ----------------------------------------------------------------------------
def conv2d_packed(x_nhwc, w_packed, b_packed, kh, kw, *, stride=1, pad=0,
                  pad_mode="reflect", act="none", out_dtype=jnp.float32):
    n = x_nhwc.shape[0]
    x = x_nhwc.astype(jnp.bfloat16)     # bf16 MXU operand / half the glue HBM
    if pad > 0:
        mode = "reflect" if pad_mode == "reflect" else "constant"
        x = jnp.pad(x, ((0, 0), (pad, pad), (pad, pad), (0, 0)), mode=mode)
    hp, wp, cin = x.shape[1], x.shape[2], x.shape[3]
    ho = (hp - kh) // stride + 1
    wo = (wp - kw) // stride + 1

    # TODO(synk): fuse this im2col tap gather into the Pallas kernel (manual
    # halo DMA per M tile) to remove the Kh*Kw HBM blow-up of the patch matrix.
    cols = []
    for dh in range(kh):
        for dw in range(kw):
            cols.append(x[:, dh:dh + stride * ho:stride,
                          dw:dw + stride * wo:stride, :])
    patches = jnp.stack(cols, axis=3)                # (N, Ho, Wo, Kh*Kw, Cin)
    a = patches.reshape(n * ho * wo, kh * kw * cin)

    k_pad = w_packed.shape[0]
    if a.shape[1] != k_pad:                          # pad flat K to packed W
        a = jnp.pad(a, ((0, 0), (0, k_pad - a.shape[1])))

    out = matmul_bias_act(a, w_packed, b_packed, act=act, out_dtype=out_dtype)
    return out.reshape(n, ho, wo, w_packed.shape[1])   # channels stay padded


# ----------------------------------------------------------------------------
# Parameter construction + one-time weight packing
# ----------------------------------------------------------------------------
def init_discriminator_params(key, input_channels, hidden_channels):
    def conv_param(key, cout, cin, k):
        kw_, kb_ = jax.random.split(key)
        w = 0.05 * jax.random.normal(kw_, (cout, cin, k, k), jnp.float32)
        b = 0.05 * jax.random.normal(kb_, (cout,), jnp.float32)
        return {"w": w, "b": b}

    h = hidden_channels
    keys = jax.random.split(key, 5)
    return {
        "upfeature": conv_param(keys[0], h, input_channels, 7),
        "contract1": conv_param(keys[1], 2 * h, h, 4),
        "contract2": conv_param(keys[2], 4 * h, 2 * h, 4),
        "contract3": conv_param(keys[3], 8 * h, 4 * h, 4),
        "final":     conv_param(keys[4], 1, 8 * h, 1),
    }


def _prepack_conv(p, kh, kw, cin_pad):
    """torch (Cout,Cin,Kh,Kw) -> bf16 (K_pad, N_pad) matmul tile.

    K ordering is (kh, kw, cin_pad) so it matches im2col on channel-padded
    activations (the padded Cin rows are zero).
    """
    w, b = p["w"], p["b"]
    cout, cin = w.shape[0], w.shape[1]
    n_pad = _round_up(cout, 128)
    w_t = jnp.transpose(w, (2, 3, 1, 0))                 # (Kh, Kw, Cin, Cout)
    w_t = jnp.pad(w_t, ((0, 0), (0, 0), (0, cin_pad - cin), (0, n_pad - cout)))
    w_mat = w_t.reshape(kh * kw * cin_pad, n_pad)
    k = w_mat.shape[0]
    k_pad = _round_up(k, 128)
    if k_pad != k:
        w_mat = jnp.pad(w_mat, ((0, k_pad - k), (0, 0)))
    w_mat = w_mat.astype(jnp.bfloat16)
    b_mat = jnp.pad(b.reshape(1, cout),
                    ((0, 0), (0, n_pad - cout))).astype(jnp.float32)
    return {"w": w_mat, "b": b_mat}


def prepack_params(params, input_channels, hidden_channels):
    h = hidden_channels
    return {
        "upfeature": _prepack_conv(params["upfeature"], 7, 7, input_channels),
        "contract1": _prepack_conv(params["contract1"], 4, 4, _round_up(h, 128)),
        "contract2": _prepack_conv(params["contract2"], 4, 4, _round_up(2 * h, 128)),
        "contract3": _prepack_conv(params["contract3"], 4, 4, _round_up(4 * h, 128)),
        "final":     _prepack_conv(params["final"], 1, 1, _round_up(8 * h, 128)),
    }


# ----------------------------------------------------------------------------
# Discriminator forward pass
# ----------------------------------------------------------------------------
def discriminator_forward(packed, x_nchw):
    x = jnp.transpose(x_nchw, (0, 2, 3, 1))                       # NCHW -> NHWC

    # upfeature: Conv2d(k=7, pad=3, reflect), no activation -> bf16 chain
    p = packed["upfeature"]
    x0 = conv2d_packed(x, p["w"], p["b"], 7, 7, stride=1, pad=3,
                       pad_mode="reflect", act="none", out_dtype=jnp.bfloat16)

    # contract1: Conv2d(k=4, s=2, pad=1, reflect) + LeakyReLU(0.2), no norm
    p = packed["contract1"]
    x1 = conv2d_packed(x0, p["w"], p["b"], 4, 4, stride=2, pad=1,
                       pad_mode="reflect", act="lrelu", out_dtype=jnp.bfloat16)

    # contract2: Conv2d + InstanceNorm(affine=False) + LeakyReLU.
    # Bias skipped: a per-channel constant is removed exactly by the mean.
    p = packed["contract2"]
    x2 = conv2d_packed(x1, p["w"], None, 4, 4, stride=2, pad=1,
                       pad_mode="reflect", act="none", out_dtype=jnp.float32)
    x2 = instancenorm_lrelu(x2, out_dtype=jnp.bfloat16)

    # contract3: Conv2d + InstanceNorm + LeakyReLU (bias skipped as above)
    p = packed["contract3"]
    x3 = conv2d_packed(x2, p["w"], None, 4, 4, stride=2, pad=1,
                       pad_mode="reflect", act="none", out_dtype=jnp.float32)
    x3 = instancenorm_lrelu(x3, out_dtype=jnp.bfloat16)

    # final: 1x1 Conv2d, f32 logits; channels un-padded only here (tiny).
    p = packed["final"]
    xn = conv2d_packed(x3, p["w"], p["b"], 1, 1, stride=1, pad=0,
                       act="none", out_dtype=jnp.float32)
    xn = xn[..., :1]
    return jnp.transpose(xn, (0, 3, 1, 2))                        # NHWC -> NCHW


# ----------------------------------------------------------------------------
if __name__ == "__main__":
    key = jax.random.PRNGKey(0)
    k_x, k_p = jax.random.split(key)

    batch, input_channels, hidden_channels, spatial = 2, 3, 8, 16
    x = jax.random.normal(k_x, (batch, input_channels, spatial, spatial),
                          jnp.float32)
    params = init_discriminator_params(k_p, input_channels, hidden_channels)
    packed = prepack_params(params, input_channels, hidden_channels)

    fwd = jax.jit(discriminator_forward)
    out = jax.block_until_ready(fwd(packed, x))

    # 16 -> 16 (upfeature) -> 8 -> 4 -> 2 (contracts) -> 2 (1x1 final conv)
    assert out.shape == (batch, 1, 2, 2), out.shape
    assert jnp.all(jnp.isfinite(out))
    print("KERNEL_OK")
</pallas_src>

<mosaic_0001>
module attributes {stable_mosaic.version = 11 : i64} {
  func.func @_mm_kernel(%arg0: i32, %arg1: memref<512x256xbf16, #tpu.memory_space<vmem>>, %arg2: memref<256x128xbf16, #tpu.memory_space<vmem>>, %arg3: memref<1x128xf32, #tpu.memory_space<vmem>>, %arg4: memref<512x128xbf16, #tpu.memory_space<vmem>>) attributes {dimension_semantics = [#tpu.dimension_semantics<parallel>], iteration_bounds = array<i64: 1>, scalar_prefetch = 0 : i64, scratch_operands = 0 : i64, tpu.core_type = #tpu.core_type<tc>, window_params = [{transform_indices = @transform_0, window_bounds = array<i64: 512, 256>}, {pipeline_mode = #tpu.pipeline_mode<synchronous>, transform_indices = @transform_1, window_bounds = array<i64: 256, 128>}, {pipeline_mode = #tpu.pipeline_mode<synchronous>, transform_indices = @transform_2, window_bounds = array<i64: 1, 128>}, {transform_indices = @transform_3, window_bounds = array<i64: 512, 128>}]} {
    %c0 = arith.constant 0 : index
    %c0_0 = arith.constant 0 : index
    %0 = vector.load %arg1[%c0, %c0_0] : memref<512x256xbf16, #tpu.memory_space<vmem>>, vector<512x256xbf16>
    %c0_1 = arith.constant 0 : index
    %c0_2 = arith.constant 0 : index
    %1 = vector.load %arg2[%c0_1, %c0_2] : memref<256x128xbf16, #tpu.memory_space<vmem>>, vector<256x128xbf16>
    %cst = arith.constant dense<0.000000e+00> : vector<512x128xf32>
    %2 = tpu.matmul %0, %1, %cst {dimension_numbers = #tpu.dot_dimension_numbers<[1], [0], [0], [1], [0, 0, 1, 1], [], []>} : vector<512x256xbf16>, vector<256x128xbf16>, vector<512x128xf32> -> vector<512x128xf32>
    %c0_3 = arith.constant 0 : index
    %c0_4 = arith.constant 0 : index
    %3 = vector.load %arg3[%c0_3, %c0_4] : memref<1x128xf32, #tpu.memory_space<vmem>>, vector<1x128xf32>
    %4 = vector.broadcast %3 : vector<1x128xf32> to vector<512x128xf32>
    %5 = arith.addf %2, %4 : vector<512x128xf32>
    %6 = arith.truncf %5 : vector<512x128xf32> to vector<512x128xbf16>
    %c0_5 = arith.constant 0 : index
    %c0_6 = arith.constant 0 : index
    %7 = vector.load %arg4[%c0_5, %c0_6] : memref<512x128xbf16, #tpu.memory_space<vmem>>, vector<512x128xbf16>
    tpu.vector_store %arg4[%c0_5, %c0_6], %6 {strides = array<i32>} : memref<512x128xbf16, #tpu.memory_space<vmem>>, vector<512x128xbf16>,
    return
  }
  func.func @transform_0(%arg0: i32) -> (i32, i32) {
    %c0_i32 = arith.constant 0 : i32
    %c0_i32_0 = arith.constant 0 : i32
    return %arg0, %c0_i32 : i32, i32
  }
  func.func @transform_1(%arg0: i32) -> (i32, i32) {
    %c0_i32 = arith.constant 0 : i32
    %c0_i32_0 = arith.constant 0 : i32
    %c0_i32_1 = arith.constant 0 : i32
    return %c0_i32, %c0_i32_0 : i32, i32
  }
  func.func @transform_2(%arg0: i32) -> (i32, i32) {
    %c0_i32 = arith.constant 0 : i32
    %c0_i32_0 = arith.constant 0 : i32
    %c0_i32_1 = arith.constant 0 : i32
    return %c0_i32, %c0_i32_0 : i32, i32
  }
  func.func @transform_3(%arg0: i32) -> (i32, i32) {
    %c0_i32 = arith.constant 0 : i32
    %c0_i32_0 = arith.constant 0 : i32
    return %arg0, %c0_i32 : i32, i32
  }
}

module attributes {stable_mosaic.version = 11 : i64} {
  func.func @_mm_kernel(%arg0: i32, %arg1: memref<128x2048xbf16, #tpu.memory_space<vmem>>, %arg2: memref<2048x128xbf16, #tpu.memory_space<vmem>>, %arg3: memref<1x128xf32, #tpu.memory_space<vmem>>, %arg4: memref<128x128xbf16, #tpu.memory_space<vmem>>) attributes {dimension_semantics = [#tpu.dimension_semantics<parallel>], iteration_bounds = array<i64: 1>, scalar_prefetch = 0 : i64, scratch_operands = 0 : i64, tpu.core_type = #tpu.core_type<tc>, window_params = [{transform_indices = @transform_0, window_bounds = array<i64: 128, 2048>}, {pipeline_mode = #tpu.pipeline_mode<synchronous>, transform_indices = @transform_1, window_bounds = array<i64: 2048, 128>}, {pipeline_mode = #tpu.pipeline_mode<synchronous>, transform_indices = @transform_2, window_bounds = array<i64: 1, 128>}, {transform_indices = @transform_3, window_bounds = array<i64: 128, 128>}]} {
    %c0 = arith.constant 0 : index
    %c0_0 = arith.constant 0 : index
    %0 = vector.load %arg1[%c0, %c0_0] : memref<128x2048xbf16, #tpu.memory_space<vmem>>, vector<128x2048xbf16>
    %c0_1 = arith.constant 0 : index
    %c0_2 = arith.constant 0 : index
    %1 = vector.load %arg2[%c0_1, %c0_2] : memref<2048x128xbf16, #tpu.memory_space<vmem>>, vector<2048x128xbf16>
    %cst = arith.constant dense<0.000000e+00> : vector<128x128xf32>
    %2 = tpu.matmul %0, %1, %cst {dimension_numbers = #tpu.dot_dimension_numbers<[1], [0], [0], [1], [0, 0, 1, 1], [], []>} : vector<128x2048xbf16>, vector<2048x128xbf16>, vector<128x128xf32> -> vector<128x128xf32>
    %c0_3 = arith.constant 0 : index
    %c0_4 = arith.constant 0 : index
    %3 = vector.load %arg3[%c0_3, %c0_4] : memref<1x128xf32, #tpu.memory_space<vmem>>, vector<1x128xf32>
    %4 = vector.broadcast %3 : vector<1x128xf32> to vector<128x128xf32>
    %5 = arith.addf %2, %4 : vector<128x128xf32>
    %cst_5 = arith.constant 0.000000e+00 : f32
    %6 = vector.broadcast %cst_5 : f32 to vector<128x128xf32>
    %7 = arith.cmpf ogt, %5, %6 : vector<128x128xf32>
    %cst_6 = arith.constant 2.000000e-01 : f32
    %8 = vector.broadcast %cst_6 : f32 to vector<128x128xf32>
    %9 = arith.mulf %8, %5 : vector<128x128xf32>
    %10 = arith.select %7, %5, %9 : vector<128x128xi1>, vector<128x128xf32>
    %11 = arith.truncf %10 : vector<128x128xf32> to vector<128x128xbf16>
    %c0_7 = arith.constant 0 : index
    %c0_8 = arith.constant 0 : index
    %12 = vector.load %arg4[%c0_7, %c0_8] : memref<128x128xbf16, #tpu.memory_space<vmem>>, vector<128x128xbf16>
    tpu.vector_store %arg4[%c0_7, %c0_8], %11 {strides = array<i32>} : memref<128x128xbf16, #tpu.memory_space<vmem>>, vector<128x128xbf16>,
    return
  }
  func.func @transform_0(%arg0: i32) -> (i32, i32) {
    %c0_i32 = arith.constant 0 : i32
    %c0_i32_0 = arith.constant 0 : i32
    return %arg0, %c0_i32 : i32, i32
  }
  func.func @transform_1(%arg0: i32) -> (i32, i32) {
    %c0_i32 = arith.constant 0 : i32
    %c0_i32_0 = arith.constant 0 : i32
    %c0_i32_1 = arith.constant 0 : i32
    return %c0_i32, %c0_i32_0 : i32, i32
  }
  func.func @transform_2(%arg0: i32) -> (i32, i32) {
    %c0_i32 = arith.constant 0 : i32
    %c0_i32_0 = arith.constant 0 : i32
    %c0_i32_1 = arith.constant 0 : i32
    return %c0_i32, %c0_i32_0 : i32, i32
  }
  func.func @transform_3(%arg0: i32) -> (i32, i32) {
    %c0_i32 = arith.constant 0 : i32
    %c0_i32_0 = arith.constant 0 : i32
    return %arg0, %c0_i32 : i32, i32
  }
}

module attributes {stable_mosaic.version = 11 : i64} {
  func.func @_mm_kernel(%arg0: i32, %arg1: memref<128x2048xbf16, #tpu.memory_space<vmem>>, %arg2: memref<2048x128xbf16, #tpu.memory_space<vmem>>, %arg3: memref<128x128xf32, #tpu.memory_space<vmem>>) attributes {dimension_semantics = [#tpu.dimension_semantics<parallel>], iteration_bounds = array<i64: 1>, scalar_prefetch = 0 : i64, scratch_operands = 0 : i64, tpu.core_type = #tpu.core_type<tc>, window_params = [{transform_indices = @transform_0, window_bounds = array<i64: 128, 2048>}, {pipeline_mode = #tpu.pipeline_mode<synchronous>, transform_indices = @transform_1, window_bounds = array<i64: 2048, 128>}, {transform_indices = @transform_2, window_bounds = array<i64: 128, 128>}]} {
    %c0 = arith.constant 0 : index
    %c0_0 = arith.constant 0 : index
    %0 = vector.load %arg1[%c0, %c0_0] : memref<128x2048xbf16, #tpu.memory_space<vmem>>, vector<128x2048xbf16>
    %c0_1 = arith.constant 0 : index
    %c0_2 = arith.constant 0 : index
    %1 = vector.load %arg2[%c0_1, %c0_2] : memref<2048x128xbf16, #tpu.memory_space<vmem>>, vector<2048x128xbf16>
    %cst = arith.constant dense<0.000000e+00> : vector<128x128xf32>
    %2 = tpu.matmul %0, %1, %cst {dimension_numbers = #tpu.dot_dimension_numbers<[1], [0], [0], [1], [0, 0, 1, 1], [], []>} : vector<128x2048xbf16>, vector<2048x128xbf16>, vector<128x128xf32> -> vector<128x128xf32>
    %c0_3 = arith.constant 0 : index
    %c0_4 = arith.constant 0 : index
    %3 = vector.load %arg3[%c0_3, %c0_4] : memref<128x128xf32, #tpu.memory_space<vmem>>, vector<128x128xf32>
    tpu.vector_store %arg3[%c0_3, %c0_4], %2 {strides = array<i32>} : memref<128x128xf32, #tpu.memory_space<vmem>>, vector<128x128xf32>,
    return
  }
  func.func @transform_0(%arg0: i32) -> (i32, i32) {
    %c0_i32 = arith.constant 0 : i32
    %c0_i32_0 = arith.constant 0 : i32
    return %arg0, %c0_i32 : i32, i32
  }
  func.func @transform_1(%arg0: i32) -> (i32, i32) {
    %c0_i32 = arith.constant 0 : i32
    %c0_i32_0 = arith.constant 0 : i32
    %c0_i32_1 = arith.constant 0 : i32
    return %c0_i32, %c0_i32_0 : i32, i32
  }
  func.func @transform_2(%arg0: i32) -> (i32, i32) {
    %c0_i32 = arith.constant 0 : i32
    %c0_i32_0 = arith.constant 0 : i32
    return %arg0, %c0_i32 : i32, i32
  }
}

module attributes {stable_mosaic.version = 11 : i64} {
  func.func @_in_lrelu_kernel(%arg0: i32, %arg1: i32, %arg2: memref<1x16x128xf32, #tpu.memory_space<vmem>>, %arg3: memref<1x16x128xbf16, #tpu.memory_space<vmem>>) attributes {dimension_semantics = [#tpu.dimension_semantics<parallel>, #tpu.dimension_semantics<parallel>], iteration_bounds = array<i64: 2, 1>, scalar_prefetch = 0 : i64, scratch_operands = 0 : i64, tpu.core_type = #tpu.core_type<tc>, window_params = [{transform_indices = @transform_0, window_bounds = array<i64: 1, 16, 128>}, {transform_indices = @transform_1, window_bounds = array<i64: 1, 16, 128>}]} {
    %c0 = arith.constant 0 : index
    %c0_0 = arith.constant 0 : index
    %c0_1 = arith.constant 0 : index
    %0 = vector.load %arg2[%c0, %c0_0, %c0_1] : memref<1x16x128xf32, #tpu.memory_space<vmem>>, vector<1x16x128xf32>
    %cst = arith.constant dense<0.000000e+00> : vector<1x128xf32>
    %1 = vector.multi_reduction <add>, %0, %cst [1] : vector<1x16x128xf32> to vector<1x128xf32>
    %2 = vector.shape_cast %1 : vector<1x128xf32> to vector<1x1x128xf32>
    %cst_2 = arith.constant 6.250000e-02 : f32
    %3 = vector.broadcast %cst_2 : f32 to vector<1x1x128xf32>
    %4 = arith.mulf %2, %3 : vector<1x1x128xf32>
    %5 = arith.mulf %0, %0 : vector<1x16x128xf32>
    %cst_3 = arith.constant dense<0.000000e+00> : vector<1x128xf32>
    %6 = vector.multi_reduction <add>, %5, %cst_3 [1] : vector<1x16x128xf32> to vector<1x128xf32>
    %7 = vector.shape_cast %6 : vector<1x128xf32> to vector<1x1x128xf32>
    %cst_4 = arith.constant 6.250000e-02 : f32
    %8 = vector.broadcast %cst_4 : f32 to vector<1x1x128xf32>
    %9 = arith.mulf %7, %8 : vector<1x1x128xf32>
    %10 = arith.mulf %4, %4 : vector<1x1x128xf32>
    %11 = arith.subf %9, %10 : vector<1x1x128xf32>
    %cst_5 = arith.constant 0.000000e+00 : f32
    %12 = vector.broadcast %cst_5 : f32 to vector<1x1x128xf32>
    %13 = arith.maximumf %11, %12 : vector<1x1x128xf32>
    %14 = vector.broadcast %4 : vector<1x1x128xf32> to vector<1x16x128xf32>
    %15 = arith.subf %0, %14 : vector<1x16x128xf32>
    %cst_6 = arith.constant 9.99999974E-6 : f32
    %16 = vector.broadcast %cst_6 : f32 to vector<1x1x128xf32>
    %17 = arith.addf %13, %16 : vector<1x1x128xf32>
    %18 = math.rsqrt %17 : vector<1x1x128xf32>
    %19 = vector.broadcast %18 : vector<1x1x128xf32> to vector<1x16x128xf32>
    %20 = arith.mulf %15, %19 : vector<1x16x128xf32>
    %cst_7 = arith.constant 0.000000e+00 : f32
    %21 = vector.broadcast %cst_7 : f32 to vector<1x16x128xf32>
    %22 = arith.cmpf ogt, %20, %21 : vector<1x16x128xf32>
    %cst_8 = arith.constant 2.000000e-01 : f32
    %23 = vector.broadcast %cst_8 : f32 to vector<1x16x128xf32>
    %24 = arith.mulf %23, %20 : vector<1x16x128xf32>
    %25 = arith.select %22, %20, %24 : vector<1x16x128xi1>, vector<1x16x128xf32>
    %26 = arith.truncf %25 : vector<1x16x128xf32> to vector<1x16x128xbf16>
    %c0_9 = arith.constant 0 : index
    %c0_10 = arith.constant 0 : index
    %c0_11 = arith.constant 0 : index
    %27 = vector.load %arg3[%c0_9, %c0_10, %c0_11] : memref<1x16x128xbf16, #tpu.memory_space<vmem>>, vector<1x16x128xbf16>
    tpu.vector_store %arg3[%c0_9, %c0_10, %c0_11], %26 {strides = array<i32>} : memref<1x16x128xbf16, #tpu.memory_space<vmem>>, vector<1x16x128xbf16>,
    return
  }
  func.func @transform_0(%arg0: i32, %arg1: i32) -> (i32, i32, i32) {
    %c0_i32 = arith.constant 0 : i32
    %c0_i32_0 = arith.constant 0 : i32
    return %arg0, %c0_i32, %arg1 : i32, i32, i32
  }
  func.func @transform_1(%arg0: i32, %arg1: i32) -> (i32, i32, i32) {
    %c0_i32 = arith.constant 0 : i32
    %c0_i32_0 = arith.constant 0 : i32
    return %arg0, %c0_i32, %arg1 : i32, i32, i32
  }
}

module attributes {stable_mosaic.version = 11 : i64} {
  func.func @_in_lrelu_kernel(%arg0: i32, %arg1: i32, %arg2: memref<1x4x128xf32, #tpu.memory_space<vmem>>, %arg3: memref<1x4x128xbf16, #tpu.memory_space<vmem>>) attributes {dimension_semantics = [#tpu.dimension_semantics<parallel>, #tpu.dimension_semantics<parallel>], iteration_bounds = array<i64: 2, 1>, scalar_prefetch = 0 : i64, scratch_operands = 0 : i64, tpu.core_type = #tpu.core_type<tc>, window_params = [{transform_indices = @transform_0, window_bounds = array<i64: 1, 4, 128>}, {transform_indices = @transform_1, window_bounds = array<i64: 1, 4, 128>}]} {
    %c0 = arith.constant 0 : index
    %c0_0 = arith.constant 0 : index
    %c0_1 = arith.constant 0 : index
    %0 = vector.load %arg2[%c0, %c0_0, %c0_1] : memref<1x4x128xf32, #tpu.memory_space<vmem>>, vector<1x4x128xf32>
    %cst = arith.constant dense<0.000000e+00> : vector<1x128xf32>
    %1 = vector.multi_reduction <add>, %0, %cst [1] : vector<1x4x128xf32> to vector<1x128xf32>
    %2 = vector.shape_cast %1 : vector<1x128xf32> to vector<1x1x128xf32>
    %cst_2 = arith.constant 2.500000e-01 : f32
    %3 = vector.broadcast %cst_2 : f32 to vector<1x1x128xf32>
    %4 = arith.mulf %2, %3 : vector<1x1x128xf32>
    %5 = arith.mulf %0, %0 : vector<1x4x128xf32>
    %cst_3 = arith.constant dense<0.000000e+00> : vector<1x128xf32>
    %6 = vector.multi_reduction <add>, %5, %cst_3 [1] : vector<1x4x128xf32> to vector<1x128xf32>
    %7 = vector.shape_cast %6 : vector<1x128xf32> to vector<1x1x128xf32>
    %cst_4 = arith.constant 2.500000e-01 : f32
    %8 = vector.broadcast %cst_4 : f32 to vector<1x1x128xf32>
    %9 = arith.mulf %7, %8 : vector<1x1x128xf32>
    %10 = arith.mulf %4, %4 : vector<1x1x128xf32>
    %11 = arith.subf %9, %10 : vector<1x1x128xf32>
    %cst_5 = arith.constant 0.000000e+00 : f32
    %12 = vector.broadcast %cst_5 : f32 to vector<1x1x128xf32>
    %13 = arith.maximumf %11, %12 : vector<1x1x128xf32>
    %14 = vector.broadcast %4 : vector<1x1x128xf32> to vector<1x4x128xf32>
    %15 = arith.subf %0, %14 : vector<1x4x128xf32>
    %cst_6 = arith.constant 9.99999974E-6 : f32
    %16 = vector.broadcast %cst_6 : f32 to vector<1x1x128xf32>
    %17 = arith.addf %13, %16 : vector<1x1x128xf32>
    %18 = math.rsqrt %17 : vector<1x1x128xf32>
    %19 = vector.broadcast %18 : vector<1x1x128xf32> to vector<1x4x128xf32>
    %20 = arith.mulf %15, %19 : vector<1x4x128xf32>
    %cst_7 = arith.constant 0.000000e+00 : f32
    %21 = vector.broadcast %cst_7 : f32 to vector<1x4x128xf32>
    %22 = arith.cmpf ogt, %20, %21 : vector<1x4x128xf32>
    %cst_8 = arith.constant 2.000000e-01 : f32
    %23 = vector.broadcast %cst_8 : f32 to vector<1x4x128xf32>
    %24 = arith.mulf %23, %20 : vector<1x4x128xf32>
    %25 = arith.select %22, %20, %24 : vector<1x4x128xi1>, vector<1x4x128xf32>
    %26 = arith.truncf %25 : vector<1x4x128xf32> to vector<1x4x128xbf16>
    %c0_9 = arith.constant 0 : index
    %c0_10 = arith.constant 0 : index
    %c0_11 = arith.constant 0 : index
    %27 = vector.load %arg3[%c0_9, %c0_10, %c0_11] : memref<1x4x128xbf16, #tpu.memory_space<vmem>>, vector<1x4x128xbf16>
    tpu.vector_store %arg3[%c0_9, %c0_10, %c0_11], %26 {strides = array<i32>} : memref<1x4x128xbf16, #tpu.memory_space<vmem>>, vector<1x4x128xbf16>,
    return
  }
  func.func @transform_0(%arg0: i32, %arg1: i32) -> (i32, i32, i32) {
    %c0_i32 = arith.constant 0 : i32
    %c0_i32_0 = arith.constant 0 : i32
    return %arg0, %c0_i32, %arg1 : i32, i32, i32
  }
  func.func @transform_1(%arg0: i32, %arg1: i32) -> (i32, i32, i32) {
    %c0_i32 = arith.constant 0 : i32
    %c0_i32_0 = arith.constant 0 : i32
    return %arg0, %c0_i32, %arg1 : i32, i32, i32
  }
}

module attributes {stable_mosaic.version = 11 : i64} {
  func.func @_mm_kernel(%arg0: i32, %arg1: memref<128x128xbf16, #tpu.memory_space<vmem>>, %arg2: memref<128x128xbf16, #tpu.memory_space<vmem>>, %arg3: memref<1x128xf32, #tpu.memory_space<vmem>>, %arg4: memref<128x128xf32, #tpu.memory_space<vmem>>) attributes {dimension_semantics = [#tpu.dimension_semantics<parallel>], iteration_bounds = array<i64: 1>, scalar_prefetch = 0 : i64, scratch_operands = 0 : i64, tpu.core_type = #tpu.core_type<tc>, window_params = [{transform_indices = @transform_0, window_bounds = array<i64: 128, 128>}, {pipeline_mode = #tpu.pipeline_mode<synchronous>, transform_indices = @transform_1, window_bounds = array<i64: 128, 128>}, {pipeline_mode = #tpu.pipeline_mode<synchronous>, transform_indices = @transform_2, window_bounds = array<i64: 1, 128>}, {transform_indices = @transform_3, window_bounds = array<i64: 128, 128>}]} {
    %c0 = arith.constant 0 : index
    %c0_0 = arith.constant 0 : index
    %0 = vector.load %arg1[%c0, %c0_0] : memref<128x128xbf16, #tpu.memory_space<vmem>>, vector<128x128xbf16>
    %c0_1 = arith.constant 0 : index
    %c0_2 = arith.constant 0 : index
    %1 = vector.load %arg2[%c0_1, %c0_2] : memref<128x128xbf16, #tpu.memory_space<vmem>>, vector<128x128xbf16>
    %cst = arith.constant dense<0.000000e+00> : vector<128x128xf32>
    %2 = tpu.matmul %0, %1, %cst {dimension_numbers = #tpu.dot_dimension_numbers<[1], [0], [0], [1], [0, 0, 1, 1], [], []>} : vector<128x128xbf16>, vector<128x128xbf16>, vector<128x128xf32> -> vector<128x128xf32>
    %c0_3 = arith.constant 0 : index
    %c0_4 = arith.constant 0 : index
    %3 = vector.load %arg3[%c0_3, %c0_4] : memref<1x128xf32, #tpu.memory_space<vmem>>, vector<1x128xf32>
    %4 = vector.broadcast %3 : vector<1x128xf32> to vector<128x128xf32>
    %5 = arith.addf %2, %4 : vector<128x128xf32>
    %c0_5 = arith.constant 0 : index
    %c0_6 = arith.constant 0 : index
    %6 = vector.load %arg4[%c0_5, %c0_6] : memref<128x128xf32, #tpu.memory_space<vmem>>, vector<128x128xf32>
    tpu.vector_store %arg4[%c0_5, %c0_6], %5 {strides = array<i32>} : memref<128x128xf32, #tpu.memory_space<vmem>>, vector<128x128xf32>,
    return
  }
  func.func @transform_0(%arg0: i32) -> (i32, i32) {
    %c0_i32 = arith.constant 0 : i32
    %c0_i32_0 = arith.constant 0 : i32
    return %arg0, %c0_i32 : i32, i32
  }
  func.func @transform_1(%arg0: i32) -> (i32, i32) {
    %c0_i32 = arith.constant 0 : i32
    %c0_i32_0 = arith.constant 0 : i32
    %c0_i32_1 = arith.constant 0 : i32
    return %c0_i32, %c0_i32_0 : i32, i32
  }
  func.func @transform_2(%arg0: i32) -> (i32, i32) {
    %c0_i32 = arith.constant 0 : i32
    %c0_i32_0 = arith.constant 0 : i32
    %c0_i32_1 = arith.constant 0 : i32
    return %c0_i32, %c0_i32_0 : i32, i32
  }
  func.func @transform_3(%arg0: i32) -> (i32, i32) {
    %c0_i32 = arith.constant 0 : i32
    %c0_i32_0 = arith.constant 0 : i32
    return %arg0, %c0_i32 : i32, i32
  }
}

</mosaic_0001>

<bundles_post_ra>
// kernel: discriminator_forward.7
= control target key start
LH: loop header
LB: loop body
LE: loop exit
PB: predicated region body
PF: predicated region fallthrough
CT: control target
= control target key end

     0   :  { %v1692_v0 = vmov 0   ;;  %s2150_s1 = inlined_call_operand.vmem [shape: bf16[256,128], index: 1, kind: input, shape index: {}]   ;;  %s2151_s0 = inlined_call_operand.vmem [shape: bf16[512,256], index: 0, kind: input, shape index: {}]   ;;  %s2152_s2 = inlined_call_operand.vmem [shape: f32[1,128], index: 2, kind: input, shape index: {}]   ;;  %s2153_s3 = inlined_call_operand.vmem [shape: bf16[512,128], index: 3, kind: output, shape index: {}]  }
   0x1   :  { %534 = vmatprep.subr.bf16.mxu0 %v1692_v0  ;;  %1547 = vmatprep.subr.bf16.mxu1 %v1692_v0  ;;  %v1580_v1 = vld [vmem:[%s2150_s1 + $0x38] sm:$0xff]   ;;  %v1581_v2 = vld [vmem:[%s2150_s1 + $0x30] sm:$0xff]   ;;  %v1582_v3 = vld [vmem:[%s2150_s1 + $0x28] sm:$0xff]  }
   0x2   :  { %535 = vmatpush1.bf16.msra.mxu0 %v1580_v1  ;;  %1563 = vmatpush1.bf16.msra.mxu1 %v1580_v1  ;;  %v1583_v4 = vld [vmem:[%s2150_s1 + $0x20] sm:$0xff]   ;;  %v1584_v5 = vld [vmem:[%s2150_s1 + $0x18] sm:$0xff]   ;;  %v1585_v7 = vld [vmem:[%s2150_s1 + $0x10] sm:$0xff]  }
   0x3   :  { %536 = vmatprep.subr.bf16.mxu0 %v1692_v0  ;;  %1548 = vmatprep.subr.bf16.mxu1 %v1692_v0  ;;  %v1598_v6 = vld [vmem:[%s2151_s0 + $0x4] ss:$8 sps:$4 sm:$0xff]   ;;  %v1588_v11 = vld [vmem:[%s2150_s1 + $0x78] sm:$0xff]   ;;  %v1589_v12 = vld [vmem:[%s2150_s1 + $0x70] sm:$0xff]  }
   0x4   :  { %v1601_v8 = vld [vmem:[%s2151_s0 + $0x104] ss:$8 sps:$4 sm:$0xff]   ;;  %566 = vmatprep.mubr.bf16.mxu0 %v1598_v6  ;;  %v1592_v15 = vld [vmem:[%s2150_s1 + $0x58] sm:$0xff]   ;;  %v1593_v16 = vld [vmem:[%s2150_s1 + $0x50] sm:$0xff]  }
   0x5   :  { %694 = vmatprep.mubr.bf16.mxu1 %v1601_v8  ;;  %v1586_v9 = vld [vmem:[%s2150_s1 + $0x8] sm:$0xff]   ;;  %v1587_v10 = vld [vmem:[%s2150_s1] sm:$0xff]   ;;  %v1602_v21 = vld [vmem:[%s2151_s0 + $0x14] ss:$8 sps:$4 sm:$0xff]  }
   0x6   :  { %537 = vmatpush1.bf16.msra.mxu0 %v1581_v2  ;;  %1564 = vmatpush1.bf16.msra.mxu1 %v1581_v2  ;;  %v1590_v13 = vld [vmem:[%s2150_s1 + $0x68] sm:$0xff]   ;;  %v1591_v14 = vld [vmem:[%s2150_s1 + $0x60] sm:$0xff]   ;;  %v1604_v22 = vld [vmem:[%s2151_s0 + $0x114] ss:$8 sps:$4 sm:$0xff]  }
   0x7   :  { %538 = vmatprep.subr.bf16.mxu0 %v1692_v0  ;;  %1549 = vmatprep.subr.bf16.mxu1 %v1692_v0  ;;  %v1594_v17 = vld [vmem:[%s2150_s1 + $0x48] sm:$0xff]   ;;  %v1595_v18 = vld [vmem:[%s2150_s1 + $0x40] sm:$0xff]   ;;  %v1606_v23 = vld [vmem:[%s2151_s0 + $0x10] ss:$8 sps:$4 sm:$0xff]  }
   0x8   :  { %v1596_v19 = vld [vmem:[%s2151_s0] ss:$8 sps:$4 sm:$0xff]   ;;  %v1607_v24 = vld [vmem:[%s2151_s0 + $0x110] ss:$8 sps:$4 sm:$0xff]   ;;  %v1608_v25 = vld [vmem:[%s2151_s0 + $0x24] ss:$8 sps:$4 sm:$0xff]  }
   0x9   :  { %v1599_v20 = vld [vmem:[%s2151_s0 + $0x100] ss:$8 sps:$4 sm:$0xff]   ;;  %v1610_v26 = vld [vmem:[%s2151_s0 + $0x124] ss:$8 sps:$4 sm:$0xff]   ;;  %v1614_v29 = vld [vmem:[%s2151_s0 + $0x34] ss:$8 sps:$4 sm:$0xff]  }
   0xa   :  { %539 = vmatpush1.bf16.msra.mxu0 %v1582_v3  ;;  %1565 = vmatpush1.bf16.msra.mxu1 %v1582_v3  ;;  %v1612_v27 = vld [vmem:[%s2151_s0 + $0x20] ss:$8 sps:$4 sm:$0xff]   ;;  %v1616_v30 = vld [vmem:[%s2151_s0 + $0x134] ss:$8 sps:$4 sm:$0xff]   ;;  %v1618_v31 = vld [vmem:[%s2151_s0 + $0x30] ss:$8 sps:$4 sm:$0xff]  }
   0xb   :  { %540 = vmatprep.subr.bf16.mxu0 %v1692_v0  ;;  %1550 = vmatprep.subr.bf16.mxu1 %v1692_v0  ;;  %v1613_v28 = vld [vmem:[%s2151_s0 + $0x120] ss:$8 sps:$4 sm:$0xff]   ;;  %v1619_v32 = vld [vmem:[%s2151_s0 + $0x130] ss:$8 sps:$4 sm:$0xff]   ;;  %v1620_v33 = vld [vmem:[%s2151_s0 + $0x44] ss:$8 sps:$4 sm:$0xff]  }
   0xc   :  { %v1622_v34 = vld [vmem:[%s2151_s0 + $0x144] ss:$8 sps:$4 sm:$0xff]   ;;  %v1624_v35 = vld [vmem:[%s2151_s0 + $0x40] ss:$8 sps:$4 sm:$0xff]   ;;  %v1626_v37 = vld [vmem:[%s2151_s0 + $0x54] ss:$8 sps:$4 sm:$0xff]  }
   0xd   :  { %v1625_v36 = vld [vmem:[%s2151_s0 + $0x140] ss:$8 sps:$4 sm:$0xff]   ;;  %v1628_v38 = vld [vmem:[%s2151_s0 + $0x154] ss:$8 sps:$4 sm:$0xff]   ;;  %v1630_v39 = vld [vmem:[%s2151_s0 + $0x50] ss:$8 sps:$4 sm:$0xff]  }
   0xe   :  { %541 = vmatpush1.bf16.msra.mxu0 %v1583_v4  ;;  %1566 = vmatpush1.bf16.msra.mxu1 %v1583_v4  ;;  %v1631_v40 = vld [vmem:[%s2151_s0 + $0x150] ss:$8 sps:$4 sm:$0xff]   ;;  %v1632_v41 = vld [vmem:[%s2151_s0 + $0x64] ss:$8 sps:$4 sm:$0xff]   ;;  %v1636_v43 = vld [vmem:[%s2151_s0 + $0x60] ss:$8 sps:$4 sm:$0xff]  }
   0xf   :  { %542 = vmatprep.subr.bf16.mxu0 %v1692_v0  ;;  %1551 = vmatprep.subr.bf16.mxu1 %v1692_v0  ;;  %v1634_v42 = vld [vmem:[%s2151_s0 + $0x164] ss:$8 sps:$4 sm:$0xff]   ;;  %v1637_v44 = vld [vmem:[%s2151_s0 + $0x160] ss:$8 sps:$4 sm:$0xff]   ;;  %v1638_v45 = vld [vmem:[%s2151_s0 + $0x74] ss:$8 sps:$4 sm:$0xff]  }
  0x10   :  { %v1640_v46 = vld [vmem:[%s2151_s0 + $0x174] ss:$8 sps:$4 sm:$0xff]   ;;  %v1642_v47 = vld [vmem:[%s2151_s0 + $0x70] ss:$8 sps:$4 sm:$0xff]   ;;  %v1644_v49 = vld [vmem:[%s2151_s0 + $0x84] ss:$8 sps:$4 sm:$0xff]  }
  0x11   :  { %v1643_v48 = vld [vmem:[%s2151_s0 + $0x170] ss:$8 sps:$4 sm:$0xff]   ;;  %v1646_v50 = vld [vmem:[%s2151_s0 + $0x184] ss:$8 sps:$4 sm:$0xff]   ;;  %v1648_v51 = vld [vmem:[%s2151_s0 + $0x80] ss:$8 sps:$4 sm:$0xff]  }
  0x12   :  { %543 = vmatpush1.bf16.msra.mxu0 %v1584_v5  ;;  %1567 = vmatpush1.bf16.msra.mxu1 %v1584_v5  ;;  %v1649_v52 = vld [vmem:[%s2151_s0 + $0x180] ss:$8 sps:$4 sm:$0xff]   ;;  %v1650_v53 = vld [vmem:[%s2151_s0 + $0x94] ss:$8 sps:$4 sm:$0xff]   ;;  %v1654_v55 = vld [vmem:[%s2151_s0 + $0x90] ss:$8 sps:$4 sm:$0xff]  }
  0x13   :  { %544 = vmatprep.subr.bf16.mxu0 %v1692_v0  ;;  %1552 = vmatprep.subr.bf16.mxu1 %v1692_v0  ;;  %v1652_v54 = vld [vmem:[%s2151_s0 + $0x194] ss:$8 sps:$4 sm:$0xff]   ;;  %v1655_v56 = vld [vmem:[%s2151_s0 + $0x190] ss:$8 sps:$4 sm:$0xff]   ;;  %v1656_v57 = vld [vmem:[%s2151_s0 + $0xa4] ss:$8 sps:$4 sm:$0xff]  }
  0x14   :  { %v1658_v58 = vld [vmem:[%s2151_s0 + $0x1a4] ss:$8 sps:$4 sm:$0xff]   ;;  %v1660_v59 = vld [vmem:[%s2151_s0 + $0xa0] ss:$8 sps:$4 sm:$0xff]   ;;  %v1662_v61 = vld [vmem:[%s2151_s0 + $0xb4] ss:$8 sps:$4 sm:$0xff]  }
  0x15   :  { %v1661_v60 = vld [vmem:[%s2151_s0 + $0x1a0] ss:$8 sps:$4 sm:$0xff]   ;;  %v1664_v62 = vld [vmem:[%s2151_s0 + $0x1b4] ss:$8 sps:$4 sm:$0xff]   ;;  %v1666_v63 = vld [vmem:[%s2151_s0 + $0xb0] ss:$8 sps:$4 sm:$0xff]  }
  0x16   :  { %545 = vmatpush1.bf16.msra.mxu0 %v1585_v7  ;;  %1568 = vmatpush1.bf16.msra.mxu1 %v1585_v7  ;;  %v1668_v1 = vld [vmem:[%s2151_s0 + $0xc4] ss:$8 sps:$4 sm:$0xff]   ;;  %v1672_v3 = vld [vmem:[%s2151_s0 + $0xc0] ss:$8 sps:$4 sm:$0xff]   ;;  %v1674_v5 = vld [vmem:[%s2151_s0 + $0xd4] ss:$8 sps:$4 sm:$0xff]  }
  0x17   :  { %546 = vmatprep.subr.bf16.mxu0 %v1692_v0  ;;  %1553 = vmatprep.subr.bf16.mxu1 %v1692_v0  ;;  %v1670_v2 = vld [vmem:[%s2151_s0 + $0x1c4] ss:$8 sps:$4 sm:$0xff]   ;;  %v1673_v4 = vld [vmem:[%s2151_s0 + $0x1c0] ss:$8 sps:$4 sm:$0xff]   ;;  %v1676_v6 = vld [vmem:[%s2151_s0 + $0x1d4] ss:$8 sps:$4 sm:$0xff]  }
  0x18   :  { %v1678_v7 = vld [vmem:[%s2151_s0 + $0xd0] ss:$8 sps:$4 sm:$0xff]  }
  0x19   :  { %v1679_v8 = vld [vmem:[%s2151_s0 + $0x1d0] ss:$8 sps:$4 sm:$0xff]  }
  0x1a   :  { %547 = vmatpush1.bf16.msra.mxu0 %v1586_v9  ;;  %1569 = vmatpush1.bf16.msra.mxu1 %v1586_v9  ;;  %v1680_v9 = vld [vmem:[%s2151_s0 + $0xe4] ss:$8 sps:$4 sm:$0xff]  }
  0x1b   :  { %548 = vmatprep.subr.bf16.mxu0 %v1692_v0  ;;  %1554 = vmatprep.subr.bf16.mxu1 %v1692_v0 }
  0x1e   :  { %549 = vmatpush1.bf16.msra.mxu0 %v1587_v10  ;;  %1570 = vmatpush1.bf16.msra.mxu1 %v1587_v10  ;;  %v1682_v10 = vld [vmem:[%s2151_s0 + $0x1e4] ss:$8 sps:$4 sm:$0xff]  }
  0x1f   :  { %550 = vmatprep.subr.bf16.mxu0 %v1692_v0  ;;  %1555 = vmatprep.subr.bf16.mxu1 %v1692_v0 }
  0x22   :  { %551 = vmatpush2.bf16.msra.mxu0 %v1588_v11  ;;  %1571 = vmatpush2.bf16.msra.mxu1 %v1588_v11  ;;  %v1684_v11 = vld [vmem:[%s2151_s0 + $0xe0] ss:$8 sps:$4 sm:$0xff]  }
  0x23   :  { %552 = vmatprep.subr.bf16.mxu0 %v1692_v0  ;;  %1556 = vmatprep.subr.bf16.mxu1 %v1692_v0 }
  0x26   :  { %553 = vmatpush2.bf16.msra.mxu0 %v1589_v12  ;;  %1572 = vmatpush2.bf16.msra.mxu1 %v1589_v12  ;;  %v1685_v12 = vld [vmem:[%s2151_s0 + $0x1e0] ss:$8 sps:$4 sm:$0xff]  }
  0x27   :  { %554 = vmatprep.subr.bf16.mxu0 %v1692_v0  ;;  %1557 = vmatprep.subr.bf16.mxu1 %v1692_v0 }
  0x2a   :  { %555 = vmatpush2.bf16.msra.mxu0 %v1590_v13  ;;  %1573 = vmatpush2.bf16.msra.mxu1 %v1590_v13  ;;  %v1686_v13 = vld [vmem:[%s2151_s0 + $0xf4] ss:$8 sps:$4 sm:$0xff]  }
  0x2b   :  { %556 = vmatprep.subr.bf16.mxu0 %v1692_v0  ;;  %1558 = vmatprep.subr.bf16.mxu1 %v1692_v0 }
  0x2e   :  { %557 = vmatpush2.bf16.msra.mxu0 %v1591_v14  ;;  %1574 = vmatpush2.bf16.msra.mxu1 %v1591_v14  ;;  %v1688_v14 = vld [vmem:[%s2151_s0 + $0x1f4] ss:$8 sps:$4 sm:$0xff]  }
  0x2f   :  { %558 = vmatprep.subr.bf16.mxu0 %v1692_v0  ;;  %1559 = vmatprep.subr.bf16.mxu1 %v1692_v0 }
  0x32   :  { %559 = vmatpush2.bf16.msra.mxu0 %v1592_v15  ;;  %1575 = vmatpush2.bf16.msra.mxu1 %v1592_v15  ;;  %v1690_v15 = vld [vmem:[%s2151_s0 + $0xf0] ss:$8 sps:$4 sm:$0xff]  }
  0x33   :  { %560 = vmatprep.subr.bf16.mxu0 %v1692_v0  ;;  %1560 = vmatprep.subr.bf16.mxu1 %v1692_v0 }
  0x36   :  { %561 = vmatpush2.bf16.msra.mxu0 %v1593_v16  ;;  %1576 = vmatpush2.bf16.msra.mxu1 %v1593_v16  ;;  %v1691_v16 = vld [vmem:[%s2151_s0 + $0x1f0] ss:$8 sps:$4 sm:$0xff]  }
  0x37   :  { %562 = vmatprep.subr.bf16.mxu0 %v1692_v0  ;;  %1561 = vmatprep.subr.bf16.mxu1 %v1692_v0 }
  0x3a   :  { %563 = vmatpush2.bf16.msra.mxu0 %v1594_v17  ;;  %1577 = vmatpush2.bf16.msra.mxu1 %v1594_v17 }
  0x3b   :  { %564 = vmatprep.subr.bf16.mxu0 %v1692_v0  ;;  %1562 = vmatprep.subr.bf16.mxu1 %v1692_v0  ;;  %v1667_v0 = vld [vmem:[%s2151_s0 + $0x1b0] ss:$8 sps:$4 sm:$0xff]  }
  0x3e   :  { %565 = vmatpush2.bf16.msra.mxu0 %v1595_v18  ;;  %1578 = vmatpush2.bf16.msra.mxu1 %v1595_v18 }
  0x41   :  { %567 = vmatmul.mubr.bf16.vlgmr.msra.gmra.mxu0 %v1596_v19  ;;  %695 = vmatmul.mubr.bf16.vlgmr.msra.gmra.mxu1 %v1599_v20  ;;  %v1988_v19 = vld [vmem:[%s2152_s2] ss:$0 sm:$0xff] }
  0x42   :  { %574 = vmatprep.mubr.bf16.mxu0 %v1602_v21  ;;  %702 = vmatprep.mubr.bf16.mxu1 %v1604_v22 }
  0x49   :  { %575 = vmatmul.mubr.bf16.gmra.mxu0 %v1606_v23  ;;  %703 = vmatmul.mubr.bf16.gmra.mxu1 %v1607_v24 }
  0x4a   :  { %582 = vmatprep.mubr.bf16.mxu0 %v1608_v25  ;;  %710 = vmatprep.mubr.bf16.mxu1 %v1610_v26 }
  0x51   :  { %583 = vmatmul.mubr.bf16.gmra.mxu0 %v1612_v27  ;;  %711 = vmatmul.mubr.bf16.gmra.mxu1 %v1613_v28 }
  0x52   :  { %590 = vmatprep.mubr.bf16.mxu0 %v1614_v29  ;;  %718 = vmatprep.mubr.bf16.mxu1 %v1616_v30 }
  0x59   :  { %591 = vmatmul.mubr.bf16.gmra.mxu0 %v1618_v31  ;;  %719 = vmatmul.mubr.bf16.gmra.mxu1 %v1619_v32 }
  0x5a   :  { %598 = vmatprep.mubr.bf16.mxu0 %v1620_v33  ;;  %726 = vmatprep.mubr.bf16.mxu1 %v1622_v34 }
  0x61   :  { %599 = vmatmul.mubr.bf16.gmra.mxu0 %v1624_v35  ;;  %727 = vmatmul.mubr.bf16.gmra.mxu1 %v1625_v36 }
  0x62   :  { %606 = vmatprep.mubr.bf16.mxu0 %v1626_v37  ;;  %734 = vmatprep.mubr.bf16.mxu1 %v1628_v38 }
  0x69   :  { %607 = vmatmul.mubr.bf16.gmra.mxu0 %v1630_v39  ;;  %735 = vmatmul.mubr.bf16.gmra.mxu1 %v1631_v40 }
  0x6a   :  { %614 = vmatprep.mubr.bf16.mxu0 %v1632_v41  ;;  %742 = vmatprep.mubr.bf16.mxu1 %v1634_v42 }
  0x71   :  { %615 = vmatmul.mubr.bf16.gmra.mxu0 %v1636_v43  ;;  %743 = vmatmul.mubr.bf16.gmra.mxu1 %v1637_v44 }
  0x72   :  { %622 = vmatprep.mubr.bf16.mxu0 %v1638_v45  ;;  %750 = vmatprep.mubr.bf16.mxu1 %v1640_v46 }
  0x79   :  { %623 = vmatmul.mubr.bf16.gmra.mxu0 %v1642_v47  ;;  %751 = vmatmul.mubr.bf16.gmra.mxu1 %v1643_v48 }
  0x7a   :  { %630 = vmatprep.mubr.bf16.mxu0 %v1644_v49  ;;  %758 = vmatprep.mubr.bf16.mxu1 %v1646_v50 }
  0x81   :  { %631 = vmatmul.mubr.bf16.gmra.mxu0 %v1648_v51  ;;  %759 = vmatmul.mubr.bf16.gmra.mxu1 %v1649_v52 }
  0x82   :  { %638 = vmatprep.mubr.bf16.mxu0 %v1650_v53  ;;  %766 = vmatprep.mubr.bf16.mxu1 %v1652_v54 }
  0x89   :  { %639 = vmatmul.mubr.bf16.gmra.mxu0 %v1654_v55  ;;  %767 = vmatmul.mubr.bf16.gmra.mxu1 %v1655_v56 }
  0x8a   :  { %646 = vmatprep.mubr.bf16.mxu0 %v1656_v57  ;;  %774 = vmatprep.mubr.bf16.mxu1 %v1658_v58 }
  0x91   :  { %647 = vmatmul.mubr.bf16.gmra.mxu0 %v1660_v59  ;;  %775 = vmatmul.mubr.bf16.gmra.mxu1 %v1661_v60 }
  0x92   :  { %654 = vmatprep.mubr.bf16.mxu0 %v1662_v61  ;;  %782 = vmatprep.mubr.bf16.mxu1 %v1664_v62 }
  0x99   :  { %655 = vmatmul.mubr.bf16.gmra.mxu0 %v1666_v63  ;;  %783 = vmatmul.mubr.bf16.gmra.mxu1 %v1667_v0 }
  0x9a   :  { %662 = vmatprep.mubr.bf16.mxu0 %v1668_v1  ;;  %790 = vmatprep.mubr.bf16.mxu1 %v1670_v2 }
  0xa1   :  { %663 = vmatmul.mubr.bf16.gmra.mxu0 %v1672_v3  ;;  %791 = vmatmul.mubr.bf16.gmra.mxu1 %v1673_v4 }
  0xa2   :  { %670 = vmatprep.mubr.bf16.mxu0 %v1674_v5  ;;  %798 = vmatprep.mubr.bf16.mxu1 %v1676_v6 }
  0xa9   :  { %671 = vmatmul.mubr.bf16.gmra.mxu0 %v1678_v7  ;;  %799 = vmatmul.mubr.bf16.gmra.mxu1 %v1679_v8 }
  0xaa   :  { %678 = vmatprep.mubr.bf16.mxu0 %v1680_v9  ;;  %806 = vmatprep.mubr.bf16.mxu1 %v1682_v10 }
  0xb1   :  { %679 = vmatmul.mubr.bf16.gmra.mxu0 %v1684_v11  ;;  %807 = vmatmul.mubr.bf16.gmra.mxu1 %v1685_v12 }
  0xb2   :  { %686 = vmatprep.mubr.bf16.mxu0 %v1686_v13  ;;  %814 = vmatprep.mubr.bf16.mxu1 %v1688_v14 }
  0xb9   :  { %687 = vmatmul.mubr.bf16.gmra.mxu0 %v1690_v15  ;;  %815 = vmatmul.mubr.bf16.gmra.mxu1 %v1691_v16 }
 0x101   :  { %v568_v17 = vpop.f32.mrf.mxu0  ;;  %v696_v18 = vpop.f32.mrf.mxu1 }
 0x102   :  { %v569_v24 = vadd.f32 %v1988_v19, %v568_v17  ;;  %v697_v25 = vadd.f32 %v1988_v19, %v696_v18 }
 0x103   :  { %v570_v20 = vpop.f32.mrf.mxu0  ;;  %v698_v21 = vpop.f32.mrf.mxu1 }
 0x105   :  { %v571_v22 = vpop.f32.mrf.mxu0  ;;  %v699_v23 = vpop.f32.mrf.mxu1 }
 0x106   :  { %v572_v26 = vadd.f32 %v1988_v19, %v571_v22  ;;  %v700_v27 = vadd.f32 %v1988_v19, %v699_v23 }
 0x107   :  { %v573_v28 = vpop.f32.mrf.mxu0  ;;  %v701_v29 = vpop.f32.mrf.mxu1 }
 0x108   :  { %v1359_v30 = vpack.c.bf16 %v572_v26, %v569_v24  ;;  %v1439_v31 = vpack.c.bf16 %v700_v27, %v697_v25 }
 0x109   :  { %v576_v32 = vpop.f32.mrf.mxu0  ;;  %v704_v33 = vpop.f32.mrf.mxu1 }
 0x10a   :  { %1360 = vst [vmem:[%s2153_s3] sm:$0xff] %v1359_v30   ;;  %1531 = vst [vmem:[%s2153_s3 + $0x80] sm:$0xff] %v1439_v31   ;;  %v577_v38 = vadd.f32 %v1988_v19, %v576_v32  ;;  %v705_v39 = vadd.f32 %v1988_v19, %v704_v33 }
 0x10b   :  { %v578_v34 = vpop.f32.mrf.mxu0  ;;  %v706_v35 = vpop.f32.mrf.mxu1 }
 0x10d   :  { %v579_v36 = vpop.f32.mrf.mxu0  ;;  %v707_v37 = vpop.f32.mrf.mxu1 }
 0x10e   :  { %v580_v40 = vadd.f32 %v1988_v19, %v579_v36  ;;  %v708_v41 = vadd.f32 %v1988_v19, %v707_v37 }
 0x10f   :  { %v581_v42 = vpop.f32.mrf.mxu0  ;;  %v709_v43 = vpop.f32.mrf.mxu1 }
 0x110   :  { %v1364_v44 = vpack.c.bf16 %v580_v40, %v577_v38  ;;  %v1444_v45 = vpack.c.bf16 %v708_v41, %v705_v39 }
 0x111   :  { %v584_v46 = vpop.f32.mrf.mxu0  ;;  %v712_v47 = vpop.f32.mrf.mxu1 }
 0x112   :  { %1516 = vst [vmem:[%s2153_s3 + $0x8] sm:$0xff] %v1364_v44   ;;  %1532 = vst [vmem:[%s2153_s3 + $0x88] sm:$0xff] %v1444_v45   ;;  %v585_v52 = vadd.f32 %v1988_v19, %v584_v46  ;;  %v713_v53 = vadd.f32 %v1988_v19, %v712_v47 }
 0x113   :  { %v586_v48 = vpop.f32.mrf.mxu0  ;;  %v714_v49 = vpop.f32.mrf.mxu1 }
 0x115   :  { %v587_v50 = vpop.f32.mrf.mxu0  ;;  %v715_v51 = vpop.f32.mrf.mxu1 }
 0x116   :  { %v588_v54 = vadd.f32 %v1988_v19, %v587_v50  ;;  %v716_v55 = vadd.f32 %v1988_v19, %v715_v51 }
 0x117   :  { %v589_v56 = vpop.f32.mrf.mxu0  ;;  %v717_v57 = vpop.f32.mrf.mxu1 }
 0x118   :  { %v1369_v58 = vpack.c.bf16 %v588_v54, %v585_v52  ;;  %v1449_v59 = vpack.c.bf16 %v716_v55, %v713_v53 }
 0x119   :  { %v592_v60 = vpop.f32.mrf.mxu0  ;;  %v720_v61 = vpop.f32.mrf.mxu1 }
 0x11a   :  { %1517 = vst [vmem:[%s2153_s3 + $0x10] sm:$0xff] %v1369_v58   ;;  %1533 = vst [vmem:[%s2153_s3 + $0x90] sm:$0xff] %v1449_v59   ;;  %v593_v2 = vadd.f32 %v1988_v19, %v592_v60  ;;  %v721_v3 = vadd.f32 %v1988_v19, %v720_v61 }
 0x11b   :  { %v594_v62 = vpop.f32.mrf.mxu0  ;;  %v722_v63 = vpop.f32.mrf.mxu1 }
 0x11d   :  { %v595_v0 = vpop.f32.mrf.mxu0  ;;  %v723_v1 = vpop.f32.mrf.mxu1 }
 0x11e   :  { %v596_v4 = vadd.f32 %v1988_v19, %v595_v0  ;;  %v724_v5 = vadd.f32 %v1988_v19, %v723_v1 }
 0x11f   :  { %v597_v6 = vpop.f32.mrf.mxu0  ;;  %v725_v7 = vpop.f32.mrf.mxu1 }
 0x120   :  { %v1374_v8 = vpack.c.bf16 %v596_v4, %v593_v2  ;;  %v1454_v9 = vpack.c.bf16 %v724_v5, %v721_v3 }
 0x121   :  { %v600_v10 = vpop.f32.mrf.mxu0  ;;  %v728_v11 = vpop.f32.mrf.mxu1 }
 0x122   :  { %1518 = vst [vmem:[%s2153_s3 + $0x18] sm:$0xff] %v1374_v8   ;;  %1534 = vst [vmem:[%s2153_s3 + $0x98] sm:$0xff] %v1454_v9   ;;  %v601_v16 = vadd.f32 %v1988_v19, %v600_v10  ;;  %v729_v17 = vadd.f32 %v1988_v19, %v728_v11 }
 0x123   :  { %v602_v12 = vpop.f32.mrf.mxu0  ;;  %v730_v13 = vpop.f32.mrf.mxu1 }
 0x125   :  { %v603_v14 = vpop.f32.mrf.mxu0  ;;  %v731_v15 = vpop.f32.mrf.mxu1 }
 0x126   :  { %v604_v18 = vadd.f32 %v1988_v19, %v603_v14  ;;  %v732_v20 = vadd.f32 %v1988_v19, %v731_v15 }
 0x127   :  { %v605_v21 = vpop.f32.mrf.mxu0  ;;  %v733_v22 = vpop.f32.mrf.mxu1 }
 0x128   :  { %v1379_v23 = vpack.c.bf16 %v604_v18, %v601_v16  ;;  %v1459_v24 = vpack.c.bf16 %v732_v20, %v729_v17 }
 0x129   :  { %v608_v25 = vpop.f32.mrf.mxu0  ;;  %v736_v26 = vpop.f32.mrf.mxu1 }
 0x12a   :  { %1519 = vst [vmem:[%s2153_s3 + $0x20] sm:$0xff] %v1379_v23   ;;  %1535 = vst [vmem:[%s2153_s3 + $0xa0] sm:$0xff] %v1459_v24   ;;  %v609_v31 = vadd.f32 %v1988_v19, %v608_v25  ;;  %v737_v32 = vadd.f32 %v1988_v19, %v736_v26 }
 0x12b   :  { %v610_v27 = vpop.f32.mrf.mxu0  ;;  %v738_v28 = vpop.f32.mrf.mxu1 }
 0x12d   :  { %v611_v29 = vpop.f32.mrf.mxu0  ;;  %v739_v30 = vpop.f32.mrf.mxu1 }
 0x12e   :  { %v612_v33 = vadd.f32 %v1988_v19, %v611_v29  ;;  %v740_v34 = vadd.f32 %v1988_v19, %v739_v30 }
 0x12f   :  { %v613_v35 = vpop.f32.mrf.mxu0  ;;  %v741_v36 = vpop.f32.mrf.mxu1 }
 0x130   :  { %v1384_v37 = vpack.c.bf16 %v612_v33, %v609_v31  ;;  %v1464_v38 = vpack.c.bf16 %v740_v34, %v737_v32 }
 0x131   :  { %v616_v39 = vpop.f32.mrf.mxu0  ;;  %v744_v40 = vpop.f32.mrf.mxu1 }
 0x132   :  { %1520 = vst [vmem:[%s2153_s3 + $0x28] sm:$0xff] %v1384_v37   ;;  %1536 = vst [vmem:[%s2153_s3 + $0xa8] sm:$0xff] %v1464_v38   ;;  %v617_v45 = vadd.f32 %v1988_v19, %v616_v39  ;;  %v745_v46 = vadd.f32 %v1988_v19, %v744_v40 }
 0x133   :  { %v618_v41 = vpop.f32.mrf.mxu0  ;;  %v746_v42 = vpop.f32.mrf.mxu1 }
 0x135   :  { %v619_v43 = vpop.f32.mrf.mxu0  ;;  %v747_v44 = vpop.f32.mrf.mxu1 }
 0x136   :  { %v620_v47 = vadd.f32 %v1988_v19, %v619_v43  ;;  %v748_v48 = vadd.f32 %v1988_v19, %v747_v44 }
 0x137   :  { %v621_v49 = vpop.f32.mrf.mxu0  ;;  %v749_v50 = vpop.f32.mrf.mxu1 }
 0x138   :  { %v1389_v51 = vpack.c.bf16 %v620_v47, %v617_v45  ;;  %v1469_v52 = vpack.c.bf16 %v748_v48, %v745_v46 }
 0x139   :  { %v624_v53 = vpop.f32.mrf.mxu0  ;;  %v752_v54 = vpop.f32.mrf.mxu1 }
 0x13a   :  { %1521 = vst [vmem:[%s2153_s3 + $0x30] sm:$0xff] %v1389_v51   ;;  %1537 = vst [vmem:[%s2153_s3 + $0xb0] sm:$0xff] %v1469_v52   ;;  %v625_v59 = vadd.f32 %v1988_v19, %v624_v53  ;;  %v753_v60 = vadd.f32 %v1988_v19, %v752_v54 }
 0x13b   :  { %v626_v55 = vpop.f32.mrf.mxu0  ;;  %v754_v56 = vpop.f32.mrf.mxu1 }
 0x13d   :  { %v627_v57 = vpop.f32.mrf.mxu0  ;;  %v755_v58 = vpop.f32.mrf.mxu1 }
 0x13e   :  { %v628_v61 = vadd.f32 %v1988_v19, %v627_v57  ;;  %v756_v62 = vadd.f32 %v1988_v19, %v755_v58 }
 0x13f   :  { %v629_v63 = vpop.f32.mrf.mxu0  ;;  %v757_v0 = vpop.f32.mrf.mxu1 }
 0x140   :  { %v1394_v1 = vpack.c.bf16 %v628_v61, %v625_v59  ;;  %v1474_v2 = vpack.c.bf16 %v756_v62, %v753_v60 }
 0x141   :  { %v632_v3 = vpop.f32.mrf.mxu0  ;;  %v760_v4 = vpop.f32.mrf.mxu1 }
 0x142   :  { %1522 = vst [vmem:[%s2153_s3 + $0x38] sm:$0xff] %v1394_v1   ;;  %1538 = vst [vmem:[%s2153_s3 + $0xb8] sm:$0xff] %v1474_v2   ;;  %v633_v9 = vadd.f32 %v1988_v19, %v632_v3  ;;  %v761_v10 = vadd.f32 %v1988_v19, %v760_v4 }
 0x143   :  { %v634_v5 = vpop.f32.mrf.mxu0  ;;  %v762_v6 = vpop.f32.mrf.mxu1 }
 0x145   :  { %v635_v7 = vpop.f32.mrf.mxu0  ;;  %v763_v8 = vpop.f32.mrf.mxu1 }
 0x146   :  { %v636_v11 = vadd.f32 %v1988_v19, %v635_v7  ;;  %v764_v12 = vadd.f32 %v1988_v19, %v763_v8 }
 0x147   :  { %v637_v13 = vpop.f32.mrf.mxu0  ;;  %v765_v14 = vpop.f32.mrf.mxu1 }
 0x148   :  { %v1399_v15 = vpack.c.bf16 %v636_v11, %v633_v9  ;;  %v1479_v16 = vpack.c.bf16 %v764_v12, %v761_v10 }
 0x149   :  { %v640_v17 = vpop.f32.mrf.mxu0  ;;  %v768_v18 = vpop.f32.mrf.mxu1 }
 0x14a   :  { %1523 = vst [vmem:[%s2153_s3 + $0x40] sm:$0xff] %v1399_v15   ;;  %1539 = vst [vmem:[%s2153_s3 + $0xc0] sm:$0xff] %v1479_v16   ;;  %v641_v24 = vadd.f32 %v1988_v19, %v640_v17  ;;  %v769_v25 = vadd.f32 %v1988_v19, %v768_v18 }
 0x14b   :  { %v642_v20 = vpop.f32.mrf.mxu0  ;;  %v770_v21 = vpop.f32.mrf.mxu1 }
 0x14d   :  { %v643_v22 = vpop.f32.mrf.mxu0  ;;  %v771_v23 = vpop.f32.mrf.mxu1 }
 0x14e   :  { %v644_v26 = vadd.f32 %v1988_v19, %v643_v22  ;;  %v772_v27 = vadd.f32 %v1988_v19, %v771_v23 }
 0x14f   :  { %v645_v28 = vpop.f32.mrf.mxu0  ;;  %v773_v29 = vpop.f32.mrf.mxu1 }
 0x150   :  { %v1404_v30 = vpack.c.bf16 %v644_v26, %v641_v24  ;;  %v1484_v31 = vpack.c.bf16 %v772_v27, %v769_v25 }
 0x151   :  { %v648_v32 = vpop.f32.mrf.mxu0  ;;  %v776_v33 = vpop.f32.mrf.mxu1 }
 0x152   :  { %1524 = vst [vmem:[%s2153_s3 + $0x48] sm:$0xff] %v1404_v30   ;;  %1540 = vst [vmem:[%s2153_s3 + $0xc8] sm:$0xff] %v1484_v31   ;;  %v649_v38 = vadd.f32 %v1988_v19, %v648_v32  ;;  %v777_v39 = vadd.f32 %v1988_v19, %v776_v33 }
 0x153   :  { %v650_v34 = vpop.f32.mrf.mxu0  ;;  %v778_v35 = vpop.f32.mrf.mxu1 }
 0x155   :  { %v651_v36 = vpop.f32.mrf.mxu0  ;;  %v779_v37 = vpop.f32.mrf.mxu1 }
 0x156   :  { %v652_v40 = vadd.f32 %v1988_v19, %v651_v36  ;;  %v780_v41 = vadd.f32 %v1988_v19, %v779_v37 }
 0x157   :  { %v653_v42 = vpop.f32.mrf.mxu0  ;;  %v781_v43 = vpop.f32.mrf.mxu1 }
 0x158   :  { %v1409_v44 = vpack.c.bf16 %v652_v40, %v649_v38  ;;  %v1489_v45 = vpack.c.bf16 %v780_v41, %v777_v39 }
 0x159   :  { %v656_v46 = vpop.f32.mrf.mxu0  ;;  %v784_v47 = vpop.f32.mrf.mxu1 }
 0x15a   :  { %1525 = vst [vmem:[%s2153_s3 + $0x50] sm:$0xff] %v1409_v44   ;;  %1541 = vst [vmem:[%s2153_s3 + $0xd0] sm:$0xff] %v1489_v45   ;;  %v657_v52 = vadd.f32 %v1988_v19, %v656_v46  ;;  %v785_v53 = vadd.f32 %v1988_v19, %v784_v47 }
 0x15b   :  { %v658_v48 = vpop.f32.mrf.mxu0  ;;  %v786_v49 = vpop.f32.mrf.mxu1 }
 0x15d   :  { %v659_v50 = vpop.f32.mrf.mxu0  ;;  %v787_v51 = vpop.f32.mrf.mxu1 }
 0x15e   :  { %v660_v54 = vadd.f32 %v1988_v19, %v659_v50  ;;  %v788_v55 = vadd.f32 %v1988_v19, %v787_v51 }
 0x15f   :  { %v661_v56 = vpop.f32.mrf.mxu0  ;;  %v789_v57 = vpop.f32.mrf.mxu1 }
 0x160   :  { %v1414_v58 = vpack.c.bf16 %v660_v54, %v657_v52  ;;  %v1494_v59 = vpack.c.bf16 %v788_v55, %v785_v53 }
 0x161   :  { %v664_v60 = vpop.f32.mrf.mxu0  ;;  %v792_v61 = vpop.f32.mrf.mxu1 }
 0x162   :  { %1526 = vst [vmem:[%s2153_s3 + $0x58] sm:$0xff] %v1414_v58   ;;  %1542 = vst [vmem:[%s2153_s3 + $0xd8] sm:$0xff] %v1494_v59   ;;  %v665_v2 = vadd.f32 %v1988_v19, %v664_v60  ;;  %v793_v3 = vadd.f32 %v1988_v19, %v792_v61 }
 0x163   :  { %v666_v62 = vpop.f32.mrf.mxu0  ;;  %v794_v63 = vpop.f32.mrf.mxu1 }
 0x165   :  { %v667_v0 = vpop.f32.mrf.mxu0  ;;  %v795_v1 = vpop.f32.mrf.mxu1 }
 0x166   :  { %v668_v4 = vadd.f32 %v1988_v19, %v667_v0  ;;  %v796_v5 = vadd.f32 %v1988_v19, %v795_v1 }
 0x167   :  { %v669_v6 = vpop.f32.mrf.mxu0  ;;  %v797_v7 = vpop.f32.mrf.mxu1 }
 0x168   :  { %v1419_v8 = vpack.c.bf16 %v668_v4, %v665_v2  ;;  %v1499_v9 = vpack.c.bf16 %v796_v5, %v793_v3 }
 0x169   :  { %v672_v10 = vpop.f32.mrf.mxu0  ;;  %v800_v11 = vpop.f32.mrf.mxu1 }
 0x16a   :  { %1527 = vst [vmem:[%s2153_s3 + $0x60] sm:$0xff] %v1419_v8   ;;  %1543 = vst [vmem:[%s2153_s3 + $0xe0] sm:$0xff] %v1499_v9   ;;  %v673_v16 = vadd.f32 %v1988_v19, %v672_v10  ;;  %v801_v17 = vadd.f32 %v1988_v19, %v800_v11 }
 0x16b   :  { %v674_v12 = vpop.f32.mrf.mxu0  ;;  %v802_v13 = vpop.f32.mrf.mxu1 }
 0x16d   :  { %v675_v14 = vpop.f32.mrf.mxu0  ;;  %v803_v15 = vpop.f32.mrf.mxu1 }
 0x16e   :  { %v676_v18 = vadd.f32 %v1988_v19, %v675_v14  ;;  %v804_v20 = vadd.f32 %v1988_v19, %v803_v15 }
 0x16f   :  { %v677_v21 = vpop.f32.mrf.mxu0  ;;  %v805_v22 = vpop.f32.mrf.mxu1 }
 0x170   :  { %v1424_v23 = vpack.c.bf16 %v676_v18, %v673_v16  ;;  %v1504_v24 = vpack.c.bf16 %v804_v20, %v801_v17 }
 0x171   :  { %v680_v25 = vpop.f32.mrf.mxu0  ;;  %v808_v26 = vpop.f32.mrf.mxu1 }
 0x172   :  { %1528 = vst [vmem:[%s2153_s3 + $0x68] sm:$0xff] %v1424_v23   ;;  %1544 = vst [vmem:[%s2153_s3 + $0xe8] sm:$0xff] %v1504_v24   ;;  %v681_v31 = vadd.f32 %v1988_v19, %v680_v25  ;;  %v809_v32 = vadd.f32 %v1988_v19, %v808_v26 }
 0x173   :  { %v682_v27 = vpop.f32.mrf.mxu0  ;;  %v810_v28 = vpop.f32.mrf.mxu1 }
 0x175   :  { %v683_v29 = vpop.f32.mrf.mxu0  ;;  %v811_v30 = vpop.f32.mrf.mxu1 }
 0x176   :  { %v684_v33 = vadd.f32 %v1988_v19, %v683_v29  ;;  %v812_v34 = vadd.f32 %v1988_v19, %v811_v30 }
 0x177   :  { %v685_v35 = vpop.f32.mrf.mxu0  ;;  %v813_v36 = vpop.f32.mrf.mxu1 }
 0x178   :  { %v1429_v37 = vpack.c.bf16 %v684_v33, %v681_v31  ;;  %v1509_v38 = vpack.c.bf16 %v812_v34, %v809_v32 }
 0x179   :  { %v688_v39 = vpop.f32.mrf.mxu0  ;;  %v816_v40 = vpop.f32.mrf.mxu1 }
 0x17a   :  { %1529 = vst [vmem:[%s2153_s3 + $0x70] sm:$0xff] %v1429_v37   ;;  %1545 = vst [vmem:[%s2153_s3 + $0xf0] sm:$0xff] %v1509_v38   ;;  %v689_v45 = vadd.f32 %v1988_v19, %v688_v39  ;;  %v817_v46 = vadd.f32 %v1988_v19, %v816_v40 }
 0x17b   :  { %v690_v41 = vpop.f32.mrf.mxu0  ;;  %v818_v42 = vpop.f32.mrf.mxu1 }
 0x17d   :  { %v691_v43 = vpop.f32.mrf.mxu0  ;;  %v819_v44 = vpop.f32.mrf.mxu1 }
 0x17e   :  { %v692_v47 = vadd.f32 %v1988_v19, %v691_v43  ;;  %v820_v48 = vadd.f32 %v1988_v19, %v819_v44 }
 0x17f   :  { %v693_v49 = vpop.f32.mrf.mxu0  ;;  %v821_v50 = vpop.f32.mrf.mxu1 }
 0x180   :  { %v1434_v51 = vpack.c.bf16 %v692_v47, %v689_v45  ;;  %v1514_v52 = vpack.c.bf16 %v820_v48, %v817_v46 }
 0x182   :  { %1530 = vst [vmem:[%s2153_s3 + $0x78] sm:$0xff] %v1434_v51   ;;  %1546 = vst [vmem:[%s2153_s3 + $0xf8] sm:$0xff] %v1514_v52  }

// kernel: discriminator_forward.8
= control target key start
LH: loop header
LB: loop body
LE: loop exit
PB: predicated region body
PF: predicated region fallthrough
CT: control target
= control target key end

     0   :  { %s4747_s1 = inlined_call_operand.vmem [shape: bf16[2048,128], index: 1, kind: input, shape index: {}]   ;;  %s4748_s0 = inlined_call_operand.vmem [shape: bf16[128,2048], index: 0, kind: input, shape index: {}]   ;;  %s4749_s2 = inlined_call_operand.vmem [shape: f32[1,128], index: 2, kind: input, shape index: {}]   ;;  %s4750_s3 = inlined_call_operand.vmem [shape: bf16[128,128], index: 3, kind: output, shape index: {}]  }
   0x1   :  { %v3570_v0 = vld [vmem:[%s4747_s1 + $0x78] sm:$0xff]   ;;  %v3574_v4 = vld [vmem:[%s4747_s1 + $0x70] sm:$0xff]   ;;  %v3578_v8 = vld [vmem:[%s4747_s1 + $0x68] sm:$0xff]  }
   0x2   :  { %v3571_v1 = vld [vmem:[%s4747_s1 + $0xf8] sm:$0xff]   ;;  %3058 = vmatprep.subr.bf16.mxu0 %v3570_v0  ;;  %v3575_v5 = vld [vmem:[%s4747_s1 + $0xf0] sm:$0xff]   ;;  %v3579_v9 = vld [vmem:[%s4747_s1 + $0xe8] sm:$0xff]  }
   0x3   :  { %v3572_v2 = vld [vmem:[%s4747_s1 + $0x38] sm:$0xff]   ;;  %3122 = vmatprep.subr.bf16.mxu1 %v3571_v1  ;;  %v3576_v6 = vld [vmem:[%s4747_s1 + $0x30] sm:$0xff]   ;;  %v3580_v10 = vld [vmem:[%s4747_s1 + $0x28] sm:$0xff]  }
   0x4   :  { %v3573_v3 = vld [vmem:[%s4747_s1 + $0xb8] sm:$0xff]   ;;  %3059 = vmatpush3.bf16.msra.mxu0 %v3572_v2  ;;  %v3577_v7 = vld [vmem:[%s4747_s1 + $0xb0] sm:$0xff]   ;;  %v3581_v11 = vld [vmem:[%s4747_s1 + $0xa8] sm:$0xff]  }
   0x5   :  { %3123 = vmatpush3.bf16.msra.mxu1 %v3573_v3  ;;  %3060 = vmatprep.subr.bf16.mxu0 %v3574_v4  ;;  %v3582_v12 = vld [vmem:[%s4747_s1 + $0x60] sm:$0xff]   ;;  %v3586_v16 = vld [vmem:[%s4747_s1 + $0x58] sm:$0xff]   ;;  %v3590_v20 = vld [vmem:[%s4747_s1 + $0x50] sm:$0xff]  }
   0x6   :  { %3124 = vmatprep.subr.bf16.mxu1 %v3575_v5  ;;  %v3583_v13 = vld [vmem:[%s4747_s1 + $0xe0] sm:$0xff]   ;;  %v3587_v17 = vld [vmem:[%s4747_s1 + $0xd8] sm:$0xff]   ;;  %v3591_v21 = vld [vmem:[%s4747_s1 + $0xd0] sm:$0xff]  }
   0x7   :  { %v3584_v14 = vld [vmem:[%s4747_s1 + $0x20] sm:$0xff]   ;;  %v3588_v18 = vld [vmem:[%s4747_s1 + $0x18] sm:$0xff]   ;;  %v3592_v22 = vld [vmem:[%s4747_s1 + $0x10] sm:$0xff]  }
   0x8   :  { %3061 = vmatpush3.bf16.msra.mxu0 %v3576_v6  ;;  %v3585_v15 = vld [vmem:[%s4747_s1 + $0xa0] sm:$0xff]   ;;  %v3589_v19 = vld [vmem:[%s4747_s1 + $0x98] sm:$0xff]   ;;  %v3593_v23 = vld [vmem:[%s4747_s1 + $0x90] sm:$0xff]  }
   0x9   :  { %3125 = vmatpush3.bf16.msra.mxu1 %v3577_v7  ;;  %3062 = vmatprep.subr.bf16.mxu0 %v3578_v8  ;;  %v3594_v24 = vld [vmem:[%s4747_s1 + $0x48] sm:$0xff]   ;;  %v3598_v28 = vld [vmem:[%s4747_s1 + $0x40] sm:$0xff]   ;;  %v3602_v40 = vld [vmem:[%s4747_s1 + $0x178] sm:$0xff]  }
   0xa   :  { %3126 = vmatprep.subr.bf16.mxu1 %v3579_v9  ;;  %v3595_v25 = vld [vmem:[%s4747_s1 + $0xc8] sm:$0xff]   ;;  %v3599_v29 = vld [vmem:[%s4747_s1 + $0xc0] sm:$0xff]   ;;  %v3603_v41 = vld [vmem:[%s4747_s1 + $0x138] sm:$0xff]  }
   0xb   :  { %v3596_v26 = vld [vmem:[%s4747_s1 + $0x8] sm:$0xff]   ;;  %v3600_v30 = vld [vmem:[%s4747_s1] sm:$0xff]   ;;  %v3604_v42 = vld [vmem:[%s4747_s1 + $0x1f8] sm:$0xff]  }
   0xc   :  { %3063 = vmatpush3.bf16.msra.mxu0 %v3580_v10  ;;  %v3597_v27 = vld [vmem:[%s4747_s1 + $0x88] sm:$0xff]   ;;  %v3601_v31 = vld [vmem:[%s4747_s1 + $0x80] sm:$0xff]   ;;  %v3605_v43 = vld [vmem:[%s4747_s1 + $0x1b8] sm:$0xff]  }
   0xd   :  { %3127 = vmatpush3.bf16.msra.mxu1 %v3581_v11  ;;  %3064 = vmatprep.subr.bf16.mxu0 %v3582_v12  ;;  %v15_v32 = vld [vmem:[%s4748_s0] sm:$0xff]  ;;  %v16_v34 = vld [vmem:[%s4748_s0 + $0x8] sm:$0xff]  ;;  %v3606_v50 = vld [vmem:[%s4747_s1 + $0x170] sm:$0xff]  }
   0xe   :  { %3128 = vmatprep.subr.bf16.mxu1 %v3583_v13  ;;  %v23_v33 = vld [vmem:[%s4748_s0 + $0x40] sm:$0xff]  ;;  %v24_v37 = vld [vmem:[%s4748_s0 + $0x48] sm:$0xff]  ;;  %v3607_v52 = vld [vmem:[%s4747_s1 + $0x130] sm:$0xff]  }
   0xf   :  { %v2723_v35 = vcombine.low %v15_v32, %v23_v33  ;;  %v2724_v36 = vcombine.high %v15_v32, %v23_v33  ;;  %v2725_v38 = vcombine.low %v16_v34, %v24_v37  ;;  %v2726_v39 = vcombine.high %v16_v34, %v24_v37  ;;  %v31_v44 = vld [vmem:[%s4748_s0 + $0x80] sm:$0xff]  ;;  %v32_v47 = vld [vmem:[%s4748_s0 + $0x88] sm:$0xff]  ;;  %v3608_v54 = vld [vmem:[%s4747_s1 + $0x1f0] sm:$0xff]  }
  0x10   :  { %3065 = vmatpush3.bf16.msra.mxu0 %v3584_v14  ;;  %v39_v45 = vld [vmem:[%s4748_s0 + $0xc0] sm:$0xff]  ;;  %v40_v48 = vld [vmem:[%s4748_s0 + $0xc8] sm:$0xff]  ;;  %v3609_v55 = vld [vmem:[%s4747_s1 + $0x1b0] sm:$0xff]  }
  0x11   :  { %3129 = vmatpush3.bf16.msra.mxu1 %v3585_v15  ;;  %3066 = vmatprep.subr.bf16.mxu0 %v3586_v16  ;;  %v2740_v46 = vcombine.high %v31_v44, %v39_v45  ;;  %v2742_v49 = vcombine.high %v32_v47, %v40_v48  ;;  %v2739_v51 = vcombine.low %v31_v44, %v39_v45  ;;  %v47_v56 = vld [vmem:[%s4748_s0 + $0x100] sm:$0xff]  ;;  %v48_v58 = vld [vmem:[%s4748_s0 + $0x108] sm:$0xff]  ;;  %v3624_v32 = vld [vmem:[%s4747_s1 + $0x1d0] sm:$0xff]  }
  0x12   :  { %3130 = vmatprep.subr.bf16.mxu1 %v3587_v17  ;;  %1846 = vmatprep.mubr.bf16.mxu0 %v2724_v36  ;;  %v2741_v53 = vcombine.low %v32_v47, %v40_v48  ;;  %v55_v57 = vld [vmem:[%s4748_s0 + $0x140] sm:$0xff]  ;;  %v56_v59 = vld [vmem:[%s4748_s0 + $0x148] sm:$0xff]  ;;  %v3625_v33 = vld [vmem:[%s4747_s1 + $0x190] sm:$0xff]  }
  0x13   :  { %1943 = vmatprep.mubr.bf16.mxu1 %v2726_v39  ;;  %v2756_v60 = vcombine.high %v47_v56, %v55_v57  ;;  %v2758_v61 = vcombine.high %v48_v58, %v56_v59  ;;  %v3610_v62 = vld [vmem:[%s4747_s1 + $0x168] sm:$0xff]   ;;  %v2755_v2 = vcombine.low %v47_v56, %v55_v57  ;;  %v63_v3 = vld [vmem:[%s4748_s0 + $0x180] sm:$0xff]  ;;  %v2757_v6 = vcombine.low %v48_v58, %v56_v59  ;;  %v3634_v56 = vld [vmem:[%s4747_s1 + $0x278] sm:$0xff]  }
  0x14   :  { %3067 = vmatpush3.bf16.msra.mxu0 %v3588_v18  ;;  %v3611_v63 = vld [vmem:[%s4747_s1 + $0x128] sm:$0xff]   ;;  %v71_v4 = vld [vmem:[%s4748_s0 + $0x1c0] sm:$0xff]  ;;  %v3618_v18 = vld [vmem:[%s4747_s1 + $0x158] sm:$0xff]  }
  0x15   :  { %3131 = vmatpush3.bf16.msra.mxu1 %v3589_v19  ;;  %3068 = vmatprep.subr.bf16.mxu0 %v3590_v20  ;;  %v3612_v0 = vld [vmem:[%s4747_s1 + $0x1e8] sm:$0xff]   ;;  %v2772_v7 = vcombine.high %v63_v3, %v71_v4  ;;  %v3614_v10 = vld [vmem:[%s4747_s1 + $0x160] sm:$0xff]   ;;  %v2771_v19 = vcombine.low %v63_v3, %v71_v4  ;;  %v3619_v20 = vld [vmem:[%s4747_s1 + $0x118] sm:$0xff]  }
  0x16   :  { %3132 = vmatprep.subr.bf16.mxu1 %v3591_v21  ;;  %v3613_v1 = vld [vmem:[%s4747_s1 + $0x1a8] sm:$0xff]   ;;  %v3615_v11 = vld [vmem:[%s4747_s1 + $0x120] sm:$0xff]   ;;  %v3636_v58 = vld [vmem:[%s4747_s1 + $0x2f8] sm:$0xff]  }
  0x17   :  { %v64_v5 = vld [vmem:[%s4748_s0 + $0x188] sm:$0xff]  ;;  %v3616_v12 = vld [vmem:[%s4747_s1 + $0x1e0] sm:$0xff]   ;;  %v26_v3 = vld [vmem:[%s4748_s0 + $0x58] sm:$0xff] }
  0x18   :  { %3069 = vmatpush3.bf16.msra.mxu0 %v3592_v22  ;;  %v72_v8 = vld [vmem:[%s4748_s0 + $0x1c8] sm:$0xff]  ;;  %v3617_v13 = vld [vmem:[%s4747_s1 + $0x1a0] sm:$0xff]  }
  0x19   :  { %3133 = vmatpush3.bf16.msra.mxu1 %v3593_v23  ;;  %3070 = vmatprep.subr.bf16.mxu0 %v3594_v24  ;;  %v2774_v9 = vcombine.high %v64_v5, %v72_v8  ;;  %v79_v14 = vld [vmem:[%s4748_s0 + $0x200] sm:$0xff]  ;;  %v80_v16 = vld [vmem:[%s4748_s0 + $0x208] sm:$0xff]  ;;  %v2773_v21 = vcombine.low %v64_v5, %v72_v8  ;;  %v3620_v23 = vld [vmem:[%s4747_s1 + $0x1d8] sm:$0xff]  }
  0x1a   :  { %3134 = vmatprep.subr.bf16.mxu1 %v3595_v25  ;;  %v87_v15 = vld [vmem:[%s4748_s0 + $0x240] sm:$0xff]  ;;  %v88_v17 = vld [vmem:[%s4748_s0 + $0x248] sm:$0xff]  ;;  %v3621_v25 = vld [vmem:[%s4747_s1 + $0x198] sm:$0xff]  }
  0x1b   :  { %v2788_v22 = vcombine.high %v79_v14, %v87_v15  ;;  %v2790_v24 = vcombine.high %v80_v16, %v88_v17  ;;  %v2787_v34 = vcombine.low %v79_v14, %v87_v15  ;;  %v3627_v39 = vld [vmem:[%s4747_s1 + $0x108] sm:$0xff]   ;;  %v3631_v48 = vld [vmem:[%s4747_s1 + $0x100] sm:$0xff]   ;;  %v33_v8 = vld [vmem:[%s4748_s0 + $0x90] sm:$0xff] }
  0x1c   :  { %3071 = vmatpush3.bf16.msra.mxu0 %v3596_v26  ;;  %v95_v26 = vld [vmem:[%s4748_s0 + $0x280] sm:$0xff]  ;;  %v112_v44 = vld [vmem:[%s4748_s0 + $0x308] sm:$0xff]  ;;  %v3637_v15 = vld [vmem:[%s4747_s1 + $0x2b8] sm:$0xff]  }
  0x1d   :  { %3135 = vmatpush3.bf16.msra.mxu1 %v3597_v27  ;;  %3072 = vmatprep.subr.bf16.mxu0 %v3598_v28  ;;  %v103_v27 = vld [vmem:[%s4748_s0 + $0x2c0] sm:$0xff]  ;;  %v3622_v28 = vld [vmem:[%s4747_s1 + $0x150] sm:$0xff]   ;;  %v120_v45 = vld [vmem:[%s4748_s0 + $0x348] sm:$0xff] }
  0x1e   :  { %3136 = vmatprep.subr.bf16.mxu1 %v3599_v29  ;;  %v96_v29 = vld [vmem:[%s4748_s0 + $0x288] sm:$0xff]  ;;  %v2804_v36 = vcombine.high %v95_v26, %v103_v27  ;;  %v2803_v47 = vcombine.low %v95_v26, %v103_v27 }
  0x1f   :  { %v128_v57 = vld [vmem:[%s4748_s0 + $0x388] sm:$0xff] }
  0x20   :  { %3073 = vmatpush3.bf16.msra.mxu0 %v3600_v30  ;;  %v104_v30 = vld [vmem:[%s4748_s0 + $0x2c8] sm:$0xff] }
  0x21   :  { %3137 = vmatpush3.bf16.msra.mxu1 %v3601_v31  ;;  %3186 = vmatprep.subr.bf16.mxu0 %v3602_v40  ;;  %v3623_v31 = vld [vmem:[%s4747_s1 + $0x110] sm:$0xff]   ;;  %v2806_v37 = vcombine.high %v96_v29, %v104_v30  ;;  %v3628_v40 = vld [vmem:[%s4747_s1 + $0x1c8] sm:$0xff]  }
  0x22   :  { %3250 = vmatprep.subr.bf16.mxu1 %v3604_v42  ;;  %v119_v42 = vld [vmem:[%s4748_s0 + $0x340] sm:$0xff]  ;;  %v136_v59 = vld [vmem:[%s4748_s0 + $0x3c8] sm:$0xff] }
  0x23   :  { %1847 = vmatmul.mubr.bf16.vlgmr.msra.gmra.mxu0 %v2723_v35  ;;  %v2789_v35 = vcombine.low %v80_v16, %v88_v17  ;;  %v2837_v5 = vcombine.low %v128_v57, %v136_v59  ;;  %v3638_v17 = vld [vmem:[%s4747_s1 + $0x270] sm:$0xff]   ;;  %v3642_v26 = vld [vmem:[%s4747_s1 + $0x268] sm:$0xff]  }
  0x24   :  { %1944 = vmatmul.mubr.bf16.vlgmr.msra.gmra.mxu1 %v2725_v38  ;;  %3187 = vmatpush3.bf16.msra.mxu0 %v3603_v41  ;;  %v3626_v38 = vld [vmem:[%s4747_s1 + $0x148] sm:$0xff]   ;;  %v111_v41 = vld [vmem:[%s4748_s0 + $0x300] sm:$0xff] }
  0x25   :  { %3251 = vmatpush3.bf16.msra.mxu1 %v3605_v43  ;;  %1854 = vmatprep.mubr.bf16.mxu0 %v2740_v46  ;;  %v3629_v43 = vld [vmem:[%s4747_s1 + $0x188] sm:$0xff]   ;;  %v3630_v46 = vld [vmem:[%s4747_s1 + $0x140] sm:$0xff]  }
  0x26   :  { %1951 = vmatprep.mubr.bf16.mxu1 %v2742_v49  ;;  %3188 = vmatprep.subr.bf16.mxu0 %v3606_v50  ;;  %v2805_v49 = vcombine.low %v96_v29, %v104_v30  ;;  %v2820_v50 = vcombine.high %v111_v41, %v119_v42  ;;  %v3644_v27 = vld [vmem:[%s4747_s1 + $0x2e8] sm:$0xff]  }
  0x27   :  { %3252 = vmatprep.subr.bf16.mxu1 %v3608_v54  ;;  %v127_v54 = vld [vmem:[%s4748_s0 + $0x380] sm:$0xff] }
  0x28   :  { %3189 = vmatpush3.bf16.msra.mxu0 %v3607_v52  ;;  %v2822_v52 = vcombine.high %v112_v44, %v120_v45 }
  0x29   :  { %3253 = vmatpush3.bf16.msra.mxu1 %v3609_v55  ;;  %3190 = vmatprep.subr.bf16.mxu0 %v3610_v62  ;;  %v135_v55 = vld [vmem:[%s4748_s0 + $0x3c0] sm:$0xff] }
  0x2a   :  { %3254 = vmatprep.subr.bf16.mxu1 %v3612_v0  ;;  %v2836_v62 = vcombine.high %v127_v54, %v135_v55  ;;  %v17_v0 = vld [vmem:[%s4748_s0 + $0x10] sm:$0xff]  ;;  %v2835_v4 = vcombine.low %v127_v54, %v135_v55  ;;  %v82_v54 = vld [vmem:[%s4748_s0 + $0x218] sm:$0xff] }
  0x2b   :  { %1855 = vmatmul.mubr.bf16.gmra.mxu0 %v2739_v51  ;;  %v3632_v51 = vld [vmem:[%s4747_s1 + $0x1c0] sm:$0xff]   ;;  %v90_v55 = vld [vmem:[%s4748_s0 + $0x258] sm:$0xff] }
  0x2c   :  { %1952 = vmatmul.mubr.bf16.gmra.mxu1 %v2741_v53  ;;  %1862 = vmatprep.mubr.bf16.mxu0 %v2756_v60  ;;  %v3633_v53 = vld [vmem:[%s4747_s1 + $0x180] sm:$0xff]   ;;  %v2819_v60 = vcombine.low %v111_v41, %v119_v42  ;;  %v3650_v42 = vld [vmem:[%s4747_s1 + $0x258] sm:$0xff]  }
  0x2d   :  { %1959 = vmatprep.mubr.bf16.mxu1 %v2758_v61  ;;  %3191 = vmatpush3.bf16.msra.mxu0 %v3611_v63  ;;  %v2821_v61 = vcombine.low %v112_v44, %v120_v45  ;;  %v2838_v63 = vcombine.high %v128_v57, %v136_v59  ;;  %v3649_v41 = vld [vmem:[%s4747_s1 + $0x2a0] sm:$0xff]   ;;  %v3652_v44 = vld [vmem:[%s4747_s1 + $0x2d8] sm:$0xff]   ;;  %v3657_v57 = vld [vmem:[%s4747_s1 + $0x290] sm:$0xff]  }
  0x2e   :  { %3255 = vmatpush3.bf16.msra.mxu1 %v3613_v1  ;;  %3192 = vmatprep.subr.bf16.mxu0 %v3614_v10  ;;  %v25_v1 = vld [vmem:[%s4748_s0 + $0x50] sm:$0xff] }
  0x2f   :  { %3256 = vmatprep.subr.bf16.mxu1 %v3616_v12  ;;  %v2727_v10 = vcombine.low %v17_v0, %v25_v1  ;;  %v34_v12 = vld [vmem:[%s4748_s0 + $0x98] sm:$0xff] }
  0x31   :  { %3193 = vmatpush3.bf16.msra.mxu0 %v3615_v11  ;;  %v3635_v11 = vld [vmem:[%s4747_s1 + $0x238] sm:$0xff]  }
  0x32   :  { %3257 = vmatpush3.bf16.msra.mxu1 %v3617_v13  ;;  %3194 = vmatprep.subr.bf16.mxu0 %v3618_v18  ;;  %v42_v13 = vld [vmem:[%s4748_s0 + $0xd8] sm:$0xff] }
  0x33   :  { %1863 = vmatmul.mubr.bf16.gmra.mxu0 %v2755_v2  ;;  %3258 = vmatprep.subr.bf16.mxu1 %v3620_v23  ;;  %v18_v2 = vld [vmem:[%s4748_s0 + $0x18] sm:$0xff]  ;;  %v2746_v18 = vcombine.high %v34_v12, %v42_v13  ;;  %v57_v23 = vld [vmem:[%s4748_s0 + $0x150] sm:$0xff]  ;;  %v2745_v29 = vcombine.low %v34_v12, %v42_v13  ;;  %v2793_v13 = vcombine.low %v82_v54, %v90_v55 }
  0x34   :  { %1960 = vmatmul.mubr.bf16.gmra.mxu1 %v2757_v6  ;;  %1870 = vmatprep.mubr.bf16.mxu0 %v2772_v7  ;;  %v2728_v6 = vcombine.high %v17_v0, %v25_v1  ;;  %v2730_v7 = vcombine.high %v18_v2, %v26_v3  ;;  %v2729_v14 = vcombine.low %v18_v2, %v26_v3  ;;  %v3659_v0 = vld [vmem:[%s4747_s1 + $0x208] sm:$0xff]   ;;  %v3662_v2 = vld [vmem:[%s4747_s1 + $0x240] sm:$0xff]   ;;  %v97_v3 = vld [vmem:[%s4748_s0 + $0x290] sm:$0xff] }
  0x35   :  { %1967 = vmatprep.mubr.bf16.mxu1 %v2774_v9  ;;  %3195 = vmatpush3.bf16.msra.mxu0 %v3619_v20  ;;  %v41_v9 = vld [vmem:[%s4748_s0 + $0xd0] sm:$0xff]  ;;  %v3661_v1 = vld [vmem:[%s4747_s1 + $0x288] sm:$0xff]   ;;  %v3668_v12 = vld [vmem:[%s4747_s1 + $0x3f8] sm:$0xff]  }
  0x36   :  { %3259 = vmatpush3.bf16.msra.mxu1 %v3621_v25  ;;  %3196 = vmatprep.subr.bf16.mxu0 %v3622_v28  ;;  %v2744_v16 = vcombine.high %v33_v8, %v41_v9  ;;  %v3640_v20 = vld [vmem:[%s4747_s1 + $0x2f0] sm:$0xff]   ;;  %v58_v25 = vld [vmem:[%s4748_s0 + $0x158] sm:$0xff]  ;;  %v2743_v28 = vcombine.low %v33_v8, %v41_v9  ;;  %v3663_v8 = vld [vmem:[%s4747_s1 + $0x200] sm:$0xff]  }
  0x37   :  { %3260 = vmatprep.subr.bf16.mxu1 %v3624_v32  ;;  %v3643_v32 = vld [vmem:[%s4747_s1 + $0x228] sm:$0xff]   ;;  %v3665_v9 = vld [vmem:[%s4747_s1 + $0x280] sm:$0xff]  }
  0x39   :  { %3197 = vmatpush3.bf16.msra.mxu0 %v3623_v31 }
  0x3a   :  { %3261 = vmatpush3.bf16.msra.mxu1 %v3625_v33  ;;  %3198 = vmatprep.subr.bf16.mxu0 %v3626_v38  ;;  %v3645_v33 = vld [vmem:[%s4747_s1 + $0x2a8] sm:$0xff]   ;;  %v66_v38 = vld [vmem:[%s4748_s0 + $0x198] sm:$0xff] }
  0x3b   :  { %1871 = vmatmul.mubr.bf16.gmra.mxu0 %v2771_v19  ;;  %3262 = vmatprep.subr.bf16.mxu1 %v3628_v40  ;;  %v3639_v19 = vld [vmem:[%s4747_s1 + $0x230] sm:$0xff]   ;;  %v3647_v40 = vld [vmem:[%s4747_s1 + $0x220] sm:$0xff]  }
  0x3c   :  { %1968 = vmatmul.mubr.bf16.gmra.mxu1 %v2773_v21  ;;  %1878 = vmatprep.mubr.bf16.mxu0 %v2788_v22  ;;  %v3641_v21 = vld [vmem:[%s4747_s1 + $0x2b0] sm:$0xff]  }
  0x3d   :  { %1975 = vmatprep.mubr.bf16.mxu1 %v2790_v24  ;;  %3199 = vmatpush3.bf16.msra.mxu0 %v3627_v39  ;;  %v49_v22 = vld [vmem:[%s4748_s0 + $0x110] sm:$0xff]  ;;  %v50_v24 = vld [vmem:[%s4748_s0 + $0x118] sm:$0xff] }
  0x3e   :  { %3263 = vmatpush3.bf16.msra.mxu1 %v3629_v43  ;;  %3200 = vmatprep.subr.bf16.mxu0 %v3630_v46  ;;  %v2760_v30 = vcombine.high %v49_v22, %v57_v23  ;;  %v2762_v31 = vcombine.high %v50_v24, %v58_v25  ;;  %v74_v39 = vld [vmem:[%s4748_s0 + $0x1d8] sm:$0xff]  ;;  %v2759_v43 = vcombine.low %v49_v22, %v57_v23 }
  0x3f   :  { %3264 = vmatprep.subr.bf16.mxu1 %v3632_v51  ;;  %v2761_v45 = vcombine.low %v50_v24, %v58_v25  ;;  %v81_v51 = vld [vmem:[%s4748_s0 + $0x210] sm:$0xff] }
  0x40   :  { %v129_v24 = vld [vmem:[%s4748_s0 + $0x390] sm:$0xff] }
  0x41   :  { %3201 = vmatpush3.bf16.msra.mxu0 %v3631_v48  ;;  %v2778_v48 = vcombine.high %v66_v38, %v74_v39  ;;  %v137_v25 = vld [vmem:[%s4748_s0 + $0x3d0] sm:$0xff] }
  0x42   :  { %3265 = vmatpush3.bf16.msra.mxu1 %v3633_v53  ;;  %3314 = vmatprep.subr.bf16.mxu0 %v3634_v56  ;;  %v89_v53 = vld [vmem:[%s4748_s0 + $0x250] sm:$0xff] }
  0x43   :  { %1879 = vmatmul.mubr.bf16.gmra.mxu0 %v2787_v34  ;;  %3378 = vmatprep.subr.bf16.mxu1 %v3636_v58  ;;  %v3646_v34 = vld [vmem:[%s4747_s1 + $0x260] sm:$0xff]   ;;  %v3655_v56 = vld [vmem:[%s4747_s1 + $0x210] sm:$0xff]   ;;  %v3658_v58 = vld [vmem:[%s4747_s1 + $0x248] sm:$0xff]  }
  0x44   :  { %1976 = vmatmul.mubr.bf16.gmra.mxu1 %v2789_v35  ;;  %1886 = vmatprep.mubr.bf16.mxu0 %v2804_v36  ;;  %v65_v35 = vld [vmem:[%s4748_s0 + $0x190] sm:$0xff] }
  0x45   :  { %1983 = vmatprep.mubr.bf16.mxu1 %v2806_v37  ;;  %v73_v36 = vld [vmem:[%s4748_s0 + $0x1d0] sm:$0xff]  ;;  %v3648_v37 = vld [vmem:[%s4747_s1 + $0x2e0] sm:$0xff]  }
  0x46   :  { %v2776_v46 = vcombine.high %v65_v35, %v73_v36  ;;  %v2775_v59 = vcombine.low %v65_v35, %v73_v36  ;;  %v28_v35 = vld [vmem:[%s4748_s0 + $0x68] sm:$0xff]  ;;  %v2839_v36 = vcombine.low %v129_v24, %v137_v25 }
  0x4b   :  { %1887 = vmatmul.mubr.bf16.gmra.mxu0 %v2803_v47  ;;  %v3651_v47 = vld [vmem:[%s4747_s1 + $0x218] sm:$0xff]  }
  0x4c   :  { %1984 = vmatmul.mubr.bf16.gmra.mxu1 %v2805_v49  ;;  %1894 = vmatprep.mubr.bf16.mxu0 %v2820_v50  ;;  %v3653_v49 = vld [vmem:[%s4747_s1 + $0x298] sm:$0xff]   ;;  %v3654_v50 = vld [vmem:[%s4747_s1 + $0x250] sm:$0xff]  }
  0x4d   :  { %1991 = vmatprep.mubr.bf16.mxu1 %v2822_v52  ;;  %v3656_v52 = vld [vmem:[%s4747_s1 + $0x2d0] sm:$0xff]  }
  0x53   :  { %1895 = vmatmul.mubr.bf16.gmra.mxu0 %v2819_v60  ;;  %v3660_v60 = vld [vmem:[%s4747_s1 + $0x2c8] sm:$0xff]  }
  0x54   :  { %1992 = vmatmul.mubr.bf16.gmra.mxu1 %v2821_v61  ;;  %1902 = vmatprep.mubr.bf16.mxu0 %v2836_v62  ;;  %v2777_v61 = vcombine.low %v66_v38, %v74_v39  ;;  %v2792_v62 = vcombine.high %v81_v51, %v89_v53 }
  0x55   :  { %1999 = vmatprep.mubr.bf16.mxu1 %v2838_v63  ;;  %v2794_v63 = vcombine.high %v82_v54, %v90_v55  ;;  %v51_v54 = vld [vmem:[%s4748_s0 + $0x120] sm:$0xff] }
  0x56   :  { %v59_v55 = vld [vmem:[%s4748_s0 + $0x160] sm:$0xff] }
  0x5b   :  { %1903 = vmatmul.mubr.bf16.gmra.mxu0 %v2835_v4  ;;  %v105_v4 = vld [vmem:[%s4748_s0 + $0x2d0] sm:$0xff] }
  0x5c   :  { %2000 = vmatmul.mubr.bf16.gmra.mxu1 %v2837_v5  ;;  %2040 = vmatprep.mubr.bf16.mxu0 %v2728_v6  ;;  %v3664_v5 = vld [vmem:[%s4747_s1 + $0x2c0] sm:$0xff]   ;;  %v98_v6 = vld [vmem:[%s4748_s0 + $0x298] sm:$0xff] }
  0x5d   :  { %2137 = vmatprep.mubr.bf16.mxu1 %v2730_v7  ;;  %v106_v7 = vld [vmem:[%s4748_s0 + $0x2d8] sm:$0xff] }
  0x63   :  { %2041 = vmatmul.mubr.bf16.vlgmr.msra.gmra.mxu0 %v2727_v10  ;;  %v3666_v10 = vld [vmem:[%s4747_s1 + $0x378] sm:$0xff]  }
  0x64   :  { %2138 = vmatmul.mubr.bf16.vlgmr.msra.gmra.mxu1 %v2729_v14  ;;  %3315 = vmatpush3.bf16.msra.mxu0 %v3635_v11  ;;  %v2791_v11 = vcombine.low %v81_v51, %v89_v53  ;;  %v2808_v14 = vcombine.high %v97_v3, %v105_v4  ;;  %v3672_v51 = vld [vmem:[%s4747_s1 + $0x3f0] sm:$0xff]  }
  0x65   :  { %3379 = vmatpush3.bf16.msra.mxu1 %v3637_v15  ;;  %2048 = vmatprep.mubr.bf16.mxu0 %v2744_v16  ;;  %v2810_v15 = vcombine.high %v98_v6, %v106_v7  ;;  %v113_v16 = vld [vmem:[%s4748_s0 + $0x310] sm:$0xff] }
  0x66   :  { %2145 = vmatprep.mubr.bf16.mxu1 %v2746_v18  ;;  %3316 = vmatprep.subr.bf16.mxu0 %v3638_v17  ;;  %v121_v17 = vld [vmem:[%s4748_s0 + $0x350] sm:$0xff]  ;;  %v114_v18 = vld [vmem:[%s4748_s0 + $0x318] sm:$0xff] }
  0x67   :  { %3380 = vmatprep.subr.bf16.mxu1 %v3640_v20  ;;  %v2807_v20 = vcombine.low %v97_v3, %v105_v4  ;;  %v2824_v22 = vcombine.high %v113_v16, %v121_v17  ;;  %v3673_v53 = vld [vmem:[%s4747_s1 + $0x3b0] sm:$0xff]   ;;  %v3680_v3 = vld [vmem:[%s4747_s1 + $0x3e0] sm:$0xff]  }
  0x68   :  { %3317 = vmatpush3.bf16.msra.mxu0 %v3639_v19  ;;  %v122_v19 = vld [vmem:[%s4748_s0 + $0x358] sm:$0xff]  ;;  %v67_v4 = vld [vmem:[%s4748_s0 + $0x1a0] sm:$0xff] }
  0x69   :  { %3381 = vmatpush3.bf16.msra.mxu1 %v3641_v21  ;;  %3318 = vmatprep.subr.bf16.mxu0 %v3642_v26  ;;  %v2809_v21 = vcombine.low %v98_v6, %v106_v7  ;;  %v2826_v23 = vcombine.high %v114_v18, %v122_v19  ;;  %v130_v26 = vld [vmem:[%s4748_s0 + $0x398] sm:$0xff]  ;;  %v68_v6 = vld [vmem:[%s4748_s0 + $0x1a8] sm:$0xff]  ;;  %v3679_v7 = vld [vmem:[%s4747_s1 + $0x320] sm:$0xff]  }
  0x6a   :  { %3382 = vmatprep.subr.bf16.mxu1 %v3644_v27  ;;  %v138_v27 = vld [vmem:[%s4748_s0 + $0x3d8] sm:$0xff] }
  0x6b   :  { %2049 = vmatmul.mubr.bf16.gmra.mxu0 %v2743_v28  ;;  %v2823_v28 = vcombine.low %v113_v16, %v121_v17  ;;  %v3683_v16 = vld [vmem:[%s4747_s1 + $0x318] sm:$0xff]  }
  0x6c   :  { %2146 = vmatmul.mubr.bf16.gmra.mxu1 %v2745_v29  ;;  %2056 = vmatprep.mubr.bf16.mxu0 %v2760_v30  ;;  %v2825_v29 = vcombine.low %v114_v18, %v122_v19  ;;  %v2840_v30 = vcombine.high %v129_v24, %v137_v25  ;;  %v3685_v17 = vld [vmem:[%s4747_s1 + $0x398] sm:$0xff]   ;;  %v3686_v18 = vld [vmem:[%s4747_s1 + $0x350] sm:$0xff]   ;;  %v92_v24 = vld [vmem:[%s4748_s0 + $0x268] sm:$0xff] }
  0x6d   :  { %2153 = vmatprep.mubr.bf16.mxu1 %v2762_v31  ;;  %3319 = vmatpush3.bf16.msra.mxu0 %v3643_v32  ;;  %v2842_v31 = vcombine.high %v130_v26, %v138_v27  ;;  %v19_v32 = vld [vmem:[%s4748_s0 + $0x20] sm:$0xff]  ;;  %v3688_v19 = vld [vmem:[%s4747_s1 + $0x3d0] sm:$0xff]  }
  0x6e   :  { %3383 = vmatpush3.bf16.msra.mxu1 %v3645_v33  ;;  %3320 = vmatprep.subr.bf16.mxu0 %v3646_v34  ;;  %v27_v33 = vld [vmem:[%s4748_s0 + $0x60] sm:$0xff]  ;;  %v20_v34 = vld [vmem:[%s4748_s0 + $0x28] sm:$0xff]  ;;  %v3689_v25 = vld [vmem:[%s4747_s1 + $0x390] sm:$0xff]  }
  0x6f   :  { %3384 = vmatprep.subr.bf16.mxu1 %v3648_v37  ;;  %v2841_v37 = vcombine.low %v130_v26, %v138_v27  ;;  %v2732_v38 = vcombine.high %v19_v32, %v27_v33  ;;  %v2734_v39 = vcombine.high %v20_v34, %v28_v35  ;;  %v3690_v26 = vld [vmem:[%s4747_s1 + $0x348] sm:$0xff]  }
  0x71   :  { %3321 = vmatpush3.bf16.msra.mxu0 %v3647_v40  ;;  %v35_v40 = vld [vmem:[%s4748_s0 + $0xa0] sm:$0xff] }
  0x72   :  { %3385 = vmatpush3.bf16.msra.mxu1 %v3649_v41  ;;  %3322 = vmatprep.subr.bf16.mxu0 %v3650_v42  ;;  %v43_v41 = vld [vmem:[%s4748_s0 + $0xe0] sm:$0xff]  ;;  %v2731_v42 = vcombine.low %v19_v32, %v27_v33  ;;  %v3691_v32 = vld [vmem:[%s4747_s1 + $0x308] sm:$0xff]  }
  0x73   :  { %2057 = vmatmul.mubr.bf16.gmra.mxu0 %v2759_v43  ;;  %3386 = vmatprep.subr.bf16.mxu1 %v3652_v44  ;;  %v36_v43 = vld [vmem:[%s4748_s0 + $0xa8] sm:$0xff] }
  0x74   :  { %2154 = vmatmul.mubr.bf16.gmra.mxu1 %v2761_v45  ;;  %2064 = vmatprep.mubr.bf16.mxu0 %v2776_v46  ;;  %v44_v44 = vld [vmem:[%s4748_s0 + $0xe8] sm:$0xff]  ;;  %v2733_v45 = vcombine.low %v20_v34, %v28_v35  ;;  %v3667_v46 = vld [vmem:[%s4747_s1 + $0x338] sm:$0xff]   ;;  %v3694_v34 = vld [vmem:[%s4747_s1 + $0x340] sm:$0xff]  }
  0x75   :  { %2161 = vmatprep.mubr.bf16.mxu1 %v2778_v48  ;;  %3323 = vmatpush3.bf16.msra.mxu0 %v3651_v47  ;;  %v3669_v47 = vld [vmem:[%s4747_s1 + $0x3b8] sm:$0xff]   ;;  %v2748_v48 = vcombine.high %v35_v40, %v43_v41  ;;  %v3693_v33 = vld [vmem:[%s4747_s1 + $0x388] sm:$0xff]   ;;  %v3696_v35 = vld [vmem:[%s4747_s1 + $0x3c0] sm:$0xff]  }
  0x76   :  { %3387 = vmatpush3.bf16.msra.mxu1 %v3653_v49  ;;  %3324 = vmatprep.subr.bf16.mxu0 %v3654_v50  ;;  %v2750_v49 = vcombine.high %v36_v43, %v44_v44  ;;  %v3670_v50 = vld [vmem:[%s4747_s1 + $0x370] sm:$0xff]  }
  0x77   :  { %3388 = vmatprep.subr.bf16.mxu1 %v3656_v52  ;;  %v3671_v52 = vld [vmem:[%s4747_s1 + $0x330] sm:$0xff]  }
  0x79   :  { %3325 = vmatpush3.bf16.msra.mxu0 %v3655_v56  ;;  %v3674_v56 = vld [vmem:[%s4747_s1 + $0x368] sm:$0xff]  }
  0x7a   :  { %3389 = vmatpush3.bf16.msra.mxu1 %v3657_v57  ;;  %3326 = vmatprep.subr.bf16.mxu0 %v3658_v58  ;;  %v52_v57 = vld [vmem:[%s4748_s0 + $0x128] sm:$0xff] }
  0x7b   :  { %2065 = vmatmul.mubr.bf16.gmra.mxu0 %v2775_v59  ;;  %3390 = vmatprep.subr.bf16.mxu1 %v3660_v60  ;;  %v60_v58 = vld [vmem:[%s4748_s0 + $0x168] sm:$0xff]  ;;  %v2747_v60 = vcombine.low %v35_v40, %v43_v41  ;;  %v3697_v41 = vld [vmem:[%s4747_s1 + $0x380] sm:$0xff]  }
  0x7c   :  { %2162 = vmatmul.mubr.bf16.gmra.mxu1 %v2777_v61  ;;  %2072 = vmatprep.mubr.bf16.mxu0 %v2792_v62  ;;  %v3676_v59 = vld [vmem:[%s4747_s1 + $0x3e8] sm:$0xff]   ;;  %v2749_v61 = vcombine.low %v36_v43, %v44_v44  ;;  %v2764_v62 = vcombine.high %v51_v54, %v59_v55 }
  0x7d   :  { %2169 = vmatprep.mubr.bf16.mxu1 %v2794_v63  ;;  %3327 = vmatpush3.bf16.msra.mxu0 %v3659_v0  ;;  %v2766_v63 = vcombine.high %v52_v57, %v60_v58  ;;  %v3675_v0 = vld [vmem:[%s4747_s1 + $0x328] sm:$0xff]  }
  0x7e   :  { %3391 = vmatpush3.bf16.msra.mxu1 %v3661_v1  ;;  %3328 = vmatprep.subr.bf16.mxu0 %v3662_v2  ;;  %v3677_v1 = vld [vmem:[%s4747_s1 + $0x3a8] sm:$0xff]   ;;  %v3678_v2 = vld [vmem:[%s4747_s1 + $0x360] sm:$0xff]  }
  0x7f   :  { %3392 = vmatprep.subr.bf16.mxu1 %v3664_v5  ;;  %v75_v5 = vld [vmem:[%s4748_s0 + $0x1e0] sm:$0xff]  ;;  %v108_v40 = vld [vmem:[%s4748_s0 + $0x2e8] sm:$0xff] }
  0x80   :  { %v2779_v27 = vcombine.low %v67_v4, %v75_v5 }
  0x81   :  { %3329 = vmatpush3.bf16.msra.mxu0 %v3663_v8  ;;  %v76_v8 = vld [vmem:[%s4748_s0 + $0x1e8] sm:$0xff] }
  0x82   :  { %3393 = vmatpush3.bf16.msra.mxu1 %v3665_v9  ;;  %3442 = vmatprep.subr.bf16.mxu0 %v3666_v10  ;;  %v3681_v9 = vld [vmem:[%s4747_s1 + $0x3a0] sm:$0xff]   ;;  %v3682_v10 = vld [vmem:[%s4747_s1 + $0x358] sm:$0xff]  }
  0x83   :  { %2073 = vmatmul.mubr.bf16.gmra.mxu0 %v2791_v11  ;;  %3506 = vmatprep.subr.bf16.mxu1 %v3668_v12  ;;  %v2763_v11 = vcombine.low %v51_v54, %v59_v55  ;;  %v3684_v12 = vld [vmem:[%s4747_s1 + $0x3d8] sm:$0xff]   ;;  %v131_v54 = vld [vmem:[%s4748_s0 + $0x3a0] sm:$0xff] }
  0x84   :  { %2170 = vmatmul.mubr.bf16.gmra.mxu1 %v2793_v13  ;;  %2080 = vmatprep.mubr.bf16.mxu0 %v2808_v14  ;;  %v2765_v13 = vcombine.low %v52_v57, %v60_v58  ;;  %v2780_v14 = vcombine.high %v67_v4, %v75_v5  ;;  %v139_v55 = vld [vmem:[%s4748_s0 + $0x3e0] sm:$0xff]  ;;  %v140_v57 = vld [vmem:[%s4748_s0 + $0x3e8] sm:$0xff] }
  0x85   :  { %2177 = vmatprep.mubr.bf16.mxu1 %v2810_v15  ;;  %v2782_v15 = vcombine.high %v68_v6, %v76_v8 }
  0x8b   :  { %2081 = vmatmul.mubr.bf16.gmra.mxu0 %v2807_v20  ;;  %v83_v20 = vld [vmem:[%s4748_s0 + $0x220] sm:$0xff] }
  0x8c   :  { %2178 = vmatmul.mubr.bf16.gmra.mxu1 %v2809_v21  ;;  %2088 = vmatprep.mubr.bf16.mxu0 %v2824_v22  ;;  %v91_v21 = vld [vmem:[%s4748_s0 + $0x260] sm:$0xff]  ;;  %v84_v22 = vld [vmem:[%s4748_s0 + $0x228] sm:$0xff] }
  0x8d   :  { %2185 = vmatprep.mubr.bf16.mxu1 %v2826_v23  ;;  %v3687_v23 = vld [vmem:[%s4747_s1 + $0x310] sm:$0xff]   ;;  %v2797_v43 = vcombine.low %v84_v22, %v92_v24 }
  0x93   :  { %2089 = vmatmul.mubr.bf16.gmra.mxu0 %v2823_v28  ;;  %v3692_v28 = vld [vmem:[%s4747_s1 + $0x3c8] sm:$0xff]  }
  0x94   :  { %2186 = vmatmul.mubr.bf16.gmra.mxu1 %v2825_v29  ;;  %2096 = vmatprep.mubr.bf16.mxu0 %v2840_v30  ;;  %v2781_v29 = vcombine.low %v68_v6, %v76_v8  ;;  %v2796_v30 = vcombine.high %v83_v20, %v91_v21  ;;  %v37_v6 = vld [vmem:[%s4748_s0 + $0xb0] sm:$0xff]  ;;  %v38_v8 = vld [vmem:[%s4748_s0 + $0xb8] sm:$0xff] }
  0x95   :  { %2193 = vmatprep.mubr.bf16.mxu1 %v2842_v31  ;;  %v2798_v31 = vcombine.high %v84_v22, %v92_v24  ;;  %v54_v22 = vld [vmem:[%s4748_s0 + $0x138] sm:$0xff] }
  0x9b   :  { %2097 = vmatmul.mubr.bf16.gmra.mxu0 %v2839_v36  ;;  %v99_v36 = vld [vmem:[%s4748_s0 + $0x2a0] sm:$0xff] }
  0x9c   :  { %2194 = vmatmul.mubr.bf16.gmra.mxu1 %v2841_v37  ;;  %2234 = vmatprep.mubr.bf16.mxu0 %v2732_v38  ;;  %v107_v37 = vld [vmem:[%s4748_s0 + $0x2e0] sm:$0xff] }
  0x9d   :  { %2331 = vmatprep.mubr.bf16.mxu1 %v2734_v39  ;;  %v3695_v38 = vld [vmem:[%s4747_s1 + $0x300] sm:$0xff]   ;;  %v100_v39 = vld [vmem:[%s4748_s0 + $0x2a8] sm:$0xff]  ;;  %v2812_v44 = vcombine.high %v99_v36, %v107_v37 }
  0xa3   :  { %2235 = vmatmul.mubr.bf16.vlgmr.msra.gmra.mxu0 %v2731_v42  ;;  %v2795_v42 = vcombine.low %v83_v20, %v91_v21 }
  0xa4   :  { %2332 = vmatmul.mubr.bf16.vlgmr.msra.gmra.mxu1 %v2733_v45  ;;  %3443 = vmatpush3.bf16.msra.mxu0 %v3667_v46  ;;  %v2814_v45 = vcombine.high %v100_v39, %v108_v40  ;;  %v115_v46 = vld [vmem:[%s4748_s0 + $0x320] sm:$0xff] }
  0xa5   :  { %3507 = vmatpush3.bf16.msra.mxu1 %v3669_v47  ;;  %2242 = vmatprep.mubr.bf16.mxu0 %v2748_v48  ;;  %v123_v47 = vld [vmem:[%s4748_s0 + $0x360] sm:$0xff]  ;;  %v116_v48 = vld [vmem:[%s4748_s0 + $0x328] sm:$0xff] }
  0xa6   :  { %2339 = vmatprep.mubr.bf16.mxu1 %v2750_v49  ;;  %3444 = vmatprep.subr.bf16.mxu0 %v3670_v50  ;;  %v124_v49 = vld [vmem:[%s4748_s0 + $0x368] sm:$0xff]  ;;  %v2811_v50 = vcombine.low %v99_v36, %v107_v37  ;;  %v2827_v58 = vcombine.low %v115_v46, %v123_v47 }
  0xa7   :  { %3508 = vmatprep.subr.bf16.mxu1 %v3672_v51  ;;  %v2813_v51 = vcombine.low %v100_v39, %v108_v40 }
  0xa8   :  { %3445 = vmatpush3.bf16.msra.mxu0 %v3671_v52  ;;  %v2828_v52 = vcombine.high %v115_v46, %v123_v47  ;;  %v70_v46 = vld [vmem:[%s4748_s0 + $0x1b8] sm:$0xff] }
  0xa9   :  { %3509 = vmatpush3.bf16.msra.mxu1 %v3673_v53  ;;  %3446 = vmatprep.subr.bf16.mxu0 %v3674_v56  ;;  %v2830_v53 = vcombine.high %v116_v48, %v124_v49  ;;  %v132_v56 = vld [vmem:[%s4748_s0 + $0x3a8] sm:$0xff]  ;;  %v78_v47 = vld [vmem:[%s4748_s0 + $0x1f8] sm:$0xff] }
  0xaa   :  { %3510 = vmatprep.subr.bf16.mxu1 %v3676_v59  ;;  %v2829_v59 = vcombine.low %v116_v48, %v124_v49 }
  0xab   :  { %2243 = vmatmul.mubr.bf16.gmra.mxu0 %v2747_v60  ;;  %v2844_v60 = vcombine.high %v131_v54, %v139_v55 }
  0xac   :  { %2340 = vmatmul.mubr.bf16.gmra.mxu1 %v2749_v61  ;;  %2250 = vmatprep.mubr.bf16.mxu0 %v2764_v62  ;;  %v2846_v61 = vcombine.high %v132_v56, %v140_v57  ;;  %v21_v62 = vld [vmem:[%s4748_s0 + $0x30] sm:$0xff] }
  0xad   :  { %2347 = vmatprep.mubr.bf16.mxu1 %v2766_v63  ;;  %3447 = vmatpush3.bf16.msra.mxu0 %v3675_v0  ;;  %v29_v63 = vld [vmem:[%s4748_s0 + $0x70] sm:$0xff]  ;;  %v22_v0 = vld [vmem:[%s4748_s0 + $0x38] sm:$0xff] }
  0xae   :  { %3511 = vmatpush3.bf16.msra.mxu1 %v3677_v1  ;;  %3448 = vmatprep.subr.bf16.mxu0 %v3678_v2  ;;  %v30_v1 = vld [vmem:[%s4748_s0 + $0x78] sm:$0xff]  ;;  %v2843_v2 = vcombine.low %v131_v54, %v139_v55  ;;  %v2736_v4 = vcombine.high %v21_v62, %v29_v63 }
  0xaf   :  { %3512 = vmatprep.subr.bf16.mxu1 %v3680_v3  ;;  %v2845_v3 = vcombine.low %v132_v56, %v140_v57  ;;  %v2738_v5 = vcombine.high %v22_v0, %v30_v1  ;;  %v2786_v56 = vcombine.high %v70_v46, %v78_v47 }
  0xb1   :  { %3449 = vmatpush3.bf16.msra.mxu0 %v3679_v7  ;;  %v45_v7 = vld [vmem:[%s4748_s0 + $0xf0] sm:$0xff] }
  0xb2   :  { %3513 = vmatpush3.bf16.msra.mxu1 %v3681_v9  ;;  %3450 = vmatprep.subr.bf16.mxu0 %v3682_v10  ;;  %v46_v9 = vld [vmem:[%s4748_s0 + $0xf8] sm:$0xff]  ;;  %v2735_v10 = vcombine.low %v21_v62, %v29_v63 }
  0xb3   :  { %2251 = vmatmul.mubr.bf16.gmra.mxu0 %v2763_v11  ;;  %3514 = vmatprep.subr.bf16.mxu1 %v3684_v12  ;;  %v2737_v11 = vcombine.low %v22_v0, %v30_v1  ;;  %v2752_v12 = vcombine.high %v37_v6, %v45_v7  ;;  %v85_v1 = vld [vmem:[%s4748_s0 + $0x230] sm:$0xff] }
  0xb4   :  { %2348 = vmatmul.mubr.bf16.gmra.mxu1 %v2765_v13  ;;  %2258 = vmatprep.mubr.bf16.mxu0 %v2780_v14  ;;  %v2754_v13 = vcombine.high %v38_v8, %v46_v9 }
  0xb5   :  { %2355 = vmatprep.mubr.bf16.mxu1 %v2782_v15  ;;  %3451 = vmatpush3.bf16.msra.mxu0 %v3683_v16  ;;  %v4417_v16 = vld [vmem:[%s4749_s2] ss:$0 sm:$0xff] }
  0xb6   :  { %3515 = vmatpush3.bf16.msra.mxu1 %v3685_v17  ;;  %3452 = vmatprep.subr.bf16.mxu0 %v3686_v18  ;;  %v53_v18 = vld [vmem:[%s4748_s0 + $0x130] sm:$0xff] }
  0xb7   :  { %3516 = vmatprep.subr.bf16.mxu1 %v3688_v19  ;;  %v61_v19 = vld [vmem:[%s4748_s0 + $0x170] sm:$0xff] }
  0xb9   :  { %3453 = vmatpush3.bf16.msra.mxu0 %v3687_v23  ;;  %v62_v23 = vld [vmem:[%s4748_s0 + $0x178] sm:$0xff] }
  0xba   :  { %3517 = vmatpush3.bf16.msra.mxu1 %v3689_v25  ;;  %3454 = vmatprep.subr.bf16.mxu0 %v3690_v26  ;;  %v2751_v26 = vcombine.low %v37_v6, %v45_v7  ;;  %v86_v6 = vld [vmem:[%s4748_s0 + $0x238] sm:$0xff] }
  0xbb   :  { %2259 = vmatmul.mubr.bf16.gmra.mxu0 %v2779_v27  ;;  %3518 = vmatprep.subr.bf16.mxu1 %v3692_v28  ;;  %v94_v7 = vld [vmem:[%s4748_s0 + $0x278] sm:$0xff] }
  0xbc   :  { %2356 = vmatmul.mubr.bf16.gmra.mxu1 %v2781_v29  ;;  %2266 = vmatprep.mubr.bf16.mxu0 %v2796_v30  ;;  %v2753_v29 = vcombine.low %v38_v8, %v46_v9  ;;  %v2768_v30 = vcombine.high %v53_v18, %v61_v19 }
  0xbd   :  { %2363 = vmatprep.mubr.bf16.mxu1 %v2798_v31  ;;  %3455 = vmatpush3.bf16.msra.mxu0 %v3691_v32  ;;  %v2770_v32 = vcombine.high %v54_v22, %v62_v23 }
  0xbe   :  { %3519 = vmatpush3.bf16.msra.mxu1 %v3693_v33  ;;  %3456 = vmatprep.subr.bf16.mxu0 %v3694_v34 }
  0xbf   :  { %3520 = vmatprep.subr.bf16.mxu1 %v3696_v35 }
  0xc1   :  { %3457 = vmatpush3.bf16.msra.mxu0 %v3695_v38 }
  0xc2   :  { %3521 = vmatpush3.bf16.msra.mxu1 %v3697_v41  ;;  %v69_v41 = vld [vmem:[%s4748_s0 + $0x1b0] sm:$0xff] }
  0xc3   :  { %2267 = vmatmul.mubr.bf16.gmra.mxu0 %v2795_v42  ;;  %v77_v42 = vld [vmem:[%s4748_s0 + $0x1f0] sm:$0xff] }
  0xc4   :  { %2364 = vmatmul.mubr.bf16.gmra.mxu1 %v2797_v43  ;;  %2274 = vmatprep.mubr.bf16.mxu0 %v2812_v44  ;;  %v2784_v54 = vcombine.high %v69_v41, %v77_v42 }
  0xc5   :  { %2371 = vmatprep.mubr.bf16.mxu1 %v2814_v45 }
  0xcb   :  { %2275 = vmatmul.mubr.bf16.gmra.mxu0 %v2811_v50  ;;  %v2767_v50 = vcombine.low %v53_v18, %v61_v19 }
  0xcc   :  { %2372 = vmatmul.mubr.bf16.gmra.mxu1 %v2813_v51  ;;  %2282 = vmatprep.mubr.bf16.mxu0 %v2828_v52 }
  0xcd   :  { %2379 = vmatprep.mubr.bf16.mxu1 %v2830_v53  ;;  %v2769_v53 = vcombine.low %v54_v22, %v62_v23 }
  0xd3   :  { %2283 = vmatmul.mubr.bf16.gmra.mxu0 %v2827_v58 }
  0xd4   :  { %2380 = vmatmul.mubr.bf16.gmra.mxu1 %v2829_v59  ;;  %2290 = vmatprep.mubr.bf16.mxu0 %v2844_v60 }
  0xd5   :  { %2387 = vmatprep.mubr.bf16.mxu1 %v2846_v61 }
  0xdb   :  { %2291 = vmatmul.mubr.bf16.gmra.mxu0 %v2843_v2  ;;  %v93_v2 = vld [vmem:[%s4748_s0 + $0x270] sm:$0xff] }
  0xdc   :  { %2388 = vmatmul.mubr.bf16.gmra.mxu1 %v2845_v3  ;;  %2428 = vmatprep.mubr.bf16.mxu0 %v2736_v4 }
  0xdd   :  { %2525 = vmatprep.mubr.bf16.mxu1 %v2738_v5 }
  0xe3   :  { %v3074_v14 = vpop.f32.mrf.mxu0  ;;  %2429 = vmatmul.mubr.bf16.vlgmr.msra.gmra.mxu0 %v2735_v10  ;;  %v2783_v10 = vcombine.low %v69_v41, %v77_v42 }
  0xe4   :  { %v3138_v15 = vpop.f32.mrf.mxu1  ;;  %2526 = vmatmul.mubr.bf16.vlgmr.msra.gmra.mxu1 %v2737_v11  ;;  %2436 = vmatprep.mubr.bf16.mxu0 %v2752_v12 }
  0xe5   :  { %v3075_v17 = vpop.f32.mrf.mxu0  ;;  %2533 = vmatprep.mubr.bf16.mxu1 %v2754_v13  ;;  %v2785_v13 = vcombine.low %v70_v46, %v78_v47 }
  0xe6   :  { %v3076_v20 = vadd.f32 %v3075_v17, %v3074_v14  ;;  %v3139_v21 = vpop.f32.mrf.mxu1  ;;  %v2800_v14 = vcombine.high %v85_v1, %v93_v2  ;;  %v2802_v17 = vcombine.high %v86_v6, %v94_v7 }
  0xe7   :  { %v3140_v24 = vadd.f32 %v3139_v21, %v3138_v15  ;;  %v3077_v25 = vpop.f32.mrf.mxu0 }
  0xe8   :  { %v1849_v27 = vadd.f32 %v3076_v20, %v4417_v16  ;;  %v3141_v28 = vpop.f32.mrf.mxu1 }
  0xe9   :  { %v3078_v31 = vpop.f32.mrf.mxu0 }
  0xea   :  { %v4432_v33 = vadd.f32 %v3140_v24, %v1849_v27  ;;  %v3079_v34 = vadd.f32 %v3078_v31, %v3077_v25  ;;  %v3142_v35 = vpop.f32.mrf.mxu1  ;;  %v109_v27 = vld [vmem:[%s4748_s0 + $0x2f0] sm:$0xff]  ;;  %v102_v31 = vld [vmem:[%s4748_s0 + $0x2b8] sm:$0xff] }
  0xeb   :  { %v3143_v36 = vadd.f32 %v3142_v35, %v3141_v28  ;;  %v3080_v37 = vpop.f32.mrf.mxu0  ;;  %2437 = vmatmul.mubr.bf16.gmra.mxu0 %v2751_v26  ;;  %v101_v26 = vld [vmem:[%s4748_s0 + $0x2b0] sm:$0xff] }
  0xec   :  { %v1852_v38 = vadd.f32 %v3079_v34, %v4417_v16  ;;  %v3144_v39 = vpop.f32.mrf.mxu1  ;;  %2534 = vmatmul.mubr.bf16.gmra.mxu1 %v2753_v29  ;;  %2444 = vmatprep.mubr.bf16.mxu0 %v2768_v30 }
  0xed   :  { %v3081_v40 = vpop.f32.mrf.mxu0  ;;  %2541 = vmatprep.mubr.bf16.mxu1 %v2770_v32  ;;  %v110_v32 = vld [vmem:[%s4748_s0 + $0x2f8] sm:$0xff] }
  0xee   :  { %v4441_v43 = vadd.f32 %v3143_v36, %v1852_v38  ;;  %v3082_v44 = vadd.f32 %v3081_v40, %v3080_v37  ;;  %v3145_v45 = vpop.f32.mrf.mxu1  ;;  %v2799_v36 = vcombine.low %v85_v1, %v93_v2  ;;  %v2816_v40 = vcombine.high %v101_v26, %v109_v27 }
  0xef   :  { %v3146_v48 = vadd.f32 %v3145_v45, %v3144_v39  ;;  %v3083_v49 = vpop.f32.mrf.mxu0  ;;  %v2801_v39 = vcombine.low %v86_v6, %v94_v7  ;;  %v2818_v42 = vcombine.high %v102_v31, %v110_v32  ;;  %v2817_v1 = vcombine.low %v102_v31, %v110_v32 }
  0xf0   :  { %v1857_v51 = vadd.f32 %v3082_v44, %v4417_v16  ;;  %v3147_v52 = vpop.f32.mrf.mxu1 }
  0xf1   :  { %v3084_v55 = vpop.f32.mrf.mxu0 }
  0xf2   :  { %v4450_v57 = vadd.f32 %v3146_v48, %v1857_v51  ;;  %v3085_v58 = vadd.f32 %v3084_v55, %v3083_v49  ;;  %v3148_v59 = vpop.f32.mrf.mxu1 }
  0xf3   :  { %v3149_v60 = vadd.f32 %v3148_v59, %v3147_v52  ;;  %v3086_v61 = vpop.f32.mrf.mxu0  ;;  %2445 = vmatmul.mubr.bf16.gmra.mxu0 %v2767_v50  ;;  %v117_v52 = vld [vmem:[%s4748_s0 + $0x330] sm:$0xff]  ;;  %v126_v59 = vld [vmem:[%s4748_s0 + $0x378] sm:$0xff] }
  0xf4   :  { %v1860_v62 = vadd.f32 %v3085_v58, %v4417_v16  ;;  %v3150_v63 = vpop.f32.mrf.mxu1  ;;  %2542 = vmatmul.mubr.bf16.gmra.mxu1 %v2769_v53  ;;  %2452 = vmatprep.mubr.bf16.mxu0 %v2784_v54  ;;  %v125_v53 = vld [vmem:[%s4748_s0 + $0x370] sm:$0xff]  ;;  %v118_v58 = vld [vmem:[%s4748_s0 + $0x338] sm:$0xff] }
  0xf5   :  { %v3087_v0 = vpop.f32.mrf.mxu0  ;;  %2549 = vmatprep.mubr.bf16.mxu1 %v2786_v56  ;;  %v2832_v2 = vcombine.high %v117_v52, %v125_v53 }
  0xf6   :  { %v4459_v3 = vadd.f32 %v3149_v60, %v1860_v62  ;;  %v3088_v4 = vadd.f32 %v3087_v0, %v3086_v61  ;;  %v3151_v5 = vpop.f32.mrf.mxu1  ;;  %v2815_v62 = vcombine.low %v101_v26, %v109_v27 }
  0xf7   :  { %v3152_v8 = vadd.f32 %v3151_v5, %v3150_v63  ;;  %v3089_v9 = vpop.f32.mrf.mxu0  ;;  %v2834_v5 = vcombine.high %v118_v58, %v126_v59 }
  0xf8   :  { %v1865_v11 = vadd.f32 %v3088_v4, %v4417_v16  ;;  %v3153_v12 = vpop.f32.mrf.mxu1 }
  0xf9   :  { %v3090_v15 = vpop.f32.mrf.mxu0 }
  0xfa   :  { %v4468_v18 = vadd.f32 %v3152_v8, %v1865_v11  ;;  %v3091_v19 = vadd.f32 %v3090_v15, %v3089_v9  ;;  %v3154_v20 = vpop.f32.mrf.mxu1  ;;  %v141_v15 = vld [vmem:[%s4748_s0 + $0x3f0] sm:$0xff] }
  0xfb   :  { %v3155_v21 = vadd.f32 %v3154_v20, %v3153_v12  ;;  %v3092_v22 = vpop.f32.mrf.mxu0  ;;  %2453 = vmatmul.mubr.bf16.gmra.mxu0 %v2783_v10 }
  0xfc   :  { %v1868_v23 = vadd.f32 %v3091_v19, %v4417_v16  ;;  %v3156_v24 = vpop.f32.mrf.mxu1  ;;  %2550 = vmatmul.mubr.bf16.gmra.mxu1 %v2785_v13  ;;  %2460 = vmatprep.mubr.bf16.mxu0 %v2800_v14  ;;  %v133_v14 = vld [vmem:[%s4748_s0 + $0x3b0] sm:$0xff] }
  0xfd   :  { %v3093_v25 = vpop.f32.mrf.mxu0  ;;  %2557 = vmatprep.mubr.bf16.mxu1 %v2802_v17 }
  0xfe   :  { %v4477_v28 = vadd.f32 %v3155_v21, %v1868_v23  ;;  %v3094_v29 = vadd.f32 %v3093_v25, %v3092_v22  ;;  %v3157_v30 = vpop.f32.mrf.mxu1  ;;  %v134_v21 = vld [vmem:[%s4748_s0 + $0x3b8] sm:$0xff]  ;;  %v2831_v25 = vcombine.low %v117_v52, %v125_v53 }
  0xff   :  { %v3158_v34 = vadd.f32 %v3157_v30, %v3156_v24  ;;  %v3095_v35 = vpop.f32.mrf.mxu0  ;;  %v142_v22 = vld [vmem:[%s4748_s0 + $0x3f8] sm:$0xff]  ;;  %v2848_v30 = vcombine.high %v133_v14, %v141_v15 }
 0x100   :  { %v1873_v37 = vadd.f32 %v3094_v29, %v4417_v16  ;;  %v3159_v38 = vpop.f32.mrf.mxu1  ;;  %v2833_v29 = vcombine.low %v118_v58, %v126_v59  ;;  %v2850_v32 = vcombine.high %v134_v21, %v142_v22  ;;  %v2849_v52 = vcombine.low %v134_v21, %v142_v22 }
 0x101   :  { %v3096_v41 = vpop.f32.mrf.mxu0 }
 0x102   :  { %v4486_v44 = vadd.f32 %v3158_v34, %v1873_v37  ;;  %v3097_v45 = vadd.f32 %v3096_v41, %v3095_v35  ;;  %v3160_v46 = vpop.f32.mrf.mxu1 }
 0x103   :  { %v3161_v47 = vadd.f32 %v3160_v46, %v3159_v38  ;;  %v3098_v48 = vpop.f32.mrf.mxu0  ;;  %2461 = vmatmul.mubr.bf16.gmra.mxu0 %v2799_v36 }
 0x104   :  { %v1876_v49 = vadd.f32 %v3097_v45, %v4417_v16  ;;  %v3162_v50 = vpop.f32.mrf.mxu1  ;;  %2558 = vmatmul.mubr.bf16.gmra.mxu1 %v2801_v39  ;;  %2468 = vmatprep.mubr.bf16.mxu0 %v2816_v40 }
 0x105   :  { %v3099_v51 = vpop.f32.mrf.mxu0  ;;  %2565 = vmatprep.mubr.bf16.mxu1 %v2818_v42 }
 0x106   :  { %v4495_v54 = vadd.f32 %v3161_v47, %v1876_v49  ;;  %v3100_v55 = vadd.f32 %v3099_v51, %v3098_v48  ;;  %v3163_v56 = vpop.f32.mrf.mxu1  ;;  %v2847_v49 = vcombine.low %v133_v14, %v141_v15 }
 0x107   :  { %v3164_v60 = vadd.f32 %v3163_v56, %v3162_v50  ;;  %v3101_v61 = vpop.f32.mrf.mxu0 }
 0x108   :  { %v1881_v63 = vadd.f32 %v3100_v55, %v4417_v16  ;;  %v3165_v0 = vpop.f32.mrf.mxu1 }
 0x109   :  { %v3102_v4 = vpop.f32.mrf.mxu0 }
 0x10a   :  { %v4504_v6 = vadd.f32 %v3164_v60, %v1881_v63  ;;  %v3103_v7 = vadd.f32 %v3102_v4, %v3101_v61  ;;  %v3166_v8 = vpop.f32.mrf.mxu1 }
 0x10b   :  { %v3167_v9 = vadd.f32 %v3166_v8, %v3165_v0  ;;  %v3104_v10 = vpop.f32.mrf.mxu0  ;;  %2469 = vmatmul.mubr.bf16.gmra.mxu0 %v2815_v62 }
 0x10c   :  { %v1884_v11 = vadd.f32 %v3103_v7, %v4417_v16  ;;  %v3168_v12 = vpop.f32.mrf.mxu1  ;;  %2566 = vmatmul.mubr.bf16.gmra.mxu1 %v2817_v1  ;;  %2476 = vmatprep.mubr.bf16.mxu0 %v2832_v2 }
 0x10d   :  { %v3105_v13 = vpop.f32.mrf.mxu0  ;;  %2573 = vmatprep.mubr.bf16.mxu1 %v2834_v5 }
 0x10e   :  { %v4513_v17 = vadd.f32 %v3167_v9, %v1884_v11  ;;  %v3106_v19 = vadd.f32 %v3105_v13, %v3104_v10  ;;  %v3169_v20 = vpop.f32.mrf.mxu1 }
 0x10f   :  { %v3170_v23 = vadd.f32 %v3169_v20, %v3168_v12  ;;  %v3107_v24 = vpop.f32.mrf.mxu0 }
 0x110   :  { %v1889_v26 = vadd.f32 %v3106_v19, %v4417_v16  ;;  %v3171_v27 = vpop.f32.mrf.mxu1 }
 0x111   :  { %v3108_v31 = vpop.f32.mrf.mxu0 }
 0x112   :  { %v4522_v34 = vadd.f32 %v3170_v23, %v1889_v26  ;;  %v3109_v35 = vadd.f32 %v3108_v31, %v3107_v24  ;;  %v3172_v36 = vpop.f32.mrf.mxu1 }
 0x113   :  { %v3173_v37 = vadd.f32 %v3172_v36, %v3171_v27  ;;  %v3110_v38 = vpop.f32.mrf.mxu0  ;;  %2477 = vmatmul.mubr.bf16.gmra.mxu0 %v2831_v25 }
 0x114   :  { %v1892_v39 = vadd.f32 %v3109_v35, %v4417_v16  ;;  %v3174_v40 = vpop.f32.mrf.mxu1  ;;  %2574 = vmatmul.mubr.bf16.gmra.mxu1 %v2833_v29  ;;  %2484 = vmatprep.mubr.bf16.mxu0 %v2848_v30 }
 0x115   :  { %v3111_v41 = vpop.f32.mrf.mxu0  ;;  %2581 = vmatprep.mubr.bf16.mxu1 %v2850_v32 }
 0x116   :  { %v4525_v42 = vadd.f32 %v3173_v37, %v1892_v39  ;;  %v3112_v45 = vadd.f32 %v3111_v41, %v3110_v38  ;;  %v3175_v46 = vpop.f32.mrf.mxu1 }
 0x117   :  { %v3176_v47 = vadd.f32 %v3175_v46, %v3174_v40  ;;  %v3113_v48 = vpop.f32.mrf.mxu0 }
 0x118   :  { %v1897_v50 = vadd.f32 %v3112_v45, %v4417_v16  ;;  %v3177_v51 = vpop.f32.mrf.mxu1 }
 0x119   :  { %v3114_v53 = vpop.f32.mrf.mxu0 }
 0x11a   :  { %v4528_v55 = vadd.f32 %v3176_v47, %v1897_v50  ;;  %v3115_v56 = vadd.f32 %v3114_v53, %v3113_v48  ;;  %v3178_v58 = vpop.f32.mrf.mxu1 }
 0x11b   :  { %v3179_v59 = vadd.f32 %v3178_v58, %v3177_v51  ;;  %v3116_v60 = vpop.f32.mrf.mxu0  ;;  %2485 = vmatmul.mubr.bf16.gmra.mxu0 %v2847_v49 }
 0x11c   :  { %v1900_v61 = vadd.f32 %v3115_v56, %v4417_v16  ;;  %v3180_v62 = vpop.f32.mrf.mxu1  ;;  %2582 = vmatmul.mubr.bf16.gmra.mxu1 %v2849_v52 }
 0x11d   :  { %v3117_v63 = vpop.f32.mrf.mxu0 }
 0x11e   :  { %v4531_v0 = vadd.f32 %v3179_v59, %v1900_v61  ;;  %v3118_v1 = vadd.f32 %v3117_v63, %v3116_v60  ;;  %v3181_v2 = vpop.f32.mrf.mxu1 }
 0x11f   :  { %v3182_v4 = vadd.f32 %v3181_v2, %v3180_v62  ;;  %v3119_v5 = vpop.f32.mrf.mxu0 }
 0x120   :  { %v1905_v7 = vadd.f32 %v3118_v1, %v4417_v16  ;;  %v3183_v8 = vpop.f32.mrf.mxu1 }
 0x121   :  { %v3120_v9 = vpop.f32.mrf.mxu0 }
 0x122   :  { %v4534_v10 = vadd.f32 %v3182_v4, %v1905_v7  ;;  %v3121_v11 = vadd.f32 %v3120_v9, %v3119_v5  ;;  %v3184_v12 = vpop.f32.mrf.mxu1 }
 0x123   :  { %v3185_v13 = vadd.f32 %v3184_v12, %v3183_v8  ;;  %v3202_v14 = vpop.f32.mrf.mxu0 }
 0x124   :  { %v1908_v15 = vadd.f32 %v3121_v11, %v4417_v16  ;;  %v3266_v19 = vpop.f32.mrf.mxu1 }
 0x125   :  { %v3203_v20 = vpop.f32.mrf.mxu0 }
 0x126   :  { %v4537_v21 = vadd.f32 %v3185_v13, %v1908_v15  ;;  %v3204_v22 = vadd.f32 %v3203_v20, %v3202_v14  ;;  %v3267_v23 = vpop.f32.mrf.mxu1 }
 0x127   :  { %v3268_v24 = vadd.f32 %v3267_v23, %v3266_v19  ;;  %v3205_v25 = vpop.f32.mrf.mxu0 }
 0x128   :  { %v2043_v26 = vadd.f32 %v3204_v22, %v4432_v33  ;;  %v3269_v27 = vpop.f32.mrf.mxu1 }
 0x129   :  { %v3206_v29 = vpop.f32.mrf.mxu0 }
 0x12a   :  { %v4540_v30 = vadd.f32 %v3268_v24, %v2043_v26  ;;  %v3207_v31 = vadd.f32 %v3206_v29, %v3205_v25  ;;  %v3270_v32 = vpop.f32.mrf.mxu1 }
 0x12b   :  { %v3271_v35 = vadd.f32 %v3270_v32, %v3269_v27  ;;  %v3208_v36 = vpop.f32.mrf.mxu0 }
 0x12c   :  { %v2046_v16 = vadd.f32 %v3207_v31, %v4441_v43  ;;  %v3272_v37 = vpop.f32.mrf.mxu1 }
 0x12d   :  { %v3209_v38 = vpop.f32.mrf.mxu0 }
 0x12e   :  { %v4543_v39 = vadd.f32 %v3271_v35, %v2046_v16  ;;  %v3210_v40 = vadd.f32 %v3209_v38, %v3208_v36  ;;  %v3273_v41 = vpop.f32.mrf.mxu1 }
 0x12f   :  { %v3274_v45 = vadd.f32 %v3273_v41, %v3272_v37  ;;  %v3211_v46 = vpop.f32.mrf.mxu0 }
 0x130   :  { %v2051_v33 = vadd.f32 %v3210_v40, %v4450_v57  ;;  %v3275_v47 = vpop.f32.mrf.mxu1 }
 0x131   :  { %v3212_v48 = vpop.f32.mrf.mxu0 }
 0x132   :  { %v4546_v49 = vadd.f32 %v3274_v45, %v2051_v33  ;;  %v3213_v50 = vadd.f32 %v3212_v48, %v3211_v46  ;;  %v3276_v51 = vpop.f32.mrf.mxu1 }
 0x133   :  { %v3277_v52 = vadd.f32 %v3276_v51, %v3275_v47  ;;  %v3214_v53 = vpop.f32.mrf.mxu0 }
 0x134   :  { %v2054_v43 = vadd.f32 %v3213_v50, %v4459_v3  ;;  %v3278_v56 = vpop.f32.mrf.mxu1 }
 0x135   :  { %v3215_v58 = vpop.f32.mrf.mxu0 }
 0x136   :  { %v4549_v59 = vadd.f32 %v3277_v52, %v2054_v43  ;;  %v3216_v60 = vadd.f32 %v3215_v58, %v3214_v53  ;;  %v3279_v61 = vpop.f32.mrf.mxu1 }
 0x137   :  { %v3280_v62 = vadd.f32 %v3279_v61, %v3278_v56  ;;  %v3217_v63 = vpop.f32.mrf.mxu0 }
 0x138   :  { %v2059_v57 = vadd.f32 %v3216_v60, %v4468_v18  ;;  %v3281_v1 = vpop.f32.mrf.mxu1 }
 0x139   :  { %v3218_v2 = vpop.f32.mrf.mxu0 }
 0x13a   :  { %v4552_v4 = vadd.f32 %v3280_v62, %v2059_v57  ;;  %v3219_v5 = vadd.f32 %v3218_v2, %v3217_v63  ;;  %v3282_v7 = vpop.f32.mrf.mxu1 }
 0x13b   :  { %v3283_v8 = vadd.f32 %v3282_v7, %v3281_v1  ;;  %v3220_v9 = vpop.f32.mrf.mxu0 }
 0x13c   :  { %v2062_v3 = vadd.f32 %v3219_v5, %v4477_v28  ;;  %v3284_v11 = vpop.f32.mrf.mxu1 }
 0x13d   :  { %v3221_v12 = vpop.f32.mrf.mxu0 }
 0x13e   :  { %v4555_v13 = vadd.f32 %v3283_v8, %v2062_v3  ;;  %v3222_v14 = vadd.f32 %v3221_v12, %v3220_v9  ;;  %v3285_v15 = vpop.f32.mrf.mxu1 }
 0x13f   :  { %v3286_v19 = vadd.f32 %v3285_v15, %v3284_v11  ;;  %v3223_v20 = vpop.f32.mrf.mxu0 }
 0x140   :  { %v2067_v18 = vadd.f32 %v3222_v14, %v4486_v44  ;;  %v3287_v22 = vpop.f32.mrf.mxu1 }
 0x141   :  { %v3224_v23 = vpop.f32.mrf.mxu0 }
 0x142   :  { %v4558_v24 = vadd.f32 %v3286_v19, %v2067_v18  ;;  %v3225_v25 = vadd.f32 %v3224_v23, %v3223_v20  ;;  %v3288_v26 = vpop.f32.mrf.mxu1 }
 0x143   :  { %v3289_v27 = vadd.f32 %v3288_v26, %v3287_v22  ;;  %v3226_v29 = vpop.f32.mrf.mxu0 }
 0x144   :  { %v2070_v28 = vadd.f32 %v3225_v25, %v4495_v54  ;;  %v3290_v31 = vpop.f32.mrf.mxu1 }
 0x145   :  { %v3227_v32 = vpop.f32.mrf.mxu0 }
 0x146   :  { %v4561_v35 = vadd.f32 %v3289_v27, %v2070_v28  ;;  %v3228_v36 = vadd.f32 %v3227_v32, %v3226_v29  ;;  %v3291_v16 = vpop.f32.mrf.mxu1 }
 0x147   :  { %v3292_v37 = vadd.f32 %v3291_v16, %v3290_v31  ;;  %v3229_v38 = vpop.f32.mrf.mxu0 }
 0x148   :  { %v2075_v44 = vadd.f32 %v3228_v36, %v4504_v6  ;;  %v3293_v40 = vpop.f32.mrf.mxu1 }
 0x149   :  { %v3230_v41 = vpop.f32.mrf.mxu0 }
 0x14a   :  { %v4564_v45 = vadd.f32 %v3292_v37, %v2075_v44  ;;  %v3231_v46 = vadd.f32 %v3230_v41, %v3229_v38  ;;  %v3294_v33 = vpop.f32.mrf.mxu1 }
 0x14b   :  { %v3295_v47 = vadd.f32 %v3294_v33, %v3293_v40  ;;  %v3232_v48 = vpop.f32.mrf.mxu0 }
 0x14c   :  { %v2078_v54 = vadd.f32 %v3231_v46, %v4513_v17  ;;  %v3296_v50 = vpop.f32.mrf.mxu1 }
 0x14d   :  { %v3233_v51 = vpop.f32.mrf.mxu0 }
 0x14e   :  { %v4567_v52 = vadd.f32 %v3295_v47, %v2078_v54  ;;  %v3234_v53 = vadd.f32 %v3233_v51, %v3232_v48  ;;  %v3297_v43 = vpop.f32.mrf.mxu1 }
 0x14f   :  { %v3298_v56 = vadd.f32 %v3297_v43, %v3296_v50  ;;  %v3235_v58 = vpop.f32.mrf.mxu0 }
 0x150   :  { %v2083_v6 = vadd.f32 %v3234_v53, %v4522_v34  ;;  %v3299_v60 = vpop.f32.mrf.mxu1 }
 0x151   :  { %v3236_v61 = vpop.f32.mrf.mxu0 }
 0x152   :  { %v4570_v62 = vadd.f32 %v3298_v56, %v2083_v6  ;;  %v3237_v63 = vadd.f32 %v3236_v61, %v3235_v58  ;;  %v3300_v57 = vpop.f32.mrf.mxu1 }
 0x153   :  { %v3301_v1 = vadd.f32 %v3300_v57, %v3299_v60  ;;  %v3238_v2 = vpop.f32.mrf.mxu0 }
 0x154   :  { %v2086_v17 = vadd.f32 %v3237_v63, %v4525_v42  ;;  %v3302_v5 = vpop.f32.mrf.mxu1 }
 0x155   :  { %v3239_v7 = vpop.f32.mrf.mxu0 }
 0x156   :  { %v4573_v8 = vadd.f32 %v3301_v1, %v2086_v17  ;;  %v3240_v9 = vadd.f32 %v3239_v7, %v3238_v2  ;;  %v3303_v3 = vpop.f32.mrf.mxu1 }
 0x157   :  { %v3304_v11 = vadd.f32 %v3303_v3, %v3302_v5  ;;  %v3241_v12 = vpop.f32.mrf.mxu0 }
 0x158   :  { %v2091_v34 = vadd.f32 %v3240_v9, %v4528_v55  ;;  %v3305_v14 = vpop.f32.mrf.mxu1 }
 0x159   :  { %v3242_v15 = vpop.f32.mrf.mxu0 }
 0x15a   :  { %v4576_v19 = vadd.f32 %v3304_v11, %v2091_v34  ;;  %v3243_v20 = vadd.f32 %v3242_v15, %v3241_v12  ;;  %v3306_v18 = vpop.f32.mrf.mxu1 }
 0x15b   :  { %v3307_v22 = vadd.f32 %v3306_v18, %v3305_v14  ;;  %v3244_v23 = vpop.f32.mrf.mxu0 }
 0x15c   :  { %v2094_v42 = vadd.f32 %v3243_v20, %v4531_v0  ;;  %v3308_v25 = vpop.f32.mrf.mxu1 }
 0x15d   :  { %v3245_v26 = vpop.f32.mrf.mxu0 }
 0x15e   :  { %v4579_v27 = vadd.f32 %v3307_v22, %v2094_v42  ;;  %v3246_v29 = vadd.f32 %v3245_v26, %v3244_v23  ;;  %v3309_v28 = vpop.f32.mrf.mxu1 }
 0x15f   :  { %v3310_v31 = vadd.f32 %v3309_v28, %v3308_v25  ;;  %v3247_v32 = vpop.f32.mrf.mxu0 }
 0x160   :  { %v2099_v55 = vadd.f32 %v3246_v29, %v4534_v10  ;;  %v3311_v36 = vpop.f32.mrf.mxu1 }
 0x161   :  { %v3248_v16 = vpop.f32.mrf.mxu0 }
 0x162   :  { %v4582_v37 = vadd.f32 %v3310_v31, %v2099_v55  ;;  %v3249_v38 = vadd.f32 %v3248_v16, %v3247_v32  ;;  %v3312_v44 = vpop.f32.mrf.mxu1 }
 0x163   :  { %v3313_v40 = vadd.f32 %v3312_v44, %v3311_v36  ;;  %v3330_v41 = vpop.f32.mrf.mxu0 }
 0x164   :  { %v2102_v0 = vadd.f32 %v3249_v38, %v4537_v21  ;;  %v3394_v46 = vpop.f32.mrf.mxu1 }
 0x165   :  { %v3331_v33 = vpop.f32.mrf.mxu0 }
 0x166   :  { %v4585_v47 = vadd.f32 %v3313_v40, %v2102_v0  ;;  %v3332_v48 = vadd.f32 %v3331_v33, %v3330_v41  ;;  %v3395_v54 = vpop.f32.mrf.mxu1 }
 0x167   :  { %v3396_v50 = vadd.f32 %v3395_v54, %v3394_v46  ;;  %v4587_v51 = vpop.f32.mrf.mxu0 }
 0x168   :  { %v2237_v10 = vadd.f32 %v3332_v48, %v4540_v30  ;;  %v4590_v53 = vpop.f32.mrf.mxu1 }
 0x169   :  { %v4592_v43 = vpop.f32.mrf.mxu0 }
 0x16a   :  { %v4594_v56 = vadd.f32 %v3396_v50, %v2237_v10  ;;  %v4596_v58 = vpop.f32.mrf.mxu1 }
 0x16b   :  { %v3336_v21 = vpop.f32.mrf.mxu0 }
 0x16c   :  { %v3400_v6 = vpop.f32.mrf.mxu1 }
 0x16d   :  { %v3337_v60 = vpop.f32.mrf.mxu0 }
 0x16e   :  { %v3338_v61 = vadd.f32 %v3337_v60, %v3336_v21  ;;  %v3401_v63 = vpop.f32.mrf.mxu1 }
 0x16f   :  { %v3402_v57 = vadd.f32 %v3401_v63, %v3400_v6  ;;  %v4598_v1 = vpop.f32.mrf.mxu0 }
 0x170   :  { %v2245_v2 = vadd.f32 %v3338_v61, %v4546_v49  ;;  %v4601_v17 = vpop.f32.mrf.mxu1 }
 0x171   :  { %v4603_v30 = vpop.f32.mrf.mxu0 }
 0x172   :  { %v4605_v5 = vadd.f32 %v3402_v57, %v2245_v2  ;;  %v4607_v7 = vpop.f32.mrf.mxu1 }
 0x173   :  { %v3342_v9 = vpop.f32.mrf.mxu0 }
 0x174   :  { %v3406_v3 = vpop.f32.mrf.mxu1 }
 0x175   :  { %v3343_v11 = vpop.f32.mrf.mxu0 }
 0x176   :  { %v3344_v12 = vadd.f32 %v3343_v11, %v3342_v9  ;;  %v3407_v34 = vpop.f32.mrf.mxu1 }
 0x177   :  { %v3408_v14 = vadd.f32 %v3407_v34, %v3406_v3  ;;  %v4609_v15 = vpop.f32.mrf.mxu0 }
 0x178   :  { %v2253_v20 = vadd.f32 %v3344_v12, %v4552_v4  ;;  %v4612_v18 = vpop.f32.mrf.mxu1 }
 0x179   :  { %v4614_v49 = vpop.f32.mrf.mxu0 }
 0x17a   :  { %v4616_v22 = vadd.f32 %v3408_v14, %v2253_v20  ;;  %v4618_v23 = vpop.f32.mrf.mxu1 }
 0x17b   :  { %v3348_v42 = vpop.f32.mrf.mxu0 }
 0x17c   :  { %v3412_v25 = vpop.f32.mrf.mxu1 }
 0x17d   :  { %v3349_v26 = vpop.f32.mrf.mxu0 }
 0x17e   :  { %v3350_v29 = vadd.f32 %v3349_v26, %v3348_v42  ;;  %v3413_v28 = vpop.f32.mrf.mxu1 }
 0x17f   :  { %v3414_v31 = vadd.f32 %v3413_v28, %v3412_v25  ;;  %v4620_v32 = vpop.f32.mrf.mxu0 }
 0x180   :  { %v2261_v55 = vadd.f32 %v3350_v29, %v4558_v24  ;;  %v4623_v36 = vpop.f32.mrf.mxu1 }
 0x181   :  { %v4625_v4 = vpop.f32.mrf.mxu0 }
 0x182   :  { %v4627_v16 = vadd.f32 %v3414_v31, %v2261_v55  ;;  %v4629_v38 = vpop.f32.mrf.mxu1 }
 0x183   :  { %v3354_v44 = vpop.f32.mrf.mxu0 }
 0x184   :  { %v3418_v40 = vpop.f32.mrf.mxu1 }
 0x185   :  { %v3355_v41 = vpop.f32.mrf.mxu0 }
 0x186   :  { %v3356_v0 = vadd.f32 %v3355_v41, %v3354_v44  ;;  %v3419_v46 = vpop.f32.mrf.mxu1 }
 0x187   :  { %v3420_v33 = vadd.f32 %v3419_v46, %v3418_v40  ;;  %v4631_v48 = vpop.f32.mrf.mxu0 }
 0x188   :  { %v2269_v54 = vadd.f32 %v3356_v0, %v4564_v45  ;;  %v4634_v50 = vpop.f32.mrf.mxu1 }
 0x189   :  { %v4636_v24 = vpop.f32.mrf.mxu0 }
 0x18a   :  { %v4638_v10 = vadd.f32 %v3420_v33, %v2269_v54  ;;  %v4640_v21 = vpop.f32.mrf.mxu1 }
 0x18b   :  { %v3360_v6 = vpop.f32.mrf.mxu0 }
 0x18c   :  { %v3424_v60 = vpop.f32.mrf.mxu1 }
 0x18d   :  { %v3361_v61 = vpop.f32.mrf.mxu0 }
 0x18e   :  { %v3362_v63 = vadd.f32 %v3361_v61, %v3360_v6  ;;  %v3425_v57 = vpop.f32.mrf.mxu1 }
 0x18f   :  { %v3426_v2 = vadd.f32 %v3425_v57, %v3424_v60  ;;  %v4642_v9 = vpop.f32.mrf.mxu0  ;;  %v3335_v57 = vadd.f32 %v4592_v43, %v4587_v51  ;;  %v3341_v51 = vadd.f32 %v4603_v30, %v4598_v1 }
 0x190   :  { %v2277_v3 = vadd.f32 %v3362_v63, %v4570_v62  ;;  %v4645_v11 = vpop.f32.mrf.mxu1 }
 0x191   :  { %v4647_v45 = vpop.f32.mrf.mxu0 }
 0x192   :  { %v4649_v12 = vadd.f32 %v3426_v2, %v2277_v3  ;;  %v4651_v34 = vpop.f32.mrf.mxu1 }
 0x193   :  { %v3366_v14 = vpop.f32.mrf.mxu0 }
 0x194   :  { %v3430_v20 = vpop.f32.mrf.mxu1 }
 0x195   :  { %v3367_v42 = vpop.f32.mrf.mxu0 }
 0x196   :  { %v3368_v25 = vadd.f32 %v3367_v42, %v3366_v14  ;;  %v3431_v26 = vpop.f32.mrf.mxu1 }
 0x197   :  { %v3432_v29 = vadd.f32 %v3431_v26, %v3430_v20  ;;  %v4653_v28 = vpop.f32.mrf.mxu0 }
 0x198   :  { %v2285_v31 = vadd.f32 %v3368_v25, %v4576_v19  ;;  %v4656_v55 = vpop.f32.mrf.mxu1  ;;  %v2240_v25 = vadd.f32 %v3335_v57, %v4543_v39 }
 0x199   :  { %v4658_v62 = vpop.f32.mrf.mxu0 }
 0x19a   :  { %v4660_v44 = vadd.f32 %v3432_v29, %v2285_v31  ;;  %v4662_v40 = vpop.f32.mrf.mxu1 }
 0x19b   :  { %v3372_v41 = vpop.f32.mrf.mxu0 }
 0x19c   :  { %v3436_v0 = vpop.f32.mrf.mxu1 }
 0x19d   :  { %v3373_v46 = vpop.f32.mrf.mxu0 }
 0x19e   :  { %v3374_v33 = vadd.f32 %v3373_v46, %v3372_v41  ;;  %v3437_v54 = vpop.f32.mrf.mxu1 }
 0x19f   :  { %v3438_v6 = vadd.f32 %v3437_v54, %v3436_v0  ;;  %v4664_v60 = vpop.f32.mrf.mxu0 }
 0x1a0   :  { %v2293_v61 = vadd.f32 %v3374_v33, %v4582_v37  ;;  %v4667_v63 = vpop.f32.mrf.mxu1  ;;  %v3399_v37 = vadd.f32 %v4596_v58, %v4590_v53 }
 0x1a1   :  { %v4669_v19 = vpop.f32.mrf.mxu0 }
 0x1a2   :  { %v4673_v2 = vadd.f32 %v3438_v6, %v2293_v61  ;;  %v4675_v3 = vpop.f32.mrf.mxu1  ;;  %v2337_v33 = vadd.f32 %v3399_v37, %v2240_v25 }
 0x1a3   :  { %4752 = vst [vmem:[#allocation3_spill] sm:$0xff] %v4675_v3  ;;  %v3458_v14 = vpop.f32.mrf.mxu0 }
 0x1a4   :  { %4751 = vst [vmem:[#allocation2_spill] sm:$0xff] %v4673_v2  ;;  %v3522_v20 = vpop.f32.mrf.mxu1 }
 0x1a5   :  { %v3459_v42 = vpop.f32.mrf.mxu0 }
 0x1a6   :  { %v3460_v26 = vadd.f32 %v3459_v42, %v3458_v14  ;;  %v3523_v29 = vpop.f32.mrf.mxu1  ;;  %v2248_v42 = vadd.f32 %v3341_v51, %v4549_v59  ;;  %v3347_v59 = vadd.f32 %v4614_v49, %v4609_v15 }
 0x1a7   :  { %v3461_v31 = vpop.f32.mrf.mxu0  ;;  %v3524_v0 = vadd.f32 %v3523_v29, %v3522_v20 }
 0x1a8   :  { %v2431_v41 = vadd.f32 %v3460_v26, %v4594_v56  ;;  %v3525_v46 = vpop.f32.mrf.mxu1  ;;  %v3405_v26 = vadd.f32 %v4607_v7, %v4601_v17 }
 0x1a9   :  { %v3462_v43 = vpop.f32.mrf.mxu0 }
 0x1aa   :  { %v2528_v54 = vadd.f32 %v3524_v0, %v2431_v41  ;;  %v3463_v6 = vadd.f32 %v3462_v43, %v3461_v31  ;;  %v3526_v61 = vpop.f32.mrf.mxu1  ;;  %v2345_v37 = vadd.f32 %v3405_v26, %v2248_v42 }
 0x1ab   :  { %v3464_v2 = vpop.f32.mrf.mxu0  ;;  %v3527_v57 = vadd.f32 %v3526_v61, %v3525_v46  ;;  %v2256_v61 = vadd.f32 %v3347_v59, %v4555_v13 }
 0x1ac   :  { %v2434_v39 = vadd.f32 %v3463_v6, %v2337_v33  ;;  %v3528_v14 = vpop.f32.mrf.mxu1  ;;  %v2606_v53 = vmul.f32 0.2, %v2528_v54  ;;  %vm2590_vm0 = vcmp.gt.f32.partialorder %v2528_v54, 0.0 }
 0x1ad   :  { %v3465_v3 = vpop.f32.mrf.mxu0 }
 0x1ae   :  { %v2531_v58 = vadd.f32 %v3527_v57, %v2434_v39  ;;  %v3466_v56 = vadd.f32 %v3465_v3, %v3464_v2  ;;  %v3529_v20 = vpop.f32.mrf.mxu1  ;;  %v2622_v0 = vsel %vm2590_vm0, %v2528_v54, %v2606_v53  ;;  %v3411_v57 = vadd.f32 %v4618_v23, %v4612_v18 }
 0x1af   :  { %v3467_v1 = vpop.f32.mrf.mxu0  ;;  %v3530_v29 = vadd.f32 %v3529_v20, %v3528_v14  ;;  %v3353_v20 = vadd.f32 %v4625_v4, %v4620_v32 }
 0x1b0   :  { %vm2591_vm1 = vcmp.gt.f32.partialorder %v2531_v58, 0.0  ;;  %v2607_v30 = vmul.f32 0.2, %v2531_v58  ;;  %v2439_v25 = vadd.f32 %v3466_v56, %v4605_v5  ;;  %v3531_v31 = vpop.f32.mrf.mxu1  ;;  %v2353_v56 = vadd.f32 %v3411_v57, %v2256_v61 }
 0x1b1   :  { %v3468_v41 = vpop.f32.mrf.mxu0 }
 0x1b2   :  { %v2623_v46 = vsel %vm2591_vm1, %v2531_v58, %v2607_v30  ;;  %v2536_v2 = vadd.f32 %v3530_v29, %v2439_v25  ;;  %v3469_v3 = vadd.f32 %v3468_v41, %v3467_v1  ;;  %v3532_v51 = vpop.f32.mrf.mxu1 }
 0x1b3   :  { %v3014_v43 = vpack.c.bf16 %v2623_v46, %v2622_v0  ;;  %v3470_v17 = vpop.f32.mrf.mxu0  ;;  %v3533_v33 = vadd.f32 %v3532_v51, %v3531_v31  ;;  %v2264_v0 = vadd.f32 %v3353_v20, %v4561_v35 }
 0x1b4   :  { %v2442_v7 = vadd.f32 %v3469_v3, %v2345_v37  ;;  %v3534_v6 = vpop.f32.mrf.mxu1  ;;  %v2608_v39 = vmul.f32 0.2, %v2536_v2  ;;  %vm2592_vm2 = vcmp.gt.f32.partialorder %v2536_v2, 0.0  ;;  %v3417_v3 = vadd.f32 %v4629_v38, %v4623_v36 }
 0x1b5   :  { %3015 = vst [vmem:[%s4750_s3] sm:$0xff] %v3014_v43   ;;  %v3471_v5 = vpop.f32.mrf.mxu0 }
 0x1b6   :  { %v2539_v15 = vadd.f32 %v3533_v33, %v2442_v7  ;;  %v3472_v49 = vadd.f32 %v3471_v5, %v3470_v17  ;;  %v3535_v54 = vpop.f32.mrf.mxu1  ;;  %v2624_v1 = vsel %vm2592_vm2, %v2536_v2, %v2608_v39  ;;  %v2361_v33 = vadd.f32 %v3417_v3, %v2264_v0 }
 0x1b7   :  { %v3473_v14 = vpop.f32.mrf.mxu0  ;;  %v3536_v58 = vadd.f32 %v3535_v54, %v3534_v6  ;;  %v3359_v6 = vadd.f32 %v4636_v24, %v4631_v48  ;;  %v3429_v3 = vadd.f32 %v4651_v34, %v4645_v11 }
 0x1b8   :  { %vm2593_vm3 = vcmp.gt.f32.partialorder %v2539_v15, 0.0  ;;  %v2609_v42 = vmul.f32 0.2, %v2539_v15  ;;  %v2447_v53 = vadd.f32 %v3472_v49, %v4616_v22  ;;  %v3537_v13 = vpop.f32.mrf.mxu1 }
 0x1b9   :  { %v3474_v26 = vpop.f32.mrf.mxu0 }
 0x1ba   :  { %v2625_v30 = vsel %vm2593_vm3, %v2539_v15, %v2609_v42  ;;  %v2544_v25 = vadd.f32 %v3536_v58, %v2447_v53  ;;  %v3475_v29 = vadd.f32 %v3474_v26, %v3473_v14  ;;  %v3538_v31 = vpop.f32.mrf.mxu1  ;;  %v2272_v53 = vadd.f32 %v3359_v6, %v4567_v52 }
 0x1bb   :  { %v3019_v37 = vpack.c.bf16 %v2625_v30, %v2624_v1  ;;  %v3476_v18 = vpop.f32.mrf.mxu0  ;;  %v3539_v59 = vadd.f32 %v3538_v31, %v3537_v13 }
 0x1bc   :  { %v2450_v23 = vadd.f32 %v3475_v29, %v2353_v56  ;;  %v3540_v41 = vpop.f32.mrf.mxu1  ;;  %v2610_v46 = vmul.f32 0.2, %v2544_v25  ;;  %vm2594_vm4 = vcmp.gt.f32.partialorder %v2544_v25, 0.0  ;;  %v3423_v56 = vadd.f32 %v4640_v21, %v4634_v50 }
 0x1bd   :  { %3051 = vst [vmem:[%s4750_s3 + $0x8] sm:$0xff] %v3019_v37   ;;  %v3477_v22 = vpop.f32.mrf.mxu0  ;;  %v3365_v29 = vadd.f32 %v4647_v45, %v4642_v9 }
 0x1be   :  { %v2547_v32 = vadd.f32 %v3539_v59, %v2450_v23  ;;  %v3478_v4 = vadd.f32 %v3477_v22, %v3476_v18  ;;  %v3541_v2 = vpop.f32.mrf.mxu1  ;;  %v2626_v5 = vsel %vm2594_vm4, %v2544_v25, %v2610_v46  ;;  %v2369_v25 = vadd.f32 %v3423_v56, %v2272_v53 }
 0x1bf   :  { %v3479_v51 = vpop.f32.mrf.mxu0  ;;  %v3542_v7 = vadd.f32 %v3541_v2, %v3540_v41  ;;  %v3435_v53 = vadd.f32 %v4662_v40, %v4656_v55  ;;  %v3377_v56 = vadd.f32 %v4669_v19, %v4664_v60 }
 0x1c0   :  { %vm2595_vm5 = vcmp.gt.f32.partialorder %v2547_v32, 0.0  ;;  %v2611_v43 = vmul.f32 0.2, %v2547_v32  ;;  %v2455_v17 = vadd.f32 %v3478_v4, %v4627_v16  ;;  %v3543_v35 = vpop.f32.mrf.mxu1 }
 0x1c1   :  { %v3480_v61 = vpop.f32.mrf.mxu0 }
 0x1c2   :  { %v2627_v39 = vsel %vm2595_vm5, %v2547_v32, %v2611_v43  ;;  %v2552_v15 = vadd.f32 %v3542_v7, %v2455_v17  ;;  %v3481_v49 = vadd.f32 %v3480_v61, %v3479_v51  ;;  %v3544_v54 = vpop.f32.mrf.mxu1  ;;  %v2280_v32 = vadd.f32 %v3365_v29, %v4573_v8 }
 0x1c3   :  { %v3024_v57 = vpack.c.bf16 %v2627_v39, %v2626_v5  ;;  %v3482_v36 = vpop.f32.mrf.mxu0  ;;  %v3545_v14 = vadd.f32 %v3544_v54, %v3543_v35 }
 0x1c4   :  { %v2458_v38 = vadd.f32 %v3481_v49, %v2361_v33  ;;  %v3546_v42 = vpop.f32.mrf.mxu1  ;;  %v2612_v58 = vmul.f32 0.2, %v2552_v15  ;;  %vm2596_vm6 = vcmp.gt.f32.partialorder %v2552_v15, 0.0  ;;  %v2377_v35 = vadd.f32 %v3429_v3, %v2280_v32 }
 0x1c5   :  { %3052 = vst [vmem:[%s4750_s3 + $0x10] sm:$0xff] %v3024_v57   ;;  %v3483_v16 = vpop.f32.mrf.mxu0  ;;  %v3371_v33 = vadd.f32 %v4658_v62, %v4653_v28 }
 0x1c6   :  { %v2555_v48 = vadd.f32 %v3545_v14, %v2458_v38  ;;  %v3484_v24 = vadd.f32 %v3483_v16, %v3482_v36  ;;  %v3547_v13 = vpop.f32.mrf.mxu1  ;;  %v2628_v37 = vsel %vm2596_vm6, %v2552_v15, %v2612_v58 }
 0x1c7   :  { %v3485_v20 = vpop.f32.mrf.mxu0  ;;  %v3548_v30 = vadd.f32 %v3547_v13, %v3546_v42  ;;  %v2288_v38 = vadd.f32 %v3371_v33, %v4579_v27 }
 0x1c8   :  { %vm2597_vm7 = vcmp.gt.f32.partialorder %v2555_v48, 0.0  ;;  %v2613_v26 = vmul.f32 0.2, %v2555_v48  ;;  %v2463_v1 = vadd.f32 %v3484_v24, %v4638_v10  ;;  %v3549_v52 = vpop.f32.mrf.mxu1 }
 0x1c9   :  { %v3486_v31 = vpop.f32.mrf.mxu0  ;;  %v2385_v13 = vadd.f32 %v3435_v53, %v2288_v38 }
 0x1ca   :  { %v2629_v18 = vsel %vm2597_vm7, %v2555_v48, %v2613_v26  ;;  %v2560_v23 = vadd.f32 %v3548_v30, %v2463_v1  ;;  %v3487_v59 = vadd.f32 %v3486_v31, %v3485_v20  ;;  %v3550_v41 = vpop.f32.mrf.mxu1 }
 0x1cb   :  { %v3029_v0 = vpack.c.bf16 %v2629_v18, %v2628_v37  ;;  %v3488_v50 = vpop.f32.mrf.mxu0  ;;  %v3551_v22 = vadd.f32 %v3550_v41, %v3549_v52  ;;  %v2296_v18 = vadd.f32 %v3377_v56, %v4585_v47  ;;  %v4753_v41 = vld [vmem:[#allocation3_spill] sm:$0xff] }
 0x1cc   :  { %v2466_v21 = vadd.f32 %v3487_v59, %v2369_v25  ;;  %v3552_v46 = vpop.f32.mrf.mxu1  ;;  %v2614_v4 = vmul.f32 0.2, %v2560_v23  ;;  %vm2598_vm8 = vcmp.gt.f32.partialorder %v2560_v23, 0.0 }
 0x1cd   :  { %3053 = vst [vmem:[%s4750_s3 + $0x18] sm:$0xff] %v3029_v0   ;;  %v3489_v10 = vpop.f32.mrf.mxu0  ;;  %v3441_v0 = vadd.f32 %v4753_v41, %v4667_v63 }
 0x1ce   :  { %v2563_v9 = vadd.f32 %v3551_v22, %v2466_v21  ;;  %v3490_v45 = vadd.f32 %v3489_v10, %v3488_v50  ;;  %v3553_v2 = vpop.f32.mrf.mxu1  ;;  %v2630_v61 = vsel %vm2598_vm8, %v2560_v23, %v2614_v4  ;;  %v4754_v22 = vld [vmem:[#allocation2_spill] sm:$0xff] }
 0x1cf   :  { %v3491_v51 = vpop.f32.mrf.mxu0  ;;  %v3554_v7 = vadd.f32 %v3553_v2, %v3552_v46  ;;  %v2393_v10 = vadd.f32 %v3441_v0, %v2296_v18 }
 0x1d0   :  { %vm2599_vm9 = vcmp.gt.f32.partialorder %v2563_v9, 0.0  ;;  %v2615_v43 = vmul.f32 0.2, %v2563_v9  ;;  %v2471_v17 = vadd.f32 %v3490_v45, %v4649_v12  ;;  %v3555_v8 = vpop.f32.mrf.mxu1 }
 0x1d1   :  { %v3492_v6 = vpop.f32.mrf.mxu0 }
 0x1d2   :  { %v2631_v5 = vsel %vm2599_vm9, %v2563_v9, %v2615_v43  ;;  %v2568_v39 = vadd.f32 %v3554_v7, %v2471_v17  ;;  %v3493_v15 = vadd.f32 %v3492_v6, %v3491_v51  ;;  %v3556_v49 = vpop.f32.mrf.mxu1 }
 0x1d3   :  { %v3034_v54 = vpack.c.bf16 %v2631_v5, %v2630_v61  ;;  %v3494_v11 = vpop.f32.mrf.mxu0  ;;  %v3557_v57 = vadd.f32 %v3556_v49, %v3555_v8 }
 0x1d4   :  { %v2474_v34 = vadd.f32 %v3493_v15, %v2377_v35  ;;  %v3558_v36 = vpop.f32.mrf.mxu1  ;;  %v2616_v14 = vmul.f32 0.2, %v2568_v39  ;;  %vm2600_vm10 = vcmp.gt.f32.partialorder %v2568_v39, 0.0 }
 0x1d5   :  { %3054 = vst [vmem:[%s4750_s3 + $0x20] sm:$0xff] %v3034_v54   ;;  %v3495_v12 = vpop.f32.mrf.mxu0 }
 0x1d6   :  { %v2571_v28 = vadd.f32 %v3557_v57, %v2474_v34  ;;  %v3496_v62 = vadd.f32 %v3495_v12, %v3494_v11  ;;  %v3559_v42 = vpop.f32.mrf.mxu1  ;;  %v2632_v26 = vsel %vm2600_vm10, %v2568_v39, %v2616_v14 }
 0x1d7   :  { %v3497_v16 = vpop.f32.mrf.mxu0  ;;  %v3560_v24 = vadd.f32 %v3559_v42, %v3558_v36 }
 0x1d8   :  { %vm2601_vm11 = vcmp.gt.f32.partialorder %v2571_v28, 0.0  ;;  %v2617_v58 = vmul.f32 0.2, %v2571_v28  ;;  %v2479_v48 = vadd.f32 %v3496_v62, %v4660_v44  ;;  %v3561_v27 = vpop.f32.mrf.mxu1 }
 0x1d9   :  { %v3498_v20 = vpop.f32.mrf.mxu0 }
 0x1da   :  { %v2633_v1 = vsel %vm2601_vm11, %v2571_v28, %v2617_v58  ;;  %v2576_v30 = vadd.f32 %v3560_v24, %v2479_v48  ;;  %v3499_v52 = vadd.f32 %v3498_v20, %v3497_v16  ;;  %v3562_v25 = vpop.f32.mrf.mxu1 }
 0x1db   :  { %v3039_v29 = vpack.c.bf16 %v2633_v1, %v2632_v26  ;;  %v3500_v55 = vpop.f32.mrf.mxu0  ;;  %v3563_v31 = vadd.f32 %v3562_v25, %v3561_v27 }
 0x1dc   :  { %v2482_v40 = vadd.f32 %v3499_v52, %v2385_v13  ;;  %v3564_v37 = vpop.f32.mrf.mxu1  ;;  %v2618_v23 = vmul.f32 0.2, %v2576_v30  ;;  %vm2602_vm12 = vcmp.gt.f32.partialorder %v2576_v30, 0.0 }
 0x1dd   :  { %3055 = vst [vmem:[%s4750_s3 + $0x28] sm:$0xff] %v3039_v29   ;;  %v3501_v44 = vpop.f32.mrf.mxu0 }
 0x1de   :  { %v2579_v60 = vadd.f32 %v3563_v31, %v2482_v40  ;;  %v3502_v19 = vadd.f32 %v3501_v44, %v3500_v55  ;;  %v3565_v59 = vpop.f32.mrf.mxu1  ;;  %v2634_v9 = vsel %vm2602_vm12, %v2576_v30, %v2618_v23 }
 0x1df   :  { %v3503_v50 = vpop.f32.mrf.mxu0  ;;  %v3566_v32 = vadd.f32 %v3565_v59, %v3564_v37 }
 0x1e0   :  { %vm2603_vm13 = vcmp.gt.f32.partialorder %v2579_v60, 0.0  ;;  %v2619_v21 = vmul.f32 0.2, %v2579_v60  ;;  %v2487_v46 = vadd.f32 %v3502_v19, %v4754_v22  ;;  %v3567_v47 = vpop.f32.mrf.mxu1 }
 0x1e1   :  { %v3504_v4 = vpop.f32.mrf.mxu0 }
 0x1e2   :  { %v2635_v45 = vsel %vm2603_vm13, %v2579_v60, %v2619_v21  ;;  %v2584_v2 = vadd.f32 %v3566_v32, %v2487_v46  ;;  %v3505_v3 = vadd.f32 %v3504_v4, %v3503_v50  ;;  %v3568_v51 = vpop.f32.mrf.mxu1 }
 0x1e3   :  { %v3044_v43 = vpack.c.bf16 %v2635_v45, %v2634_v9  ;;  %v3569_v7 = vadd.f32 %v3568_v51, %v3567_v47 }
 0x1e4   :  { %v2490_v17 = vadd.f32 %v3505_v3, %v2393_v10  ;;  %v2620_v63 = vmul.f32 0.2, %v2584_v2  ;;  %vm2604_vm14 = vcmp.gt.f32.partialorder %v2584_v2, 0.0 }
 0x1e5   :  { %3056 = vst [vmem:[%s4750_s3 + $0x30] sm:$0xff] %v3044_v43  }
 0x1e6   :  { %v2587_v8 = vadd.f32 %v3569_v7, %v2490_v17  ;;  %v2636_v33 = vsel %vm2604_vm14, %v2584_v2, %v2620_v63 }
 0x1e8   :  { %vm2605_vm15 = vcmp.gt.f32.partialorder %v2587_v8, 0.0  ;;  %v2621_v35 = vmul.f32 0.2, %v2587_v8 }
 0x1ea   :  { %v2637_v6 = vsel %vm2605_vm15, %v2587_v8, %v2621_v35 }
 0x1eb   :  { %v3049_v61 = vpack.c.bf16 %v2637_v6, %v2636_v33 }
 0x1ed   :  { %3057 = vst [vmem:[%s4750_s3 + $0x38] sm:$0xff] %v3049_v61  }

// kernel: discriminator_forward.10
= control target key start
LH: loop header
LB: loop body
LE: loop exit
PB: predicated region body
PF: predicated region fallthrough
CT: control target
= control target key end

     0   :  { %s358_s6 = smov 0   ;;  %s360_s7 = smov 0   ;;  %s395_s0 = inlined_call_operand.vmem [shape: f32[2,16,128], index: 0, kind: input, shape index: {}]   ;;  %s396_s1 = inlined_call_operand.vmem [shape: bf16[2,16,128], index: 1, kind: output, shape index: {}]  }
   0x1   :  { %s362_s8 = smov 0  }
   0x2 LB: > { %s23_s9 = sadd.s32 1, %s342_s7  ;;  %p280_p0 = scmp.ge.s32.totalorder %s346_s8, 1  ;;  %s346_s8 = sphi %s362_s8, %s11_s8   ;;  %s342_s7 = sphi %s360_s7, %s398_s7   ;;  %s338_s6 = sphi %s358_s6, %s397_s6  }
   0x3   : > { %p25_p1 = scmp.ge.s32.totalorder %s23_s9, 2  ;;  %p106_p2 = scmp.lt.s32.totalorder %s346_s8, 3 }
   0x5   : > { %s400_s9 = smov (%p25_p1, %s23_s9), 0  ;;  %p107_p3 = pnand %p280_p0, %p106_p2 }
   0x6   : > { %p132_p4 = scmp.lt.s32.totalorder (!%p107_p3), %s338_s6, 1 }
   0x7   : > { %110 = sbr.rel (%p107_p3) target bundleno = 62 (0x3e), region = 24 }
   0xc   : > { %s402_s6 = smov (!%p132_p4, %s338_s6), 1 }
   0xd   : > { %s289_s10 = sshll.u32 %s402_s6, 4  ;;  %s290_s14 = sshll.u32 %s402_s6, 3 }
   0xe   : > { %s139_s13 = scalar_lea.vmem %s395_s0, %s289_s10  ;;  %s147_s17 = scalar_lea.vmem %s396_s1, %s290_s14 }
   0xf   : > { %v148_v0 = vld [vmem:[%s139_s13] sm:$0xff]  ;;  %v149_v1 = vld [vmem:[%s139_s13 + $0x8] sm:$0xff] }
  0x10   : > { %v150_v2 = vadd.f32 %v149_v1, %v148_v0  ;;  %v158_v3 = vmul.f32 %v148_v0, %v148_v0  ;;  %v159_v4 = vmul.f32 %v149_v1, %v149_v1 }
  0x12   : > { %v151_v5 = vrot.slane %v150_v2, 4  ;;  %v160_v6 = vadd.f32 %v159_v4, %v158_v3 }
  0x14   : > { %v152_v7 = vadd.f32 %v151_v5, %v150_v2  ;;  %v161_v8 = vrot.slane %v160_v6, 4 }
  0x16   : > { %v153_v9 = vrot.slane %v152_v7, 2  ;;  %v162_v10 = vadd.f32 %v161_v8, %v160_v6 }
  0x18   : > { %v154_v11 = vadd.f32 %v153_v9, %v152_v7  ;;  %v163_v12 = vrot.slane %v162_v10, 2 }
  0x1a   : > { %v155_v13 = vrot.slane %v154_v11, 1  ;;  %v164_v14 = vadd.f32 %v163_v12, %v162_v10 }
  0x1c   : > { %v156_v15 = vadd.f32 %v155_v13, %v154_v11  ;;  %v165_v16 = vrot.slane %v164_v14, 1 }
  0x1e   : > { %v157_v17 = vmul.f32 0.0625, %v156_v15  ;;  %v166_v18 = vadd.f32 %v165_v16, %v164_v14 }
  0x20   : > { %v167_v19 = vmul.f32 0.0625, %v166_v18  ;;  %v168_v20 = vmul.f32 %v157_v17, %v157_v17  ;;  %v171_v24 = vsub.f32 %v148_v0, %v157_v17  ;;  %v172_v25 = vsub.f32 %v149_v1, %v157_v17 }
  0x22   : > { %v169_v21 = vsub.f32 %v167_v19, %v168_v20 }
  0x24   : > { %v170_v22 = vmax.f32 %v169_v21, 0.0 }
  0x26   : > { %v173_v23 = vadd.f32 1e-05, %v170_v22 }
  0x28   : > { %322 = vrsqrt.f32 %v173_v23 }
  0x35   : > { %v323_v26 = vpop.eup %322 }
  0x36   : > { %v175_v27 = vmul.f32 %v323_v26, %v171_v24  ;;  %v176_v28 = vmul.f32 %v323_v26, %v172_v25 }
  0x38   : > { %vm177_vm0 = vcmp.gt.f32.partialorder %v175_v27, 0.0  ;;  %vm178_vm1 = vcmp.gt.f32.partialorder %v176_v28, 0.0  ;;  %v179_v29 = vmul.f32 0.2, %v175_v27  ;;  %v180_v30 = vmul.f32 0.2, %v176_v28 }
  0x3a   : > { %v181_v31 = vsel %vm177_vm0, %v175_v27, %v179_v29  ;;  %v182_v32 = vsel %vm178_vm1, %v176_v28, %v180_v30 }
  0x3b   : > { %v296_v33 = vpack.c.bf16 %v182_v32, %v181_v31 }
  0x3d   : > { %297 = vst [vmem:[%s147_s17] sm:$0xff] %v296_v33  }
  0x3e PF: > { %s11_s8 = sadd.s32 1, %s346_s8   ;;  %s397_s6 = smov %s342_s7 }
  0x3f   : > { %p8_p5 = scmp.ge.s32.totalorder %s11_s8, 4   ;;  %s398_s7 = smov %s400_s9 }
  0x41   :  { %10 = sbr.rel (!%p8_p5) target bundleno = 2 (0x2), region = 54 }

// kernel: discriminator_forward.9
= control target key start
LH: loop header
LB: loop body
LE: loop exit
PB: predicated region body
PF: predicated region fallthrough
CT: control target
= control target key end

     0   :  { %s4603_s1 = inlined_call_operand.vmem [shape: bf16[2048,128], index: 1, kind: input, shape index: {}]   ;;  %s4604_s0 = inlined_call_operand.vmem [shape: bf16[128,2048], index: 0, kind: input, shape index: {}]   ;;  %s4605_s2 = inlined_call_operand.vmem [shape: f32[128,128], index: 2, kind: output, shape index: {}]  }
   0x1   :  { %v3368_v0 = vld [vmem:[%s4603_s1 + $0x78] sm:$0xff]   ;;  %v3372_v4 = vld [vmem:[%s4603_s1 + $0x70] sm:$0xff]   ;;  %v3376_v8 = vld [vmem:[%s4603_s1 + $0x68] sm:$0xff]  }
   0x2   :  { %v3369_v1 = vld [vmem:[%s4603_s1 + $0xf8] sm:$0xff]   ;;  %2856 = vmatprep.subr.bf16.mxu0 %v3368_v0  ;;  %v3373_v5 = vld [vmem:[%s4603_s1 + $0xf0] sm:$0xff]   ;;  %v3377_v9 = vld [vmem:[%s4603_s1 + $0xe8] sm:$0xff]  }
   0x3   :  { %v3370_v2 = vld [vmem:[%s4603_s1 + $0x38] sm:$0xff]   ;;  %2920 = vmatprep.subr.bf16.mxu1 %v3369_v1  ;;  %v3374_v6 = vld [vmem:[%s4603_s1 + $0x30] sm:$0xff]   ;;  %v3378_v10 = vld [vmem:[%s4603_s1 + $0x28] sm:$0xff]  }
   0x4   :  { %v3371_v3 = vld [vmem:[%s4603_s1 + $0xb8] sm:$0xff]   ;;  %2857 = vmatpush3.bf16.msra.mxu0 %v3370_v2  ;;  %v3375_v7 = vld [vmem:[%s4603_s1 + $0xb0] sm:$0xff]   ;;  %v3379_v11 = vld [vmem:[%s4603_s1 + $0xa8] sm:$0xff]  }
   0x5   :  { %2921 = vmatpush3.bf16.msra.mxu1 %v3371_v3  ;;  %2858 = vmatprep.subr.bf16.mxu0 %v3372_v4  ;;  %v3380_v12 = vld [vmem:[%s4603_s1 + $0x60] sm:$0xff]   ;;  %v3384_v16 = vld [vmem:[%s4603_s1 + $0x58] sm:$0xff]   ;;  %v3388_v20 = vld [vmem:[%s4603_s1 + $0x50] sm:$0xff]  }
   0x6   :  { %2922 = vmatprep.subr.bf16.mxu1 %v3373_v5  ;;  %v3381_v13 = vld [vmem:[%s4603_s1 + $0xe0] sm:$0xff]   ;;  %v3385_v17 = vld [vmem:[%s4603_s1 + $0xd8] sm:$0xff]   ;;  %v3389_v21 = vld [vmem:[%s4603_s1 + $0xd0] sm:$0xff]  }
   0x7   :  { %v3382_v14 = vld [vmem:[%s4603_s1 + $0x20] sm:$0xff]   ;;  %v3386_v18 = vld [vmem:[%s4603_s1 + $0x18] sm:$0xff]   ;;  %v3390_v22 = vld [vmem:[%s4603_s1 + $0x10] sm:$0xff]  }
   0x8   :  { %2859 = vmatpush3.bf16.msra.mxu0 %v3374_v6  ;;  %v3383_v15 = vld [vmem:[%s4603_s1 + $0xa0] sm:$0xff]   ;;  %v3387_v19 = vld [vmem:[%s4603_s1 + $0x98] sm:$0xff]   ;;  %v3391_v23 = vld [vmem:[%s4603_s1 + $0x90] sm:$0xff]  }
   0x9   :  { %2923 = vmatpush3.bf16.msra.mxu1 %v3375_v7  ;;  %2860 = vmatprep.subr.bf16.mxu0 %v3376_v8  ;;  %v3392_v24 = vld [vmem:[%s4603_s1 + $0x48] sm:$0xff]   ;;  %v3396_v28 = vld [vmem:[%s4603_s1 + $0x40] sm:$0xff]   ;;  %v3400_v40 = vld [vmem:[%s4603_s1 + $0x178] sm:$0xff]  }
   0xa   :  { %2924 = vmatprep.subr.bf16.mxu1 %v3377_v9  ;;  %v3393_v25 = vld [vmem:[%s4603_s1 + $0xc8] sm:$0xff]   ;;  %v3397_v29 = vld [vmem:[%s4603_s1 + $0xc0] sm:$0xff]   ;;  %v3401_v41 = vld [vmem:[%s4603_s1 + $0x138] sm:$0xff]  }
   0xb   :  { %v3394_v26 = vld [vmem:[%s4603_s1 + $0x8] sm:$0xff]   ;;  %v3398_v30 = vld [vmem:[%s4603_s1] sm:$0xff]   ;;  %v3402_v42 = vld [vmem:[%s4603_s1 + $0x1f8] sm:$0xff]  }
   0xc   :  { %2861 = vmatpush3.bf16.msra.mxu0 %v3378_v10  ;;  %v3395_v27 = vld [vmem:[%s4603_s1 + $0x88] sm:$0xff]   ;;  %v3399_v31 = vld [vmem:[%s4603_s1 + $0x80] sm:$0xff]   ;;  %v3403_v43 = vld [vmem:[%s4603_s1 + $0x1b8] sm:$0xff]  }
   0xd   :  { %2925 = vmatpush3.bf16.msra.mxu1 %v3379_v11  ;;  %2862 = vmatprep.subr.bf16.mxu0 %v3380_v12  ;;  %v12_v32 = vld [vmem:[%s4604_s0] sm:$0xff]  ;;  %v13_v34 = vld [vmem:[%s4604_s0 + $0x8] sm:$0xff]  ;;  %v3404_v50 = vld [vmem:[%s4603_s1 + $0x170] sm:$0xff]  }
   0xe   :  { %2926 = vmatprep.subr.bf16.mxu1 %v3381_v13  ;;  %v20_v33 = vld [vmem:[%s4604_s0 + $0x40] sm:$0xff]  ;;  %v21_v37 = vld [vmem:[%s4604_s0 + $0x48] sm:$0xff]  ;;  %v3405_v52 = vld [vmem:[%s4603_s1 + $0x130] sm:$0xff]  }
   0xf   :  { %v2600_v35 = vcombine.low %v12_v32, %v20_v33  ;;  %v2601_v36 = vcombine.high %v12_v32, %v20_v33  ;;  %v2602_v38 = vcombine.low %v13_v34, %v21_v37  ;;  %v2603_v39 = vcombine.high %v13_v34, %v21_v37  ;;  %v28_v44 = vld [vmem:[%s4604_s0 + $0x80] sm:$0xff]  ;;  %v29_v47 = vld [vmem:[%s4604_s0 + $0x88] sm:$0xff]  ;;  %v3406_v54 = vld [vmem:[%s4603_s1 + $0x1f0] sm:$0xff]  }
  0x10   :  { %2863 = vmatpush3.bf16.msra.mxu0 %v3382_v14  ;;  %v36_v45 = vld [vmem:[%s4604_s0 + $0xc0] sm:$0xff]  ;;  %v37_v48 = vld [vmem:[%s4604_s0 + $0xc8] sm:$0xff]  ;;  %v3407_v55 = vld [vmem:[%s4603_s1 + $0x1b0] sm:$0xff]  }
  0x11   :  { %2927 = vmatpush3.bf16.msra.mxu1 %v3383_v15  ;;  %2864 = vmatprep.subr.bf16.mxu0 %v3384_v16  ;;  %v2617_v46 = vcombine.high %v28_v44, %v36_v45  ;;  %v2619_v49 = vcombine.high %v29_v47, %v37_v48  ;;  %v2616_v51 = vcombine.low %v28_v44, %v36_v45  ;;  %v44_v56 = vld [vmem:[%s4604_s0 + $0x100] sm:$0xff]  ;;  %v45_v58 = vld [vmem:[%s4604_s0 + $0x108] sm:$0xff]  ;;  %v3422_v32 = vld [vmem:[%s4603_s1 + $0x1d0] sm:$0xff]  }
  0x12   :  { %2928 = vmatprep.subr.bf16.mxu1 %v3385_v17  ;;  %1836 = vmatprep.mubr.bf16.mxu0 %v2601_v36  ;;  %v2618_v53 = vcombine.low %v29_v47, %v37_v48  ;;  %v52_v57 = vld [vmem:[%s4604_s0 + $0x140] sm:$0xff]  ;;  %v53_v59 = vld [vmem:[%s4604_s0 + $0x148] sm:$0xff]  ;;  %v3423_v33 = vld [vmem:[%s4603_s1 + $0x190] sm:$0xff]  }
  0x13   :  { %1933 = vmatprep.mubr.bf16.mxu1 %v2603_v39  ;;  %v2633_v60 = vcombine.high %v44_v56, %v52_v57  ;;  %v2635_v61 = vcombine.high %v45_v58, %v53_v59  ;;  %v3408_v62 = vld [vmem:[%s4603_s1 + $0x168] sm:$0xff]   ;;  %v2632_v2 = vcombine.low %v44_v56, %v52_v57  ;;  %v60_v3 = vld [vmem:[%s4604_s0 + $0x180] sm:$0xff]  ;;  %v2634_v6 = vcombine.low %v45_v58, %v53_v59  ;;  %v3432_v56 = vld [vmem:[%s4603_s1 + $0x278] sm:$0xff]  }
  0x14   :  { %2865 = vmatpush3.bf16.msra.mxu0 %v3386_v18  ;;  %v3409_v63 = vld [vmem:[%s4603_s1 + $0x128] sm:$0xff]   ;;  %v68_v4 = vld [vmem:[%s4604_s0 + $0x1c0] sm:$0xff]  ;;  %v3416_v18 = vld [vmem:[%s4603_s1 + $0x158] sm:$0xff]  }
  0x15   :  { %2929 = vmatpush3.bf16.msra.mxu1 %v3387_v19  ;;  %2866 = vmatprep.subr.bf16.mxu0 %v3388_v20  ;;  %v3410_v0 = vld [vmem:[%s4603_s1 + $0x1e8] sm:$0xff]   ;;  %v2649_v7 = vcombine.high %v60_v3, %v68_v4  ;;  %v3412_v10 = vld [vmem:[%s4603_s1 + $0x160] sm:$0xff]   ;;  %v2648_v19 = vcombine.low %v60_v3, %v68_v4  ;;  %v3417_v20 = vld [vmem:[%s4603_s1 + $0x118] sm:$0xff]  }
  0x16   :  { %2930 = vmatprep.subr.bf16.mxu1 %v3389_v21  ;;  %v3411_v1 = vld [vmem:[%s4603_s1 + $0x1a8] sm:$0xff]   ;;  %v3413_v11 = vld [vmem:[%s4603_s1 + $0x120] sm:$0xff]   ;;  %v3434_v58 = vld [vmem:[%s4603_s1 + $0x2f8] sm:$0xff]  }
  0x17   :  { %v61_v5 = vld [vmem:[%s4604_s0 + $0x188] sm:$0xff]  ;;  %v3414_v12 = vld [vmem:[%s4603_s1 + $0x1e0] sm:$0xff]   ;;  %v23_v3 = vld [vmem:[%s4604_s0 + $0x58] sm:$0xff] }
  0x18   :  { %2867 = vmatpush3.bf16.msra.mxu0 %v3390_v22  ;;  %v69_v8 = vld [vmem:[%s4604_s0 + $0x1c8] sm:$0xff]  ;;  %v3415_v13 = vld [vmem:[%s4603_s1 + $0x1a0] sm:$0xff]  }
  0x19   :  { %2931 = vmatpush3.bf16.msra.mxu1 %v3391_v23  ;;  %2868 = vmatprep.subr.bf16.mxu0 %v3392_v24  ;;  %v2651_v9 = vcombine.high %v61_v5, %v69_v8  ;;  %v76_v14 = vld [vmem:[%s4604_s0 + $0x200] sm:$0xff]  ;;  %v77_v16 = vld [vmem:[%s4604_s0 + $0x208] sm:$0xff]  ;;  %v2650_v21 = vcombine.low %v61_v5, %v69_v8  ;;  %v3418_v23 = vld [vmem:[%s4603_s1 + $0x1d8] sm:$0xff]  }
  0x1a   :  { %2932 = vmatprep.subr.bf16.mxu1 %v3393_v25  ;;  %v84_v15 = vld [vmem:[%s4604_s0 + $0x240] sm:$0xff]  ;;  %v85_v17 = vld [vmem:[%s4604_s0 + $0x248] sm:$0xff]  ;;  %v3419_v25 = vld [vmem:[%s4603_s1 + $0x198] sm:$0xff]  }
  0x1b   :  { %v2665_v22 = vcombine.high %v76_v14, %v84_v15  ;;  %v2667_v24 = vcombine.high %v77_v16, %v85_v17  ;;  %v2664_v34 = vcombine.low %v76_v14, %v84_v15  ;;  %v3425_v39 = vld [vmem:[%s4603_s1 + $0x108] sm:$0xff]   ;;  %v3429_v48 = vld [vmem:[%s4603_s1 + $0x100] sm:$0xff]   ;;  %v30_v8 = vld [vmem:[%s4604_s0 + $0x90] sm:$0xff] }
  0x1c   :  { %2869 = vmatpush3.bf16.msra.mxu0 %v3394_v26  ;;  %v92_v26 = vld [vmem:[%s4604_s0 + $0x280] sm:$0xff]  ;;  %v109_v44 = vld [vmem:[%s4604_s0 + $0x308] sm:$0xff]  ;;  %v3435_v15 = vld [vmem:[%s4603_s1 + $0x2b8] sm:$0xff]  }
  0x1d   :  { %2933 = vmatpush3.bf16.msra.mxu1 %v3395_v27  ;;  %2870 = vmatprep.subr.bf16.mxu0 %v3396_v28  ;;  %v100_v27 = vld [vmem:[%s4604_s0 + $0x2c0] sm:$0xff]  ;;  %v3420_v28 = vld [vmem:[%s4603_s1 + $0x150] sm:$0xff]   ;;  %v117_v45 = vld [vmem:[%s4604_s0 + $0x348] sm:$0xff] }
  0x1e   :  { %2934 = vmatprep.subr.bf16.mxu1 %v3397_v29  ;;  %v93_v29 = vld [vmem:[%s4604_s0 + $0x288] sm:$0xff]  ;;  %v2681_v36 = vcombine.high %v92_v26, %v100_v27  ;;  %v2680_v47 = vcombine.low %v92_v26, %v100_v27 }
  0x1f   :  { %v125_v57 = vld [vmem:[%s4604_s0 + $0x388] sm:$0xff] }
  0x20   :  { %2871 = vmatpush3.bf16.msra.mxu0 %v3398_v30  ;;  %v101_v30 = vld [vmem:[%s4604_s0 + $0x2c8] sm:$0xff] }
  0x21   :  { %2935 = vmatpush3.bf16.msra.mxu1 %v3399_v31  ;;  %2984 = vmatprep.subr.bf16.mxu0 %v3400_v40  ;;  %v3421_v31 = vld [vmem:[%s4603_s1 + $0x110] sm:$0xff]   ;;  %v2683_v37 = vcombine.high %v93_v29, %v101_v30  ;;  %v3426_v40 = vld [vmem:[%s4603_s1 + $0x1c8] sm:$0xff]  }
  0x22   :  { %3048 = vmatprep.subr.bf16.mxu1 %v3402_v42  ;;  %v116_v42 = vld [vmem:[%s4604_s0 + $0x340] sm:$0xff]  ;;  %v133_v59 = vld [vmem:[%s4604_s0 + $0x3c8] sm:$0xff] }
  0x23   :  { %1837 = vmatmul.mubr.bf16.vlgmr.msra.gmra.mxu0 %v2600_v35  ;;  %v2666_v35 = vcombine.low %v77_v16, %v85_v17  ;;  %v2714_v5 = vcombine.low %v125_v57, %v133_v59  ;;  %v3436_v17 = vld [vmem:[%s4603_s1 + $0x270] sm:$0xff]   ;;  %v3440_v26 = vld [vmem:[%s4603_s1 + $0x268] sm:$0xff]  }
  0x24   :  { %1934 = vmatmul.mubr.bf16.vlgmr.msra.gmra.mxu1 %v2602_v38  ;;  %2985 = vmatpush3.bf16.msra.mxu0 %v3401_v41  ;;  %v3424_v38 = vld [vmem:[%s4603_s1 + $0x148] sm:$0xff]   ;;  %v108_v41 = vld [vmem:[%s4604_s0 + $0x300] sm:$0xff] }
  0x25   :  { %3049 = vmatpush3.bf16.msra.mxu1 %v3403_v43  ;;  %1844 = vmatprep.mubr.bf16.mxu0 %v2617_v46  ;;  %v3427_v43 = vld [vmem:[%s4603_s1 + $0x188] sm:$0xff]   ;;  %v3428_v46 = vld [vmem:[%s4603_s1 + $0x140] sm:$0xff]  }
  0x26   :  { %1941 = vmatprep.mubr.bf16.mxu1 %v2619_v49  ;;  %2986 = vmatprep.subr.bf16.mxu0 %v3404_v50  ;;  %v2682_v49 = vcombine.low %v93_v29, %v101_v30  ;;  %v2697_v50 = vcombine.high %v108_v41, %v116_v42  ;;  %v3442_v27 = vld [vmem:[%s4603_s1 + $0x2e8] sm:$0xff]  }
  0x27   :  { %3050 = vmatprep.subr.bf16.mxu1 %v3406_v54  ;;  %v124_v54 = vld [vmem:[%s4604_s0 + $0x380] sm:$0xff] }
  0x28   :  { %2987 = vmatpush3.bf16.msra.mxu0 %v3405_v52  ;;  %v2699_v52 = vcombine.high %v109_v44, %v117_v45 }
  0x29   :  { %3051 = vmatpush3.bf16.msra.mxu1 %v3407_v55  ;;  %2988 = vmatprep.subr.bf16.mxu0 %v3408_v62  ;;  %v132_v55 = vld [vmem:[%s4604_s0 + $0x3c0] sm:$0xff] }
  0x2a   :  { %3052 = vmatprep.subr.bf16.mxu1 %v3410_v0  ;;  %v2713_v62 = vcombine.high %v124_v54, %v132_v55  ;;  %v14_v0 = vld [vmem:[%s4604_s0 + $0x10] sm:$0xff]  ;;  %v2712_v4 = vcombine.low %v124_v54, %v132_v55  ;;  %v79_v54 = vld [vmem:[%s4604_s0 + $0x218] sm:$0xff] }
  0x2b   :  { %1845 = vmatmul.mubr.bf16.gmra.mxu0 %v2616_v51  ;;  %v3430_v51 = vld [vmem:[%s4603_s1 + $0x1c0] sm:$0xff]   ;;  %v87_v55 = vld [vmem:[%s4604_s0 + $0x258] sm:$0xff] }
  0x2c   :  { %1942 = vmatmul.mubr.bf16.gmra.mxu1 %v2618_v53  ;;  %1852 = vmatprep.mubr.bf16.mxu0 %v2633_v60  ;;  %v3431_v53 = vld [vmem:[%s4603_s1 + $0x180] sm:$0xff]   ;;  %v2696_v60 = vcombine.low %v108_v41, %v116_v42  ;;  %v3448_v42 = vld [vmem:[%s4603_s1 + $0x258] sm:$0xff]  }
  0x2d   :  { %1949 = vmatprep.mubr.bf16.mxu1 %v2635_v61  ;;  %2989 = vmatpush3.bf16.msra.mxu0 %v3409_v63  ;;  %v2698_v61 = vcombine.low %v109_v44, %v117_v45  ;;  %v2715_v63 = vcombine.high %v125_v57, %v133_v59  ;;  %v3447_v41 = vld [vmem:[%s4603_s1 + $0x2a0] sm:$0xff]   ;;  %v3450_v44 = vld [vmem:[%s4603_s1 + $0x2d8] sm:$0xff]   ;;  %v3455_v57 = vld [vmem:[%s4603_s1 + $0x290] sm:$0xff]  }
  0x2e   :  { %3053 = vmatpush3.bf16.msra.mxu1 %v3411_v1  ;;  %2990 = vmatprep.subr.bf16.mxu0 %v3412_v10  ;;  %v22_v1 = vld [vmem:[%s4604_s0 + $0x50] sm:$0xff] }
  0x2f   :  { %3054 = vmatprep.subr.bf16.mxu1 %v3414_v12  ;;  %v2604_v10 = vcombine.low %v14_v0, %v22_v1  ;;  %v31_v12 = vld [vmem:[%s4604_s0 + $0x98] sm:$0xff] }
  0x31   :  { %2991 = vmatpush3.bf16.msra.mxu0 %v3413_v11  ;;  %v3433_v11 = vld [vmem:[%s4603_s1 + $0x238] sm:$0xff]  }
  0x32   :  { %3055 = vmatpush3.bf16.msra.mxu1 %v3415_v13  ;;  %2992 = vmatprep.subr.bf16.mxu0 %v3416_v18  ;;  %v39_v13 = vld [vmem:[%s4604_s0 + $0xd8] sm:$0xff] }
  0x33   :  { %1853 = vmatmul.mubr.bf16.gmra.mxu0 %v2632_v2  ;;  %3056 = vmatprep.subr.bf16.mxu1 %v3418_v23  ;;  %v15_v2 = vld [vmem:[%s4604_s0 + $0x18] sm:$0xff]  ;;  %v2623_v18 = vcombine.high %v31_v12, %v39_v13  ;;  %v54_v23 = vld [vmem:[%s4604_s0 + $0x150] sm:$0xff]  ;;  %v2622_v29 = vcombine.low %v31_v12, %v39_v13  ;;  %v2670_v13 = vcombine.low %v79_v54, %v87_v55 }
  0x34   :  { %1950 = vmatmul.mubr.bf16.gmra.mxu1 %v2634_v6  ;;  %1860 = vmatprep.mubr.bf16.mxu0 %v2649_v7  ;;  %v2605_v6 = vcombine.high %v14_v0, %v22_v1  ;;  %v2607_v7 = vcombine.high %v15_v2, %v23_v3  ;;  %v2606_v14 = vcombine.low %v15_v2, %v23_v3  ;;  %v3457_v0 = vld [vmem:[%s4603_s1 + $0x208] sm:$0xff]   ;;  %v3460_v2 = vld [vmem:[%s4603_s1 + $0x240] sm:$0xff]   ;;  %v94_v3 = vld [vmem:[%s4604_s0 + $0x290] sm:$0xff] }
  0x35   :  { %1957 = vmatprep.mubr.bf16.mxu1 %v2651_v9  ;;  %2993 = vmatpush3.bf16.msra.mxu0 %v3417_v20  ;;  %v38_v9 = vld [vmem:[%s4604_s0 + $0xd0] sm:$0xff]  ;;  %v3459_v1 = vld [vmem:[%s4603_s1 + $0x288] sm:$0xff]   ;;  %v3466_v12 = vld [vmem:[%s4603_s1 + $0x3f8] sm:$0xff]  }
  0x36   :  { %3057 = vmatpush3.bf16.msra.mxu1 %v3419_v25  ;;  %2994 = vmatprep.subr.bf16.mxu0 %v3420_v28  ;;  %v2621_v16 = vcombine.high %v30_v8, %v38_v9  ;;  %v3438_v20 = vld [vmem:[%s4603_s1 + $0x2f0] sm:$0xff]   ;;  %v55_v25 = vld [vmem:[%s4604_s0 + $0x158] sm:$0xff]  ;;  %v2620_v28 = vcombine.low %v30_v8, %v38_v9  ;;  %v3461_v8 = vld [vmem:[%s4603_s1 + $0x200] sm:$0xff]  }
  0x37   :  { %3058 = vmatprep.subr.bf16.mxu1 %v3422_v32  ;;  %v3441_v32 = vld [vmem:[%s4603_s1 + $0x228] sm:$0xff]   ;;  %v3463_v9 = vld [vmem:[%s4603_s1 + $0x280] sm:$0xff]  }
  0x39   :  { %2995 = vmatpush3.bf16.msra.mxu0 %v3421_v31 }
  0x3a   :  { %3059 = vmatpush3.bf16.msra.mxu1 %v3423_v33  ;;  %2996 = vmatprep.subr.bf16.mxu0 %v3424_v38  ;;  %v3443_v33 = vld [vmem:[%s4603_s1 + $0x2a8] sm:$0xff]   ;;  %v63_v38 = vld [vmem:[%s4604_s0 + $0x198] sm:$0xff] }
  0x3b   :  { %1861 = vmatmul.mubr.bf16.gmra.mxu0 %v2648_v19  ;;  %3060 = vmatprep.subr.bf16.mxu1 %v3426_v40  ;;  %v3437_v19 = vld [vmem:[%s4603_s1 + $0x230] sm:$0xff]   ;;  %v3445_v40 = vld [vmem:[%s4603_s1 + $0x220] sm:$0xff]  }
  0x3c   :  { %1958 = vmatmul.mubr.bf16.gmra.mxu1 %v2650_v21  ;;  %1868 = vmatprep.mubr.bf16.mxu0 %v2665_v22  ;;  %v3439_v21 = vld [vmem:[%s4603_s1 + $0x2b0] sm:$0xff]  }
  0x3d   :  { %1965 = vmatprep.mubr.bf16.mxu1 %v2667_v24  ;;  %2997 = vmatpush3.bf16.msra.mxu0 %v3425_v39  ;;  %v46_v22 = vld [vmem:[%s4604_s0 + $0x110] sm:$0xff]  ;;  %v47_v24 = vld [vmem:[%s4604_s0 + $0x118] sm:$0xff] }
  0x3e   :  { %3061 = vmatpush3.bf16.msra.mxu1 %v3427_v43  ;;  %2998 = vmatprep.subr.bf16.mxu0 %v3428_v46  ;;  %v2637_v30 = vcombine.high %v46_v22, %v54_v23  ;;  %v2639_v31 = vcombine.high %v47_v24, %v55_v25  ;;  %v71_v39 = vld [vmem:[%s4604_s0 + $0x1d8] sm:$0xff]  ;;  %v2636_v43 = vcombine.low %v46_v22, %v54_v23 }
  0x3f   :  { %3062 = vmatprep.subr.bf16.mxu1 %v3430_v51  ;;  %v2638_v45 = vcombine.low %v47_v24, %v55_v25  ;;  %v78_v51 = vld [vmem:[%s4604_s0 + $0x210] sm:$0xff] }
  0x40   :  { %v126_v24 = vld [vmem:[%s4604_s0 + $0x390] sm:$0xff] }
  0x41   :  { %2999 = vmatpush3.bf16.msra.mxu0 %v3429_v48  ;;  %v2655_v48 = vcombine.high %v63_v38, %v71_v39  ;;  %v134_v25 = vld [vmem:[%s4604_s0 + $0x3d0] sm:$0xff] }
  0x42   :  { %3063 = vmatpush3.bf16.msra.mxu1 %v3431_v53  ;;  %3112 = vmatprep.subr.bf16.mxu0 %v3432_v56  ;;  %v86_v53 = vld [vmem:[%s4604_s0 + $0x250] sm:$0xff] }
  0x43   :  { %1869 = vmatmul.mubr.bf16.gmra.mxu0 %v2664_v34  ;;  %3176 = vmatprep.subr.bf16.mxu1 %v3434_v58  ;;  %v3444_v34 = vld [vmem:[%s4603_s1 + $0x260] sm:$0xff]   ;;  %v3453_v56 = vld [vmem:[%s4603_s1 + $0x210] sm:$0xff]   ;;  %v3456_v58 = vld [vmem:[%s4603_s1 + $0x248] sm:$0xff]  }
  0x44   :  { %1966 = vmatmul.mubr.bf16.gmra.mxu1 %v2666_v35  ;;  %1876 = vmatprep.mubr.bf16.mxu0 %v2681_v36  ;;  %v62_v35 = vld [vmem:[%s4604_s0 + $0x190] sm:$0xff] }
  0x45   :  { %1973 = vmatprep.mubr.bf16.mxu1 %v2683_v37  ;;  %v70_v36 = vld [vmem:[%s4604_s0 + $0x1d0] sm:$0xff]  ;;  %v3446_v37 = vld [vmem:[%s4603_s1 + $0x2e0] sm:$0xff]  }
  0x46   :  { %v2653_v46 = vcombine.high %v62_v35, %v70_v36  ;;  %v2652_v59 = vcombine.low %v62_v35, %v70_v36  ;;  %v25_v35 = vld [vmem:[%s4604_s0 + $0x68] sm:$0xff]  ;;  %v2716_v36 = vcombine.low %v126_v24, %v134_v25 }
  0x4b   :  { %1877 = vmatmul.mubr.bf16.gmra.mxu0 %v2680_v47  ;;  %v3449_v47 = vld [vmem:[%s4603_s1 + $0x218] sm:$0xff]  }
  0x4c   :  { %1974 = vmatmul.mubr.bf16.gmra.mxu1 %v2682_v49  ;;  %1884 = vmatprep.mubr.bf16.mxu0 %v2697_v50  ;;  %v3451_v49 = vld [vmem:[%s4603_s1 + $0x298] sm:$0xff]   ;;  %v3452_v50 = vld [vmem:[%s4603_s1 + $0x250] sm:$0xff]  }
  0x4d   :  { %1981 = vmatprep.mubr.bf16.mxu1 %v2699_v52  ;;  %v3454_v52 = vld [vmem:[%s4603_s1 + $0x2d0] sm:$0xff]  }
  0x53   :  { %1885 = vmatmul.mubr.bf16.gmra.mxu0 %v2696_v60  ;;  %v3458_v60 = vld [vmem:[%s4603_s1 + $0x2c8] sm:$0xff]  }
  0x54   :  { %1982 = vmatmul.mubr.bf16.gmra.mxu1 %v2698_v61  ;;  %1892 = vmatprep.mubr.bf16.mxu0 %v2713_v62  ;;  %v2654_v61 = vcombine.low %v63_v38, %v71_v39  ;;  %v2669_v62 = vcombine.high %v78_v51, %v86_v53 }
  0x55   :  { %1989 = vmatprep.mubr.bf16.mxu1 %v2715_v63  ;;  %v2671_v63 = vcombine.high %v79_v54, %v87_v55  ;;  %v48_v54 = vld [vmem:[%s4604_s0 + $0x120] sm:$0xff] }
  0x56   :  { %v56_v55 = vld [vmem:[%s4604_s0 + $0x160] sm:$0xff] }
  0x5b   :  { %1893 = vmatmul.mubr.bf16.gmra.mxu0 %v2712_v4  ;;  %v102_v4 = vld [vmem:[%s4604_s0 + $0x2d0] sm:$0xff] }
  0x5c   :  { %1990 = vmatmul.mubr.bf16.gmra.mxu1 %v2714_v5  ;;  %2030 = vmatprep.mubr.bf16.mxu0 %v2605_v6  ;;  %v3462_v5 = vld [vmem:[%s4603_s1 + $0x2c0] sm:$0xff]   ;;  %v95_v6 = vld [vmem:[%s4604_s0 + $0x298] sm:$0xff] }
  0x5d   :  { %2127 = vmatprep.mubr.bf16.mxu1 %v2607_v7  ;;  %v103_v7 = vld [vmem:[%s4604_s0 + $0x2d8] sm:$0xff] }
  0x63   :  { %2031 = vmatmul.mubr.bf16.vlgmr.msra.gmra.mxu0 %v2604_v10  ;;  %v3464_v10 = vld [vmem:[%s4603_s1 + $0x378] sm:$0xff]  }
  0x64   :  { %2128 = vmatmul.mubr.bf16.vlgmr.msra.gmra.mxu1 %v2606_v14  ;;  %3113 = vmatpush3.bf16.msra.mxu0 %v3433_v11  ;;  %v2668_v11 = vcombine.low %v78_v51, %v86_v53  ;;  %v2685_v14 = vcombine.high %v94_v3, %v102_v4  ;;  %v3470_v51 = vld [vmem:[%s4603_s1 + $0x3f0] sm:$0xff]  }
  0x65   :  { %3177 = vmatpush3.bf16.msra.mxu1 %v3435_v15  ;;  %2038 = vmatprep.mubr.bf16.mxu0 %v2621_v16  ;;  %v2687_v15 = vcombine.high %v95_v6, %v103_v7  ;;  %v110_v16 = vld [vmem:[%s4604_s0 + $0x310] sm:$0xff] }
  0x66   :  { %2135 = vmatprep.mubr.bf16.mxu1 %v2623_v18  ;;  %3114 = vmatprep.subr.bf16.mxu0 %v3436_v17  ;;  %v118_v17 = vld [vmem:[%s4604_s0 + $0x350] sm:$0xff]  ;;  %v111_v18 = vld [vmem:[%s4604_s0 + $0x318] sm:$0xff] }
  0x67   :  { %3178 = vmatprep.subr.bf16.mxu1 %v3438_v20  ;;  %v2684_v20 = vcombine.low %v94_v3, %v102_v4  ;;  %v2701_v22 = vcombine.high %v110_v16, %v118_v17  ;;  %v3471_v53 = vld [vmem:[%s4603_s1 + $0x3b0] sm:$0xff]   ;;  %v3478_v3 = vld [vmem:[%s4603_s1 + $0x3e0] sm:$0xff]  }
  0x68   :  { %3115 = vmatpush3.bf16.msra.mxu0 %v3437_v19  ;;  %v119_v19 = vld [vmem:[%s4604_s0 + $0x358] sm:$0xff]  ;;  %v64_v4 = vld [vmem:[%s4604_s0 + $0x1a0] sm:$0xff] }
  0x69   :  { %3179 = vmatpush3.bf16.msra.mxu1 %v3439_v21  ;;  %3116 = vmatprep.subr.bf16.mxu0 %v3440_v26  ;;  %v2686_v21 = vcombine.low %v95_v6, %v103_v7  ;;  %v2703_v23 = vcombine.high %v111_v18, %v119_v19  ;;  %v127_v26 = vld [vmem:[%s4604_s0 + $0x398] sm:$0xff]  ;;  %v65_v6 = vld [vmem:[%s4604_s0 + $0x1a8] sm:$0xff]  ;;  %v3477_v7 = vld [vmem:[%s4603_s1 + $0x320] sm:$0xff]  }
  0x6a   :  { %3180 = vmatprep.subr.bf16.mxu1 %v3442_v27  ;;  %v135_v27 = vld [vmem:[%s4604_s0 + $0x3d8] sm:$0xff] }
  0x6b   :  { %2039 = vmatmul.mubr.bf16.gmra.mxu0 %v2620_v28  ;;  %v2700_v28 = vcombine.low %v110_v16, %v118_v17  ;;  %v3481_v16 = vld [vmem:[%s4603_s1 + $0x318] sm:$0xff]  }
  0x6c   :  { %2136 = vmatmul.mubr.bf16.gmra.mxu1 %v2622_v29  ;;  %2046 = vmatprep.mubr.bf16.mxu0 %v2637_v30  ;;  %v2702_v29 = vcombine.low %v111_v18, %v119_v19  ;;  %v2717_v30 = vcombine.high %v126_v24, %v134_v25  ;;  %v3483_v17 = vld [vmem:[%s4603_s1 + $0x398] sm:$0xff]   ;;  %v3484_v18 = vld [vmem:[%s4603_s1 + $0x350] sm:$0xff]   ;;  %v89_v24 = vld [vmem:[%s4604_s0 + $0x268] sm:$0xff] }
  0x6d   :  { %2143 = vmatprep.mubr.bf16.mxu1 %v2639_v31  ;;  %3117 = vmatpush3.bf16.msra.mxu0 %v3441_v32  ;;  %v2719_v31 = vcombine.high %v127_v26, %v135_v27  ;;  %v16_v32 = vld [vmem:[%s4604_s0 + $0x20] sm:$0xff]  ;;  %v3486_v19 = vld [vmem:[%s4603_s1 + $0x3d0] sm:$0xff]  }
  0x6e   :  { %3181 = vmatpush3.bf16.msra.mxu1 %v3443_v33  ;;  %3118 = vmatprep.subr.bf16.mxu0 %v3444_v34  ;;  %v24_v33 = vld [vmem:[%s4604_s0 + $0x60] sm:$0xff]  ;;  %v17_v34 = vld [vmem:[%s4604_s0 + $0x28] sm:$0xff]  ;;  %v3487_v25 = vld [vmem:[%s4603_s1 + $0x390] sm:$0xff]  }
  0x6f   :  { %3182 = vmatprep.subr.bf16.mxu1 %v3446_v37  ;;  %v2718_v37 = vcombine.low %v127_v26, %v135_v27  ;;  %v2609_v38 = vcombine.high %v16_v32, %v24_v33  ;;  %v2611_v39 = vcombine.high %v17_v34, %v25_v35  ;;  %v3488_v26 = vld [vmem:[%s4603_s1 + $0x348] sm:$0xff]  }
  0x71   :  { %3119 = vmatpush3.bf16.msra.mxu0 %v3445_v40  ;;  %v32_v40 = vld [vmem:[%s4604_s0 + $0xa0] sm:$0xff] }
  0x72   :  { %3183 = vmatpush3.bf16.msra.mxu1 %v3447_v41  ;;  %3120 = vmatprep.subr.bf16.mxu0 %v3448_v42  ;;  %v40_v41 = vld [vmem:[%s4604_s0 + $0xe0] sm:$0xff]  ;;  %v2608_v42 = vcombine.low %v16_v32, %v24_v33  ;;  %v3489_v32 = vld [vmem:[%s4603_s1 + $0x308] sm:$0xff]  }
  0x73   :  { %2047 = vmatmul.mubr.bf16.gmra.mxu0 %v2636_v43  ;;  %3184 = vmatprep.subr.bf16.mxu1 %v3450_v44  ;;  %v33_v43 = vld [vmem:[%s4604_s0 + $0xa8] sm:$0xff] }
  0x74   :  { %2144 = vmatmul.mubr.bf16.gmra.mxu1 %v2638_v45  ;;  %2054 = vmatprep.mubr.bf16.mxu0 %v2653_v46  ;;  %v41_v44 = vld [vmem:[%s4604_s0 + $0xe8] sm:$0xff]  ;;  %v2610_v45 = vcombine.low %v17_v34, %v25_v35  ;;  %v3465_v46 = vld [vmem:[%s4603_s1 + $0x338] sm:$0xff]   ;;  %v3492_v34 = vld [vmem:[%s4603_s1 + $0x340] sm:$0xff]  }
  0x75   :  { %2151 = vmatprep.mubr.bf16.mxu1 %v2655_v48  ;;  %3121 = vmatpush3.bf16.msra.mxu0 %v3449_v47  ;;  %v3467_v47 = vld [vmem:[%s4603_s1 + $0x3b8] sm:$0xff]   ;;  %v2625_v48 = vcombine.high %v32_v40, %v40_v41  ;;  %v3491_v33 = vld [vmem:[%s4603_s1 + $0x388] sm:$0xff]   ;;  %v3494_v35 = vld [vmem:[%s4603_s1 + $0x3c0] sm:$0xff]  }
  0x76   :  { %3185 = vmatpush3.bf16.msra.mxu1 %v3451_v49  ;;  %3122 = vmatprep.subr.bf16.mxu0 %v3452_v50  ;;  %v2627_v49 = vcombine.high %v33_v43, %v41_v44  ;;  %v3468_v50 = vld [vmem:[%s4603_s1 + $0x370] sm:$0xff]  }
  0x77   :  { %3186 = vmatprep.subr.bf16.mxu1 %v3454_v52  ;;  %v3469_v52 = vld [vmem:[%s4603_s1 + $0x330] sm:$0xff]  }
  0x79   :  { %3123 = vmatpush3.bf16.msra.mxu0 %v3453_v56  ;;  %v3472_v56 = vld [vmem:[%s4603_s1 + $0x368] sm:$0xff]  }
  0x7a   :  { %3187 = vmatpush3.bf16.msra.mxu1 %v3455_v57  ;;  %3124 = vmatprep.subr.bf16.mxu0 %v3456_v58  ;;  %v49_v57 = vld [vmem:[%s4604_s0 + $0x128] sm:$0xff] }
  0x7b   :  { %2055 = vmatmul.mubr.bf16.gmra.mxu0 %v2652_v59  ;;  %3188 = vmatprep.subr.bf16.mxu1 %v3458_v60  ;;  %v57_v58 = vld [vmem:[%s4604_s0 + $0x168] sm:$0xff]  ;;  %v2624_v60 = vcombine.low %v32_v40, %v40_v41  ;;  %v3495_v41 = vld [vmem:[%s4603_s1 + $0x380] sm:$0xff]  }
  0x7c   :  { %2152 = vmatmul.mubr.bf16.gmra.mxu1 %v2654_v61  ;;  %2062 = vmatprep.mubr.bf16.mxu0 %v2669_v62  ;;  %v3474_v59 = vld [vmem:[%s4603_s1 + $0x3e8] sm:$0xff]   ;;  %v2626_v61 = vcombine.low %v33_v43, %v41_v44  ;;  %v2641_v62 = vcombine.high %v48_v54, %v56_v55 }
  0x7d   :  { %2159 = vmatprep.mubr.bf16.mxu1 %v2671_v63  ;;  %3125 = vmatpush3.bf16.msra.mxu0 %v3457_v0  ;;  %v2643_v63 = vcombine.high %v49_v57, %v57_v58  ;;  %v3473_v0 = vld [vmem:[%s4603_s1 + $0x328] sm:$0xff]  }
  0x7e   :  { %3189 = vmatpush3.bf16.msra.mxu1 %v3459_v1  ;;  %3126 = vmatprep.subr.bf16.mxu0 %v3460_v2  ;;  %v3475_v1 = vld [vmem:[%s4603_s1 + $0x3a8] sm:$0xff]   ;;  %v3476_v2 = vld [vmem:[%s4603_s1 + $0x360] sm:$0xff]  }
  0x7f   :  { %3190 = vmatprep.subr.bf16.mxu1 %v3462_v5  ;;  %v72_v5 = vld [vmem:[%s4604_s0 + $0x1e0] sm:$0xff]  ;;  %v105_v40 = vld [vmem:[%s4604_s0 + $0x2e8] sm:$0xff] }
  0x80   :  { %v2656_v27 = vcombine.low %v64_v4, %v72_v5 }
  0x81   :  { %3127 = vmatpush3.bf16.msra.mxu0 %v3461_v8  ;;  %v73_v8 = vld [vmem:[%s4604_s0 + $0x1e8] sm:$0xff] }
  0x82   :  { %3191 = vmatpush3.bf16.msra.mxu1 %v3463_v9  ;;  %3240 = vmatprep.subr.bf16.mxu0 %v3464_v10  ;;  %v3479_v9 = vld [vmem:[%s4603_s1 + $0x3a0] sm:$0xff]   ;;  %v3480_v10 = vld [vmem:[%s4603_s1 + $0x358] sm:$0xff]  }
  0x83   :  { %2063 = vmatmul.mubr.bf16.gmra.mxu0 %v2668_v11  ;;  %3304 = vmatprep.subr.bf16.mxu1 %v3466_v12  ;;  %v2640_v11 = vcombine.low %v48_v54, %v56_v55  ;;  %v3482_v12 = vld [vmem:[%s4603_s1 + $0x3d8] sm:$0xff]   ;;  %v128_v54 = vld [vmem:[%s4604_s0 + $0x3a0] sm:$0xff] }
  0x84   :  { %2160 = vmatmul.mubr.bf16.gmra.mxu1 %v2670_v13  ;;  %2070 = vmatprep.mubr.bf16.mxu0 %v2685_v14  ;;  %v2642_v13 = vcombine.low %v49_v57, %v57_v58  ;;  %v2657_v14 = vcombine.high %v64_v4, %v72_v5  ;;  %v136_v55 = vld [vmem:[%s4604_s0 + $0x3e0] sm:$0xff]  ;;  %v137_v57 = vld [vmem:[%s4604_s0 + $0x3e8] sm:$0xff] }
  0x85   :  { %2167 = vmatprep.mubr.bf16.mxu1 %v2687_v15  ;;  %v2659_v15 = vcombine.high %v65_v6, %v73_v8 }
  0x8b   :  { %2071 = vmatmul.mubr.bf16.gmra.mxu0 %v2684_v20  ;;  %v80_v20 = vld [vmem:[%s4604_s0 + $0x220] sm:$0xff] }
  0x8c   :  { %2168 = vmatmul.mubr.bf16.gmra.mxu1 %v2686_v21  ;;  %2078 = vmatprep.mubr.bf16.mxu0 %v2701_v22  ;;  %v88_v21 = vld [vmem:[%s4604_s0 + $0x260] sm:$0xff]  ;;  %v81_v22 = vld [vmem:[%s4604_s0 + $0x228] sm:$0xff] }
  0x8d   :  { %2175 = vmatprep.mubr.bf16.mxu1 %v2703_v23  ;;  %v3485_v23 = vld [vmem:[%s4603_s1 + $0x310] sm:$0xff]   ;;  %v2674_v43 = vcombine.low %v81_v22, %v89_v24 }
  0x93   :  { %2079 = vmatmul.mubr.bf16.gmra.mxu0 %v2700_v28  ;;  %v3490_v28 = vld [vmem:[%s4603_s1 + $0x3c8] sm:$0xff]  }
  0x94   :  { %2176 = vmatmul.mubr.bf16.gmra.mxu1 %v2702_v29  ;;  %2086 = vmatprep.mubr.bf16.mxu0 %v2717_v30  ;;  %v2658_v29 = vcombine.low %v65_v6, %v73_v8  ;;  %v2673_v30 = vcombine.high %v80_v20, %v88_v21  ;;  %v34_v6 = vld [vmem:[%s4604_s0 + $0xb0] sm:$0xff]  ;;  %v35_v8 = vld [vmem:[%s4604_s0 + $0xb8] sm:$0xff] }
  0x95   :  { %2183 = vmatprep.mubr.bf16.mxu1 %v2719_v31  ;;  %v2675_v31 = vcombine.high %v81_v22, %v89_v24  ;;  %v59_v22 = vld [vmem:[%s4604_s0 + $0x178] sm:$0xff] }
  0x9b   :  { %2087 = vmatmul.mubr.bf16.gmra.mxu0 %v2716_v36  ;;  %v96_v36 = vld [vmem:[%s4604_s0 + $0x2a0] sm:$0xff] }
  0x9c   :  { %2184 = vmatmul.mubr.bf16.gmra.mxu1 %v2718_v37  ;;  %2224 = vmatprep.mubr.bf16.mxu0 %v2609_v38  ;;  %v104_v37 = vld [vmem:[%s4604_s0 + $0x2e0] sm:$0xff] }
  0x9d   :  { %2321 = vmatprep.mubr.bf16.mxu1 %v2611_v39  ;;  %v3493_v38 = vld [vmem:[%s4603_s1 + $0x300] sm:$0xff]   ;;  %v97_v39 = vld [vmem:[%s4604_s0 + $0x2a8] sm:$0xff]  ;;  %v2689_v44 = vcombine.high %v96_v36, %v104_v37 }
  0xa3   :  { %2225 = vmatmul.mubr.bf16.vlgmr.msra.gmra.mxu0 %v2608_v42  ;;  %v2672_v42 = vcombine.low %v80_v20, %v88_v21  ;;  %v51_v21 = vld [vmem:[%s4604_s0 + $0x138] sm:$0xff] }
  0xa4   :  { %2322 = vmatmul.mubr.bf16.vlgmr.msra.gmra.mxu1 %v2610_v45  ;;  %3241 = vmatpush3.bf16.msra.mxu0 %v3465_v46  ;;  %v2691_v45 = vcombine.high %v97_v39, %v105_v40  ;;  %v112_v46 = vld [vmem:[%s4604_s0 + $0x320] sm:$0xff] }
  0xa5   :  { %3305 = vmatpush3.bf16.msra.mxu1 %v3467_v47  ;;  %2232 = vmatprep.mubr.bf16.mxu0 %v2625_v48  ;;  %v120_v47 = vld [vmem:[%s4604_s0 + $0x360] sm:$0xff]  ;;  %v113_v48 = vld [vmem:[%s4604_s0 + $0x328] sm:$0xff] }
  0xa6   :  { %2329 = vmatprep.mubr.bf16.mxu1 %v2627_v49  ;;  %3242 = vmatprep.subr.bf16.mxu0 %v3468_v50  ;;  %v121_v49 = vld [vmem:[%s4604_s0 + $0x368] sm:$0xff]  ;;  %v2688_v50 = vcombine.low %v96_v36, %v104_v37  ;;  %v2704_v58 = vcombine.low %v112_v46, %v120_v47 }
  0xa7   :  { %3306 = vmatprep.subr.bf16.mxu1 %v3470_v51  ;;  %v2690_v51 = vcombine.low %v97_v39, %v105_v40  ;;  %v66_v39 = vld [vmem:[%s4604_s0 + $0x1b0] sm:$0xff] }
  0xa8   :  { %3243 = vmatpush3.bf16.msra.mxu0 %v3469_v52  ;;  %v2705_v52 = vcombine.high %v112_v46, %v120_v47  ;;  %v74_v40 = vld [vmem:[%s4604_s0 + $0x1f0] sm:$0xff] }
  0xa9   :  { %3307 = vmatpush3.bf16.msra.mxu1 %v3471_v53  ;;  %3244 = vmatprep.subr.bf16.mxu0 %v3472_v56  ;;  %v2707_v53 = vcombine.high %v113_v48, %v121_v49  ;;  %v129_v56 = vld [vmem:[%s4604_s0 + $0x3a8] sm:$0xff] }
  0xaa   :  { %3308 = vmatprep.subr.bf16.mxu1 %v3474_v59  ;;  %v2706_v59 = vcombine.low %v113_v48, %v121_v49  ;;  %v2646_v49 = vcombine.low %v51_v21, %v59_v22 }
  0xab   :  { %2233 = vmatmul.mubr.bf16.gmra.mxu0 %v2624_v60  ;;  %v2721_v60 = vcombine.high %v128_v54, %v136_v55 }
  0xac   :  { %2330 = vmatmul.mubr.bf16.gmra.mxu1 %v2626_v61  ;;  %2240 = vmatprep.mubr.bf16.mxu0 %v2641_v62  ;;  %v2723_v61 = vcombine.high %v129_v56, %v137_v57  ;;  %v18_v62 = vld [vmem:[%s4604_s0 + $0x30] sm:$0xff] }
  0xad   :  { %2337 = vmatprep.mubr.bf16.mxu1 %v2643_v63  ;;  %3245 = vmatpush3.bf16.msra.mxu0 %v3473_v0  ;;  %v26_v63 = vld [vmem:[%s4604_s0 + $0x70] sm:$0xff]  ;;  %v19_v0 = vld [vmem:[%s4604_s0 + $0x38] sm:$0xff] }
  0xae   :  { %3309 = vmatpush3.bf16.msra.mxu1 %v3475_v1  ;;  %3246 = vmatprep.subr.bf16.mxu0 %v3476_v2  ;;  %v27_v1 = vld [vmem:[%s4604_s0 + $0x78] sm:$0xff]  ;;  %v2720_v2 = vcombine.low %v128_v54, %v136_v55  ;;  %v2613_v4 = vcombine.high %v18_v62, %v26_v63 }
  0xaf   :  { %3310 = vmatprep.subr.bf16.mxu1 %v3478_v3  ;;  %v2722_v3 = vcombine.low %v129_v56, %v137_v57  ;;  %v2615_v5 = vcombine.high %v19_v0, %v27_v1 }
  0xb1   :  { %3247 = vmatpush3.bf16.msra.mxu0 %v3477_v7  ;;  %v42_v7 = vld [vmem:[%s4604_s0 + $0xf0] sm:$0xff] }
  0xb2   :  { %3311 = vmatpush3.bf16.msra.mxu1 %v3479_v9  ;;  %3248 = vmatprep.subr.bf16.mxu0 %v3480_v10  ;;  %v43_v9 = vld [vmem:[%s4604_s0 + $0xf8] sm:$0xff]  ;;  %v2612_v10 = vcombine.low %v18_v62, %v26_v63  ;;  %v90_v62 = vld [vmem:[%s4604_s0 + $0x270] sm:$0xff] }
  0xb3   :  { %2241 = vmatmul.mubr.bf16.gmra.mxu0 %v2640_v11  ;;  %3312 = vmatprep.subr.bf16.mxu1 %v3482_v12  ;;  %v2614_v11 = vcombine.low %v19_v0, %v27_v1  ;;  %v2629_v12 = vcombine.high %v34_v6, %v42_v7  ;;  %v83_v1 = vld [vmem:[%s4604_s0 + $0x238] sm:$0xff] }
  0xb4   :  { %2338 = vmatmul.mubr.bf16.gmra.mxu1 %v2642_v13  ;;  %2248 = vmatprep.mubr.bf16.mxu0 %v2657_v14  ;;  %v2631_v13 = vcombine.high %v35_v8, %v43_v9 }
  0xb5   :  { %2345 = vmatprep.mubr.bf16.mxu1 %v2659_v15  ;;  %3249 = vmatpush3.bf16.msra.mxu0 %v3481_v16 }
  0xb6   :  { %3313 = vmatpush3.bf16.msra.mxu1 %v3483_v17  ;;  %3250 = vmatprep.subr.bf16.mxu0 %v3484_v18  ;;  %v50_v17 = vld [vmem:[%s4604_s0 + $0x130] sm:$0xff] }
  0xb7   :  { %3314 = vmatprep.subr.bf16.mxu1 %v3486_v19  ;;  %v58_v18 = vld [vmem:[%s4604_s0 + $0x170] sm:$0xff] }
  0xb8   :  { %v2644_v47 = vcombine.low %v50_v17, %v58_v18 }
  0xb9   :  { %3251 = vmatpush3.bf16.msra.mxu0 %v3485_v23 }
  0xba   :  { %3315 = vmatpush3.bf16.msra.mxu1 %v3487_v25  ;;  %3252 = vmatprep.subr.bf16.mxu0 %v3488_v26  ;;  %v2628_v25 = vcombine.low %v34_v6, %v42_v7 }
  0xbb   :  { %2249 = vmatmul.mubr.bf16.gmra.mxu0 %v2656_v27  ;;  %3316 = vmatprep.subr.bf16.mxu1 %v3490_v28  ;;  %v2630_v27 = vcombine.low %v35_v8, %v43_v9  ;;  %v2645_v28 = vcombine.high %v50_v17, %v58_v18 }
  0xbc   :  { %2346 = vmatmul.mubr.bf16.gmra.mxu1 %v2658_v29  ;;  %2256 = vmatprep.mubr.bf16.mxu0 %v2673_v30 }
  0xbd   :  { %2353 = vmatprep.mubr.bf16.mxu1 %v2675_v31  ;;  %3253 = vmatpush3.bf16.msra.mxu0 %v3489_v32  ;;  %v2647_v31 = vcombine.high %v51_v21, %v59_v22 }
  0xbe   :  { %3317 = vmatpush3.bf16.msra.mxu1 %v3491_v33  ;;  %3254 = vmatprep.subr.bf16.mxu0 %v3492_v34 }
  0xbf   :  { %3318 = vmatprep.subr.bf16.mxu1 %v3494_v35 }
  0xc1   :  { %3255 = vmatpush3.bf16.msra.mxu0 %v3493_v38 }
  0xc2   :  { %3319 = vmatpush3.bf16.msra.mxu1 %v3495_v41 }
  0xc3   :  { %2257 = vmatmul.mubr.bf16.gmra.mxu0 %v2672_v42 }
  0xc4   :  { %2354 = vmatmul.mubr.bf16.gmra.mxu1 %v2674_v43  ;;  %2264 = vmatprep.mubr.bf16.mxu0 %v2689_v44  ;;  %v67_v43 = vld [vmem:[%s4604_s0 + $0x1b8] sm:$0xff] }
  0xc5   :  { %2361 = vmatprep.mubr.bf16.mxu1 %v2691_v45  ;;  %v75_v44 = vld [vmem:[%s4604_s0 + $0x1f8] sm:$0xff] }
  0xc6   :  { %v2662_v7 = vcombine.low %v67_v43, %v75_v44 }
  0xcb   :  { %2265 = vmatmul.mubr.bf16.gmra.mxu0 %v2688_v50  ;;  %v2661_v50 = vcombine.high %v66_v39, %v74_v40 }
  0xcc   :  { %2362 = vmatmul.mubr.bf16.gmra.mxu1 %v2690_v51  ;;  %2272 = vmatprep.mubr.bf16.mxu0 %v2705_v52 }
  0xcd   :  { %2369 = vmatprep.mubr.bf16.mxu1 %v2707_v53  ;;  %v2663_v53 = vcombine.high %v67_v43, %v75_v44  ;;  %v114_v43 = vld [vmem:[%s4604_s0 + $0x330] sm:$0xff] }
  0xce   :  { %v122_v44 = vld [vmem:[%s4604_s0 + $0x370] sm:$0xff] }
  0xd3   :  { %2273 = vmatmul.mubr.bf16.gmra.mxu0 %v2704_v58 }
  0xd4   :  { %2370 = vmatmul.mubr.bf16.gmra.mxu1 %v2706_v59  ;;  %2280 = vmatprep.mubr.bf16.mxu0 %v2721_v60 }
  0xd5   :  { %2377 = vmatprep.mubr.bf16.mxu1 %v2723_v61  ;;  %v82_v61 = vld [vmem:[%s4604_s0 + $0x230] sm:$0xff] }
  0xd6   :  { %v2677_v8 = vcombine.high %v82_v61, %v90_v62 }
  0xdb   :  { %2281 = vmatmul.mubr.bf16.gmra.mxu0 %v2720_v2  ;;  %v91_v2 = vld [vmem:[%s4604_s0 + $0x278] sm:$0xff] }
  0xdc   :  { %2378 = vmatmul.mubr.bf16.gmra.mxu1 %v2722_v3  ;;  %2418 = vmatprep.mubr.bf16.mxu0 %v2613_v4 }
  0xdd   :  { %2515 = vmatprep.mubr.bf16.mxu1 %v2615_v5  ;;  %v2660_v5 = vcombine.low %v66_v39, %v74_v40 }
  0xe3   :  { %v2872_v14 = vpop.f32.mrf.mxu0  ;;  %2419 = vmatmul.mubr.bf16.vlgmr.msra.gmra.mxu0 %v2612_v10 }
  0xe4   :  { %v2936_v15 = vpop.f32.mrf.mxu1  ;;  %2516 = vmatmul.mubr.bf16.vlgmr.msra.gmra.mxu1 %v2614_v11  ;;  %2426 = vmatprep.mubr.bf16.mxu0 %v2629_v12  ;;  %v2679_v11 = vcombine.high %v83_v1, %v91_v2 }
  0xe5   :  { %v2873_v16 = vpop.f32.mrf.mxu0  ;;  %2523 = vmatprep.mubr.bf16.mxu1 %v2631_v13 }
  0xe6   :  { %v2874_v19 = vadd.f32 %v2873_v16, %v2872_v14  ;;  %v2937_v20 = vpop.f32.mrf.mxu1 }
  0xe7   :  { %v2938_v23 = vadd.f32 %v2937_v20, %v2936_v15  ;;  %v2875_v24 = vpop.f32.mrf.mxu0  ;;  %v106_v20 = vld [vmem:[%s4604_s0 + $0x2f0] sm:$0xff] }
  0xe8   :  { %v2939_v26 = vpop.f32.mrf.mxu1 }
  0xe9   :  { %v4219_v29 = vadd.f32 %v2938_v23, %v2874_v19  ;;  %v2876_v30 = vpop.f32.mrf.mxu0  ;;  %v98_v19 = vld [vmem:[%s4604_s0 + $0x2b0] sm:$0xff]  ;;  %v99_v23 = vld [vmem:[%s4604_s0 + $0x2b8] sm:$0xff] }
  0xea   :  { %v2877_v32 = vadd.f32 %v2876_v30, %v2875_v24  ;;  %v2940_v33 = vpop.f32.mrf.mxu1  ;;  %v107_v24 = vld [vmem:[%s4604_s0 + $0x2f8] sm:$0xff]  ;;  %v2678_v30 = vcombine.low %v83_v1, %v91_v2 }
  0xeb   :  { %v2941_v34 = vadd.f32 %v2940_v33, %v2939_v26  ;;  %v2878_v35 = vpop.f32.mrf.mxu0  ;;  %2427 = vmatmul.mubr.bf16.gmra.mxu0 %v2628_v25 }
  0xec   :  { %v2942_v36 = vpop.f32.mrf.mxu1  ;;  %2524 = vmatmul.mubr.bf16.gmra.mxu1 %v2630_v27  ;;  %2434 = vmatprep.mubr.bf16.mxu0 %v2645_v28  ;;  %v2676_v27 = vcombine.low %v82_v61, %v90_v62 }
  0xed   :  { %v4221_v37 = vadd.f32 %v2941_v34, %v2877_v32  ;;  %v2879_v38 = vpop.f32.mrf.mxu0  ;;  %2531 = vmatprep.mubr.bf16.mxu1 %v2647_v31  ;;  %v2693_v31 = vcombine.high %v98_v19, %v106_v20  ;;  %v2695_v34 = vcombine.high %v99_v23, %v107_v24 }
  0xee   :  { %v2880_v41 = vadd.f32 %v2879_v38, %v2878_v35  ;;  %v2943_v42 = vpop.f32.mrf.mxu1 }
  0xef   :  { %v2944_v45 = vadd.f32 %v2943_v42, %v2942_v36  ;;  %v2881_v46 = vpop.f32.mrf.mxu0 }
  0xf0   :  { %v2945_v48 = vpop.f32.mrf.mxu1 }
  0xf1   :  { %v4235_v51 = vadd.f32 %v2944_v45, %v2880_v41  ;;  %v2882_v52 = vpop.f32.mrf.mxu0 }
  0xf2   :  { %v2883_v54 = vadd.f32 %v2882_v52, %v2881_v46  ;;  %v2946_v55 = vpop.f32.mrf.mxu1  ;;  %v2692_v52 = vcombine.low %v98_v19, %v106_v20 }
  0xf3   :  { %v2947_v56 = vadd.f32 %v2946_v55, %v2945_v48  ;;  %v2884_v57 = vpop.f32.mrf.mxu0  ;;  %2435 = vmatmul.mubr.bf16.gmra.mxu0 %v2644_v47  ;;  %v115_v47 = vld [vmem:[%s4604_s0 + $0x338] sm:$0xff]  ;;  %v2709_v55 = vcombine.high %v114_v43, %v122_v44 }
  0xf4   :  { %v2948_v58 = vpop.f32.mrf.mxu1  ;;  %2532 = vmatmul.mubr.bf16.gmra.mxu1 %v2646_v49  ;;  %2442 = vmatprep.mubr.bf16.mxu0 %v2661_v50  ;;  %v123_v48 = vld [vmem:[%s4604_s0 + $0x378] sm:$0xff] }
  0xf5   :  { %v4237_v59 = vadd.f32 %v2947_v56, %v2883_v54  ;;  %v2885_v60 = vpop.f32.mrf.mxu0  ;;  %2539 = vmatprep.mubr.bf16.mxu1 %v2663_v53  ;;  %v2694_v54 = vcombine.low %v99_v23, %v107_v24 }
  0xf6   :  { %v2886_v63 = vadd.f32 %v2885_v60, %v2884_v57  ;;  %v2949_v0 = vpop.f32.mrf.mxu1 }
  0xf7   :  { %v2950_v3 = vadd.f32 %v2949_v0, %v2948_v58  ;;  %v2887_v4 = vpop.f32.mrf.mxu0  ;;  %v2711_v58 = vcombine.high %v115_v47, %v123_v48 }
  0xf8   :  { %v2951_v6 = vpop.f32.mrf.mxu1 }
  0xf9   :  { %v4251_v9 = vadd.f32 %v2950_v3, %v2886_v63  ;;  %v2888_v10 = vpop.f32.mrf.mxu0  ;;  %v130_v3 = vld [vmem:[%s4604_s0 + $0x3b0] sm:$0xff] }
  0xfa   :  { %v2889_v12 = vadd.f32 %v2888_v10, %v2887_v4  ;;  %v2952_v13 = vpop.f32.mrf.mxu1  ;;  %v138_v4 = vld [vmem:[%s4604_s0 + $0x3f0] sm:$0xff] }
  0xfb   :  { %v2953_v14 = vadd.f32 %v2952_v13, %v2951_v6  ;;  %v2890_v15 = vpop.f32.mrf.mxu0  ;;  %2443 = vmatmul.mubr.bf16.gmra.mxu0 %v2660_v5 }
  0xfc   :  { %v2954_v16 = vpop.f32.mrf.mxu1  ;;  %2540 = vmatmul.mubr.bf16.gmra.mxu1 %v2662_v7  ;;  %2450 = vmatprep.mubr.bf16.mxu0 %v2677_v8  ;;  %v131_v7 = vld [vmem:[%s4604_s0 + $0x3b8] sm:$0xff] }
  0xfd   :  { %v4253_v17 = vadd.f32 %v2953_v14, %v2889_v12  ;;  %v2891_v18 = vpop.f32.mrf.mxu0  ;;  %2547 = vmatprep.mubr.bf16.mxu1 %v2679_v11  ;;  %v139_v8 = vld [vmem:[%s4604_s0 + $0x3f8] sm:$0xff]  ;;  %v2708_v12 = vcombine.low %v114_v43, %v122_v44  ;;  %v2710_v14 = vcombine.low %v115_v47, %v123_v48 }
  0xfe   :  { %v2892_v21 = vadd.f32 %v2891_v18, %v2890_v15  ;;  %v2955_v22 = vpop.f32.mrf.mxu1  ;;  %v2725_v15 = vcombine.high %v130_v3, %v138_v4  ;;  %v2727_v19 = vcombine.high %v131_v7, %v139_v8 }
  0xff   :  { %v2956_v25 = vadd.f32 %v2955_v22, %v2954_v16  ;;  %v2893_v26 = vpop.f32.mrf.mxu0 }
 0x100   :  { %v2957_v28 = vpop.f32.mrf.mxu1 }
 0x101   :  { %v4267_v32 = vadd.f32 %v2956_v25, %v2892_v21  ;;  %v2894_v33 = vpop.f32.mrf.mxu0 }
 0x102   :  { %v2895_v35 = vadd.f32 %v2894_v33, %v2893_v26  ;;  %v2958_v36 = vpop.f32.mrf.mxu1  ;;  %v2724_v33 = vcombine.low %v130_v3, %v138_v4 }
 0x103   :  { %v2959_v38 = vadd.f32 %v2958_v36, %v2957_v28  ;;  %v2896_v39 = vpop.f32.mrf.mxu0  ;;  %2451 = vmatmul.mubr.bf16.gmra.mxu0 %v2676_v27 }
 0x104   :  { %v2960_v40 = vpop.f32.mrf.mxu1  ;;  %2548 = vmatmul.mubr.bf16.gmra.mxu1 %v2678_v30  ;;  %2458 = vmatprep.mubr.bf16.mxu0 %v2693_v31 }
 0x105   :  { %v4269_v41 = vadd.f32 %v2959_v38, %v2895_v35  ;;  %v2897_v42 = vpop.f32.mrf.mxu0  ;;  %2555 = vmatprep.mubr.bf16.mxu1 %v2695_v34  ;;  %v2726_v35 = vcombine.low %v131_v7, %v139_v8 }
 0x106   :  { %v2898_v45 = vadd.f32 %v2897_v42, %v2896_v39  ;;  %v2961_v46 = vpop.f32.mrf.mxu1 }
 0x107   :  { %v2962_v49 = vadd.f32 %v2961_v46, %v2960_v40  ;;  %v2899_v50 = vpop.f32.mrf.mxu0 }
 0x108   :  { %v2963_v53 = vpop.f32.mrf.mxu1 }
 0x109   :  { %v4283_v56 = vadd.f32 %v2962_v49, %v2898_v45  ;;  %v2900_v57 = vpop.f32.mrf.mxu0 }
 0x10a   :  { %v2901_v60 = vadd.f32 %v2900_v57, %v2899_v50  ;;  %v2964_v61 = vpop.f32.mrf.mxu1 }
 0x10b   :  { %v2965_v62 = vadd.f32 %v2964_v61, %v2963_v53  ;;  %v2902_v63 = vpop.f32.mrf.mxu0  ;;  %2459 = vmatmul.mubr.bf16.gmra.mxu0 %v2692_v52 }
 0x10c   :  { %v2966_v0 = vpop.f32.mrf.mxu1  ;;  %2556 = vmatmul.mubr.bf16.gmra.mxu1 %v2694_v54  ;;  %2466 = vmatprep.mubr.bf16.mxu0 %v2709_v55 }
 0x10d   :  { %v4285_v1 = vadd.f32 %v2965_v62, %v2901_v60  ;;  %v2903_v2 = vpop.f32.mrf.mxu0  ;;  %2563 = vmatprep.mubr.bf16.mxu1 %v2711_v58 }
 0x10e   :  { %v2904_v5 = vadd.f32 %v2903_v2, %v2902_v63  ;;  %v2967_v6 = vpop.f32.mrf.mxu1 }
 0x10f   :  { %v2968_v10 = vadd.f32 %v2967_v6, %v2966_v0  ;;  %v2905_v11 = vpop.f32.mrf.mxu0 }
 0x110   :  { %v2969_v13 = vpop.f32.mrf.mxu1 }
 0x111   :  { %v4299_v16 = vadd.f32 %v2968_v10, %v2904_v5  ;;  %v2906_v18 = vpop.f32.mrf.mxu0 }
 0x112   :  { %v2907_v20 = vadd.f32 %v2906_v18, %v2905_v11  ;;  %v2970_v21 = vpop.f32.mrf.mxu1 }
 0x113   :  { %v2971_v22 = vadd.f32 %v2970_v21, %v2969_v13  ;;  %v2908_v23 = vpop.f32.mrf.mxu0  ;;  %2467 = vmatmul.mubr.bf16.gmra.mxu0 %v2708_v12 }
 0x114   :  { %v2972_v24 = vpop.f32.mrf.mxu1  ;;  %2564 = vmatmul.mubr.bf16.gmra.mxu1 %v2710_v14  ;;  %2474 = vmatprep.mubr.bf16.mxu0 %v2725_v15 }
 0x115   :  { %v4301_v25 = vadd.f32 %v2971_v22, %v2907_v20  ;;  %v2909_v26 = vpop.f32.mrf.mxu0  ;;  %2571 = vmatprep.mubr.bf16.mxu1 %v2727_v19 }
 0x116   :  { %v2910_v27 = vadd.f32 %v2909_v26, %v2908_v23  ;;  %v2973_v28 = vpop.f32.mrf.mxu1 }
 0x117   :  { %v2974_v30 = vadd.f32 %v2973_v28, %v2972_v24  ;;  %v2911_v31 = vpop.f32.mrf.mxu0 }
 0x118   :  { %v2975_v34 = vpop.f32.mrf.mxu1 }
 0x119   :  { %v4303_v36 = vadd.f32 %v2974_v30, %v2910_v27  ;;  %v2912_v38 = vpop.f32.mrf.mxu0 }
 0x11a   :  { %v2913_v39 = vadd.f32 %v2912_v38, %v2911_v31  ;;  %v2976_v40 = vpop.f32.mrf.mxu1 }
 0x11b   :  { %v2977_v42 = vadd.f32 %v2976_v40, %v2975_v34  ;;  %v2914_v43 = vpop.f32.mrf.mxu0  ;;  %2475 = vmatmul.mubr.bf16.gmra.mxu0 %v2724_v33 }
 0x11c   :  { %v2978_v44 = vpop.f32.mrf.mxu1  ;;  %2572 = vmatmul.mubr.bf16.gmra.mxu1 %v2726_v35 }
 0x11d   :  { %v4305_v45 = vadd.f32 %v2977_v42, %v2913_v39  ;;  %v2915_v46 = vpop.f32.mrf.mxu0 }
 0x11e   :  { %v2916_v47 = vadd.f32 %v2915_v46, %v2914_v43  ;;  %v2979_v48 = vpop.f32.mrf.mxu1 }
 0x11f   :  { %v2980_v49 = vadd.f32 %v2979_v48, %v2978_v44  ;;  %v2917_v50 = vpop.f32.mrf.mxu0 }
 0x120   :  { %v2981_v52 = vpop.f32.mrf.mxu1 }
 0x121   :  { %v4307_v53 = vadd.f32 %v2980_v49, %v2916_v47  ;;  %v2918_v54 = vpop.f32.mrf.mxu0 }
 0x122   :  { %v2919_v55 = vadd.f32 %v2918_v54, %v2917_v50  ;;  %v2982_v57 = vpop.f32.mrf.mxu1 }
 0x123   :  { %v2983_v58 = vadd.f32 %v2982_v57, %v2981_v52  ;;  %v3000_v60 = vpop.f32.mrf.mxu0 }
 0x124   :  { %v3064_v61 = vpop.f32.mrf.mxu1 }
 0x125   :  { %v4309_v62 = vadd.f32 %v2983_v58, %v2919_v55  ;;  %v3001_v63 = vpop.f32.mrf.mxu0 }
 0x126   :  { %v3002_v0 = vadd.f32 %v3001_v63, %v3000_v60  ;;  %v3065_v2 = vpop.f32.mrf.mxu1 }
 0x127   :  { %v3066_v3 = vadd.f32 %v3065_v2, %v3064_v61  ;;  %v3003_v4 = vpop.f32.mrf.mxu0 }
 0x128   :  { %v2033_v5 = vadd.f32 %v3002_v0, %v4219_v29  ;;  %v3067_v6 = vpop.f32.mrf.mxu1 }
 0x129   :  { %v3004_v7 = vpop.f32.mrf.mxu0 }
 0x12a   :  { %v4312_v8 = vadd.f32 %v3066_v3, %v2033_v5  ;;  %v3005_v10 = vadd.f32 %v3004_v7, %v3003_v4  ;;  %v3068_v11 = vpop.f32.mrf.mxu1 }
 0x12b   :  { %v3069_v12 = vadd.f32 %v3068_v11, %v3067_v6  ;;  %v3006_v13 = vpop.f32.mrf.mxu0 }
 0x12c   :  { %v2036_v14 = vadd.f32 %v3005_v10, %v4221_v37  ;;  %v3070_v15 = vpop.f32.mrf.mxu1 }
 0x12d   :  { %v3007_v18 = vpop.f32.mrf.mxu0 }
 0x12e   :  { %v4315_v19 = vadd.f32 %v3069_v12, %v2036_v14  ;;  %v3008_v20 = vadd.f32 %v3007_v18, %v3006_v13  ;;  %v3071_v21 = vpop.f32.mrf.mxu1 }
 0x12f   :  { %v3072_v22 = vadd.f32 %v3071_v21, %v3070_v15  ;;  %v3009_v23 = vpop.f32.mrf.mxu0 }
 0x130   :  { %v2041_v29 = vadd.f32 %v3008_v20, %v4235_v51  ;;  %v3073_v24 = vpop.f32.mrf.mxu1 }
 0x131   :  { %v3010_v26 = vpop.f32.mrf.mxu0 }
 0x132   :  { %v4318_v27 = vadd.f32 %v3072_v22, %v2041_v29  ;;  %v3011_v28 = vadd.f32 %v3010_v26, %v3009_v23  ;;  %v3074_v30 = vpop.f32.mrf.mxu1 }
 0x133   :  { %v3075_v31 = vadd.f32 %v3074_v30, %v3073_v24  ;;  %v3012_v33 = vpop.f32.mrf.mxu0 }
 0x134   :  { %v2044_v37 = vadd.f32 %v3011_v28, %v4237_v59  ;;  %v3076_v34 = vpop.f32.mrf.mxu1 }
 0x135   :  { %v3013_v35 = vpop.f32.mrf.mxu0 }
 0x136   :  { %v4321_v38 = vadd.f32 %v3075_v31, %v2044_v37  ;;  %v3014_v39 = vadd.f32 %v3013_v35, %v3012_v33  ;;  %v3077_v40 = vpop.f32.mrf.mxu1 }
 0x137   :  { %v3078_v42 = vadd.f32 %v3077_v40, %v3076_v34  ;;  %v3015_v43 = vpop.f32.mrf.mxu0 }
 0x138   :  { %v2049_v51 = vadd.f32 %v3014_v39, %v4251_v9  ;;  %v3079_v44 = vpop.f32.mrf.mxu1 }
 0x139   :  { %v3016_v46 = vpop.f32.mrf.mxu0 }
 0x13a   :  { %v4324_v47 = vadd.f32 %v3078_v42, %v2049_v51  ;;  %v3017_v48 = vadd.f32 %v3016_v46, %v3015_v43  ;;  %v3080_v49 = vpop.f32.mrf.mxu1 }
 0x13b   :  { %v3081_v50 = vadd.f32 %v3080_v49, %v3079_v44  ;;  %v3018_v52 = vpop.f32.mrf.mxu0 }
 0x13c   :  { %v2052_v59 = vadd.f32 %v3017_v48, %v4253_v17  ;;  %v3082_v54 = vpop.f32.mrf.mxu1 }
 0x13d   :  { %v3019_v55 = vpop.f32.mrf.mxu0 }
 0x13e   :  { %v4327_v57 = vadd.f32 %v3081_v50, %v2052_v59  ;;  %v3020_v58 = vadd.f32 %v3019_v55, %v3018_v52  ;;  %v3083_v60 = vpop.f32.mrf.mxu1 }
 0x13f   :  { %v3084_v61 = vadd.f32 %v3083_v60, %v3082_v54  ;;  %v3021_v63 = vpop.f32.mrf.mxu0 }
 0x140   :  { %v2057_v9 = vadd.f32 %v3020_v58, %v4267_v32  ;;  %v3085_v0 = vpop.f32.mrf.mxu1 }
 0x141   :  { %v3022_v2 = vpop.f32.mrf.mxu0 }
 0x142   :  { %v4330_v3 = vadd.f32 %v3084_v61, %v2057_v9  ;;  %v3023_v4 = vadd.f32 %v3022_v2, %v3021_v63  ;;  %v3086_v5 = vpop.f32.mrf.mxu1 }
 0x143   :  { %v3087_v6 = vadd.f32 %v3086_v5, %v3085_v0  ;;  %v3024_v7 = vpop.f32.mrf.mxu0 }
 0x144   :  { %v2060_v17 = vadd.f32 %v3023_v4, %v4269_v41  ;;  %v3088_v10 = vpop.f32.mrf.mxu1 }
 0x145   :  { %v3025_v11 = vpop.f32.mrf.mxu0 }
 0x146   :  { %v4333_v12 = vadd.f32 %v3087_v6, %v2060_v17  ;;  %v3026_v13 = vadd.f32 %v3025_v11, %v3024_v7  ;;  %v3089_v14 = vpop.f32.mrf.mxu1 }
 0x147   :  { %v3090_v15 = vadd.f32 %v3089_v14, %v3088_v10  ;;  %v3027_v18 = vpop.f32.mrf.mxu0 }
 0x148   :  { %v2065_v32 = vadd.f32 %v3026_v13, %v4283_v56  ;;  %v3091_v20 = vpop.f32.mrf.mxu1 }
 0x149   :  { %v3028_v21 = vpop.f32.mrf.mxu0 }
 0x14a   :  { %v4336_v22 = vadd.f32 %v3090_v15, %v2065_v32  ;;  %v3029_v23 = vadd.f32 %v3028_v21, %v3027_v18  ;;  %v3092_v29 = vpop.f32.mrf.mxu1 }
 0x14b   :  { %v3093_v24 = vadd.f32 %v3092_v29, %v3091_v20  ;;  %v3030_v26 = vpop.f32.mrf.mxu0 }
 0x14c   :  { %v2068_v41 = vadd.f32 %v3029_v23, %v4285_v1  ;;  %v3094_v28 = vpop.f32.mrf.mxu1 }
 0x14d   :  { %v3031_v30 = vpop.f32.mrf.mxu0 }
 0x14e   :  { %v4339_v31 = vadd.f32 %v3093_v24, %v2068_v41  ;;  %v3032_v33 = vadd.f32 %v3031_v30, %v3030_v26  ;;  %v3095_v37 = vpop.f32.mrf.mxu1 }
 0x14f   :  { %v3096_v34 = vadd.f32 %v3095_v37, %v3094_v28  ;;  %v3033_v35 = vpop.f32.mrf.mxu0 }
 0x150   :  { %v2073_v56 = vadd.f32 %v3032_v33, %v4299_v16  ;;  %v3097_v39 = vpop.f32.mrf.mxu1 }
 0x151   :  { %v3034_v40 = vpop.f32.mrf.mxu0 }
 0x152   :  { %v4342_v42 = vadd.f32 %v3096_v34, %v2073_v56  ;;  %v3035_v43 = vadd.f32 %v3034_v40, %v3033_v35  ;;  %v3098_v51 = vpop.f32.mrf.mxu1 }
 0x153   :  { %v3099_v44 = vadd.f32 %v3098_v51, %v3097_v39  ;;  %v3036_v46 = vpop.f32.mrf.mxu0 }
 0x154   :  { %4606 = vst [vmem:[#allocation2_spill] sm:$0xff] %v4342_v42  ;;  %v2076_v1 = vadd.f32 %v3035_v43, %v4301_v25  ;;  %v3100_v48 = vpop.f32.mrf.mxu1 }
 0x155   :  { %v3037_v49 = vpop.f32.mrf.mxu0 }
 0x156   :  { %v4345_v50 = vadd.f32 %v3099_v44, %v2076_v1  ;;  %v3038_v52 = vadd.f32 %v3037_v49, %v3036_v46  ;;  %v3101_v59 = vpop.f32.mrf.mxu1 }
 0x157   :  { %v3102_v54 = vadd.f32 %v3101_v59, %v3100_v48  ;;  %v3039_v55 = vpop.f32.mrf.mxu0 }
 0x158   :  { %4607 = vst [vmem:[#allocation3_spill] sm:$0xff] %v4345_v50  ;;  %v2081_v16 = vadd.f32 %v3038_v52, %v4303_v36  ;;  %v3103_v58 = vpop.f32.mrf.mxu1 }
 0x159   :  { %v3040_v60 = vpop.f32.mrf.mxu0 }
 0x15a   :  { %v4348_v61 = vadd.f32 %v3102_v54, %v2081_v16  ;;  %v3041_v63 = vadd.f32 %v3040_v60, %v3039_v55  ;;  %v3104_v9 = vpop.f32.mrf.mxu1 }
 0x15b   :  { %v3105_v0 = vadd.f32 %v3104_v9, %v3103_v58  ;;  %v3042_v2 = vpop.f32.mrf.mxu0 }
 0x15c   :  { %4608 = vst [vmem:[#allocation4_spill] sm:$0xff] %v4348_v61  ;;  %v2084_v25 = vadd.f32 %v3041_v63, %v4305_v45  ;;  %v3106_v4 = vpop.f32.mrf.mxu1 }
 0x15d   :  { %v3043_v5 = vpop.f32.mrf.mxu0 }
 0x15e   :  { %v4351_v6 = vadd.f32 %v3105_v0, %v2084_v25  ;;  %v3044_v7 = vadd.f32 %v3043_v5, %v3042_v2  ;;  %v3107_v17 = vpop.f32.mrf.mxu1 }
 0x15f   :  { %v3108_v10 = vadd.f32 %v3107_v17, %v3106_v4  ;;  %v3045_v11 = vpop.f32.mrf.mxu0 }
 0x160   :  { %4609 = vst [vmem:[#allocation5_spill] sm:$0xff] %v4351_v6  ;;  %v2089_v36 = vadd.f32 %v3044_v7, %v4307_v53  ;;  %v3109_v13 = vpop.f32.mrf.mxu1 }
 0x161   :  { %v3046_v14 = vpop.f32.mrf.mxu0 }
 0x162   :  { %v4354_v15 = vadd.f32 %v3108_v10, %v2089_v36  ;;  %v3047_v18 = vadd.f32 %v3046_v14, %v3045_v11  ;;  %v3110_v32 = vpop.f32.mrf.mxu1 }
 0x163   :  { %v3111_v20 = vadd.f32 %v3110_v32, %v3109_v13  ;;  %v3128_v21 = vpop.f32.mrf.mxu0 }
 0x164   :  { %4610 = vst [vmem:[#allocation6_spill] sm:$0xff] %v4354_v15  ;;  %v2092_v45 = vadd.f32 %v3047_v18, %v4309_v62  ;;  %v4357_v23 = vpop.f32.mrf.mxu1 }
 0x165   :  { %v3129_v29 = vpop.f32.mrf.mxu0 }
 0x166   :  { %v4359_v24 = vadd.f32 %v3111_v20, %v2092_v45  ;;  %v4361_v26 = vpop.f32.mrf.mxu1 }
 0x167   :  { %v3131_v41 = vpop.f32.mrf.mxu0 }
 0x168   :  { %4611 = vst [vmem:[#allocation7_spill] sm:$0xff] %v4359_v24  ;;  %v4363_v28 = vpop.f32.mrf.mxu1 }
 0x169   :  { %v3132_v53 = vpop.f32.mrf.mxu0 }
 0x16a   :  { %v4365_v30 = vpop.f32.mrf.mxu1 }
 0x16b   :  { %v4367_v33 = vpop.f32.mrf.mxu0 }
 0x16c   :  { %v4369_v37 = vpop.f32.mrf.mxu1 }
 0x16d   :  { %v4371_v34 = vpop.f32.mrf.mxu0 }
 0x16e   :  { %v4373_v62 = vpop.f32.mrf.mxu1 }
 0x16f   :  { %v4375_v35 = vpop.f32.mrf.mxu0 }
 0x170   :  { %v4377_v56 = vpop.f32.mrf.mxu1 }
 0x171   :  { %v4379_v39 = vpop.f32.mrf.mxu0 }
 0x172   :  { %v4381_v40 = vpop.f32.mrf.mxu1 }
 0x173   :  { %v4383_v43 = vpop.f32.mrf.mxu0 }
 0x174   :  { %v4385_v51 = vpop.f32.mrf.mxu1 }
 0x175   :  { %v4387_v44 = vpop.f32.mrf.mxu0 }
 0x176   :  { %v4389_v46 = vpop.f32.mrf.mxu1 }
 0x177   :  { %v4391_v1 = vpop.f32.mrf.mxu0 }
 0x178   :  { %v4393_v48 = vpop.f32.mrf.mxu1 }
 0x179   :  { %v4395_v49 = vpop.f32.mrf.mxu0 }
 0x17a   :  { %v4397_v52 = vpop.f32.mrf.mxu1 }
 0x17b   :  { %v4399_v59 = vpop.f32.mrf.mxu0 }
 0x17c   :  { %v4401_v54 = vpop.f32.mrf.mxu1 }
 0x17d   :  { %v4403_v55 = vpop.f32.mrf.mxu0 }
 0x17e   :  { %v4405_v16 = vpop.f32.mrf.mxu1 }
 0x17f   :  { %v4407_v58 = vpop.f32.mrf.mxu0 }
 0x180   :  { %v4409_v60 = vpop.f32.mrf.mxu1 }
 0x181   :  { %v4411_v63 = vpop.f32.mrf.mxu0 }
 0x182   :  { %v4413_v9 = vpop.f32.mrf.mxu1 }
 0x183   :  { %v4415_v0 = vpop.f32.mrf.mxu0 }
 0x184   :  { %v4417_v2 = vpop.f32.mrf.mxu1 }
 0x185   :  { %v4419_v25 = vpop.f32.mrf.mxu0 }
 0x186   :  { %v4421_v4 = vpop.f32.mrf.mxu1 }
 0x187   :  { %v4423_v5 = vpop.f32.mrf.mxu0 }
 0x188   :  { %v4425_v7 = vpop.f32.mrf.mxu1 }
 0x189   :  { %v4427_v17 = vpop.f32.mrf.mxu0 }
 0x18a   :  { %v4429_v10 = vpop.f32.mrf.mxu1 }
 0x18b   :  { %4612 = vst [vmem:[#allocation8_spill] sm:$0xff] %v4429_v10  ;;  %v4431_v11 = vpop.f32.mrf.mxu0 }
 0x18c   :  { %v4433_v36 = vpop.f32.mrf.mxu1 }
 0x18d   :  { %4613 = vst [vmem:[#allocation9_spill] sm:$0xff] %v4433_v36  ;;  %v4435_v13 = vpop.f32.mrf.mxu0 }
 0x18e   :  { %v4437_v14 = vpop.f32.mrf.mxu1 }
 0x18f   :  { %4614 = vst [vmem:[#allocation10_spill] sm:$0xff] %v4437_v14  ;;  %v4439_v18 = vpop.f32.mrf.mxu0 }
 0x190   :  { %4615 = vst [vmem:[#allocation11_spill] sm:$0xff] %v4439_v18  ;;  %v4441_v32 = vpop.f32.mrf.mxu1 }
 0x191   :  { %4616 = vst [vmem:[#allocation12_spill] sm:$0xff] %v4441_v32  ;;  %v4443_v20 = vpop.f32.mrf.mxu0 }
 0x192   :  { %4617 = vst [vmem:[#allocation13_spill] sm:$0xff] %v4443_v20  ;;  %v4445_v45 = vpop.f32.mrf.mxu1 }
 0x193   :  { %4618 = vst [vmem:[#allocation14_spill] sm:$0xff] %v4445_v45  ;;  %v4447_v24 = vpop.f32.mrf.mxu0 }
 0x194   :  { %4619 = vst [vmem:[#allocation15_spill] sm:$0xff] %v4447_v24  ;;  %v4449_v15 = vpop.f32.mrf.mxu1  ;;  %v3130_v24 = vadd.f32 %v3129_v29, %v3128_v21 }
 0x195   :  { %4620 = vst [vmem:[#allocation16_spill] sm:$0xff] %v4449_v15  ;;  %v4451_v6 = vpop.f32.mrf.mxu0 }
 0x196   :  { %4621 = vst [vmem:[#allocation17_spill] sm:$0xff] %v4451_v6  ;;  %v4453_v61 = vpop.f32.mrf.mxu1 }
 0x197   :  { %4622 = vst [vmem:[#allocation18_spill] sm:$0xff] %v4453_v61  ;;  %v4455_v50 = vpop.f32.mrf.mxu0 }
 0x198   :  { %4623 = vst [vmem:[#allocation19_spill] sm:$0xff] %v4455_v50  ;;  %v4457_v36 = vpop.f32.mrf.mxu1  ;;  %v3133_v50 = vadd.f32 %v3132_v53, %v3131_v41  ;;  %v3197_v53 = vadd.f32 %v4365_v30, %v4363_v28 }
 0x199   :  { %4624 = vst [vmem:[#allocation20_spill] sm:$0xff] %v4457_v36  ;;  %v4459_v14 = vpop.f32.mrf.mxu0  ;;  %v2227_v36 = vadd.f32 %v3130_v24, %v4312_v8 }
 0x19a   :  { %4625 = vst [vmem:[#allocation21_spill] sm:$0xff] %v4459_v14  ;;  %v4461_v18 = vpop.f32.mrf.mxu1  ;;  %v2230_v21 = vadd.f32 %v3133_v50, %v4315_v19  ;;  %v3139_v19 = vadd.f32 %v4379_v39, %v4375_v35 }
 0x19b   :  { %4626 = vst [vmem:[#allocation22_spill] sm:$0xff] %v4461_v18  ;;  %v4463_v32 = vpop.f32.mrf.mxu0 }
 0x19c   :  { %4627 = vst [vmem:[#allocation23_spill] sm:$0xff] %v4463_v32  ;;  %v4465_v20 = vpop.f32.mrf.mxu1  ;;  %v2238_v35 = vadd.f32 %v3139_v19, %v4321_v38  ;;  %v3145_v38 = vadd.f32 %v4395_v49, %v4391_v1  ;;  %v3148_v1 = vadd.f32 %v4403_v55, %v4399_v59 }
 0x19d   :  { %4628 = vst [vmem:[#allocation24_spill] sm:$0xff] %v4465_v20  ;;  %v4467_v45 = vpop.f32.mrf.mxu0  ;;  %v3194_v20 = vadd.f32 %v4361_v26, %v4357_v23 }
 0x19e   :  { %4629 = vst [vmem:[#allocation25_spill] sm:$0xff] %v4467_v45  ;;  %v4469_v15 = vpop.f32.mrf.mxu1  ;;  %v2327_v45 = vadd.f32 %v3197_v53, %v2230_v21  ;;  %v2251_v59 = vadd.f32 %v3148_v1, %v4330_v3  ;;  %v3154_v3 = vadd.f32 %v4419_v25, %v4415_v0  ;;  %v3157_v0 = vadd.f32 %v4427_v17, %v4423_v5  ;;  %v4637_v1 = vld [vmem:[#allocation11_spill] sm:$0xff] }
 0x19f   :  { %4630 = vst [vmem:[#allocation26_spill] sm:$0xff] %v4469_v15  ;;  %v4471_v6 = vpop.f32.mrf.mxu0  ;;  %v2324_v15 = vadd.f32 %v3194_v20, %v2227_v36 }
 0x1a0   :  { %4631 = vst [vmem:[#allocation27_spill] sm:$0xff] %v4471_v6  ;;  %v4473_v61 = vpop.f32.mrf.mxu1  ;;  %v3136_v6 = vadd.f32 %v4371_v34, %v4367_v33  ;;  %v3200_v34 = vadd.f32 %v4373_v62, %v4369_v37  ;;  %v3203_v37 = vadd.f32 %v4381_v40, %v4377_v56  ;;  %v3206_v56 = vadd.f32 %v4389_v46, %v4385_v51 }
 0x1a1   :  { %4632 = vst [vmem:[#allocation28_spill] sm:$0xff] %v4473_v61  ;;  %v4475_v42 = vpop.f32.mrf.mxu0  ;;  %v3209_v51 = vadd.f32 %v4397_v52, %v4393_v48  ;;  %v3212_v48 = vadd.f32 %v4405_v16, %v4401_v54  ;;  %v3215_v54 = vadd.f32 %v4413_v9, %v4409_v60  ;;  %v3218_v60 = vadd.f32 %v4421_v4, %v4417_v2  ;;  %v4635_v2 = vld [vmem:[#allocation8_spill] sm:$0xff] }
 0x1a2   :  { %4633 = vst [vmem:[#allocation29_spill] sm:$0xff] %v4475_v42  ;;  %v4478_v14 = vpop.f32.mrf.mxu1  ;;  %v2235_v23 = vadd.f32 %v3136_v6, %v4318_v27  ;;  %v3142_v27 = vadd.f32 %v4387_v44, %v4383_v43  ;;  %v2335_v20 = vadd.f32 %v3203_v37, %v2238_v35  ;;  %v2262_v5 = vadd.f32 %v3157_v0, %v4339_v31  ;;  %v4638_v31 = vld [vmem:[#allocation13_spill] sm:$0xff] }
 0x1a3   :  { %4634 = vst [vmem:[#allocation30_spill] sm:$0xff] %v4478_v14  ;;  %v3256_v18 = vpop.f32.mrf.mxu0  ;;  %v2348_v35 = vadd.f32 %v3212_v48, %v2251_v59  ;;  %v3221_v4 = vadd.f32 %v4635_v2, %v4425_v7 }
 0x1a4   :  { %v3320_v32 = vpop.f32.mrf.mxu1  ;;  %v2332_v30 = vadd.f32 %v3200_v34, %v2235_v23  ;;  %v2243_v43 = vadd.f32 %v3142_v27, %v4324_v47  ;;  %v2246_v23 = vadd.f32 %v3145_v38, %v4327_v57  ;;  %v3151_v57 = vadd.f32 %v4411_v63, %v4407_v58 }
 0x1a5   :  { %v3257_v29 = vpop.f32.mrf.mxu0 }
 0x1a6   :  { %v3258_v61 = vadd.f32 %v3257_v29, %v3256_v18  ;;  %v3321_v41 = vpop.f32.mrf.mxu1  ;;  %v2340_v47 = vadd.f32 %v3206_v56, %v2243_v43  ;;  %v2254_v58 = vadd.f32 %v3151_v57, %v4333_v12 }
 0x1a7   :  { %v3259_v8 = vpop.f32.mrf.mxu0  ;;  %v3322_v14 = vadd.f32 %v3321_v41, %v3320_v32 }
 0x1a8   :  { %v2421_v24 = vadd.f32 %v3258_v61, %v2324_v15  ;;  %v3323_v42 = vpop.f32.mrf.mxu1  ;;  %v2351_v12 = vadd.f32 %v3215_v54, %v2254_v58  ;;  %v4646_v54 = vld [vmem:[#allocation19_spill] sm:$0xff] }
 0x1a9   :  { %v3260_v10 = vpop.f32.mrf.mxu0 }
 0x1aa   :  { %v2518_v50 = vadd.f32 %v3322_v14, %v2421_v24  ;;  %v3261_v26 = vadd.f32 %v3260_v10, %v3259_v8  ;;  %v3324_v36 = vpop.f32.mrf.mxu1 }
 0x1ab   :  { %v3262_v33 = vpop.f32.mrf.mxu0  ;;  %v3325_v15 = vadd.f32 %v3324_v36, %v3323_v42 }
 0x1ac   :  { %2580 = vst [vmem:[%s4605_s2] sm:$0xff] %v2518_v50  ;;  %v2424_v61 = vadd.f32 %v3261_v26, %v2327_v45  ;;  %v3326_v28 = vpop.f32.mrf.mxu1 }
 0x1ad   :  { %v3263_v6 = vpop.f32.mrf.mxu0 }
 0x1ae   :  { %v2521_v39 = vadd.f32 %v3325_v15, %v2424_v61  ;;  %v3264_v10 = vadd.f32 %v3263_v6, %v3262_v33  ;;  %v3327_v14 = vpop.f32.mrf.mxu1  ;;  %v2343_v61 = vadd.f32 %v3209_v51, %v2246_v23  ;;  %v2359_v23 = vadd.f32 %v3221_v4, %v2262_v5  ;;  %v4639_v51 = vld [vmem:[#allocation9_spill] sm:$0xff] }
 0x1af   :  { %v3265_v18 = vpop.f32.mrf.mxu0  ;;  %v3328_v62 = vadd.f32 %v3327_v14, %v3326_v28 }
 0x1b0   :  { %2581 = vst [vmem:[%s4605_s2 + $0x8] sm:$0xff] %v2521_v39  ;;  %v2429_v42 = vadd.f32 %v3264_v10, %v2332_v30  ;;  %v3329_v32 = vpop.f32.mrf.mxu1 }
 0x1b1   :  { %v3266_v44 = vpop.f32.mrf.mxu0 }
 0x1b2   :  { %v2526_v45 = vadd.f32 %v3328_v62, %v2429_v42  ;;  %v3267_v21 = vadd.f32 %v3266_v44, %v3265_v18  ;;  %v3330_v29 = vpop.f32.mrf.mxu1 }
 0x1b3   :  { %v3268_v40 = vpop.f32.mrf.mxu0  ;;  %v3331_v53 = vadd.f32 %v3330_v29, %v3329_v32  ;;  %v2259_v32 = vadd.f32 %v3154_v3, %v4336_v22  ;;  %v3160_v22 = vadd.f32 %v4435_v13, %v4431_v11 }
 0x1b4   :  { %2582 = vst [vmem:[%s4605_s2 + $0x10] sm:$0xff] %v2526_v45  ;;  %v2432_v41 = vadd.f32 %v3267_v21, %v2335_v20  ;;  %v3332_v8 = vpop.f32.mrf.mxu1 }
 0x1b5   :  { %v3269_v24 = vpop.f32.mrf.mxu0  ;;  %v2356_v29 = vadd.f32 %v3218_v60, %v2259_v32 }
 0x1b6   :  { %v2529_v49 = vadd.f32 %v3331_v53, %v2432_v41  ;;  %v3270_v19 = vadd.f32 %v3269_v24, %v3268_v40  ;;  %v3333_v50 = vpop.f32.mrf.mxu1  ;;  %v4636_v24 = vld [vmem:[#allocation2_spill] sm:$0xff] }
 0x1b7   :  { %v3271_v26 = vpop.f32.mrf.mxu0  ;;  %v3334_v36 = vadd.f32 %v3333_v50, %v3332_v8  ;;  %v2267_v11 = vadd.f32 %v3160_v22, %v4636_v24  ;;  %v4651_v22 = vld [vmem:[#allocation5_spill] sm:$0xff] }
 0x1b8   :  { %2583 = vst [vmem:[%s4605_s2 + $0x18] sm:$0xff] %v2529_v49  ;;  %v2437_v46 = vadd.f32 %v3270_v19, %v2340_v47  ;;  %v3335_v33 = vpop.f32.mrf.mxu1  ;;  %v3163_v49 = vadd.f32 %v4638_v31, %v4637_v1 }
 0x1b9   :  { %v3272_v34 = vpop.f32.mrf.mxu0 }
 0x1ba   :  { %v2534_v55 = vadd.f32 %v3334_v36, %v2437_v46  ;;  %v3273_v15 = vadd.f32 %v3272_v34, %v3271_v26  ;;  %v3336_v28 = vpop.f32.mrf.mxu1  ;;  %v4640_v46 = vld [vmem:[#allocation10_spill] sm:$0xff] }
 0x1bb   :  { %v3274_v27 = vpop.f32.mrf.mxu0  ;;  %v3337_v6 = vadd.f32 %v3336_v28, %v3335_v33  ;;  %v3224_v7 = vadd.f32 %v4640_v46, %v4639_v51  ;;  %v4642_v28 = vld [vmem:[#allocation15_spill] sm:$0xff] }
 0x1bc   :  { %2584 = vst [vmem:[%s4605_s2 + $0x20] sm:$0xff] %v2534_v55  ;;  %v2440_v52 = vadd.f32 %v3273_v15, %v2343_v61  ;;  %v3338_v30 = vpop.f32.mrf.mxu1  ;;  %v4641_v55 = vld [vmem:[#allocation3_spill] sm:$0xff] }
 0x1bd   :  { %v3275_v63 = vpop.f32.mrf.mxu0  ;;  %v2364_v61 = vadd.f32 %v3224_v7, %v2267_v11  ;;  %v2270_v15 = vadd.f32 %v3163_v49, %v4641_v55  ;;  %v4656_v49 = vld [vmem:[#allocation6_spill] sm:$0xff] }
 0x1be   :  { %v2537_v39 = vadd.f32 %v3337_v6, %v2440_v52  ;;  %v3276_v10 = vadd.f32 %v3275_v63, %v3274_v27  ;;  %v3339_v14 = vpop.f32.mrf.mxu1  ;;  %v4643_v27 = vld [vmem:[#allocation17_spill] sm:$0xff]  ;;  %v4644_v63 = vld [vmem:[#allocation12_spill] sm:$0xff] }
 0x1bf   :  { %v3277_v16 = vpop.f32.mrf.mxu0  ;;  %v3340_v37 = vadd.f32 %v3339_v14, %v3338_v30  ;;  %v3166_v48 = vadd.f32 %v4643_v27, %v4642_v28 }
 0x1c0   :  { %2585 = vst [vmem:[%s4605_s2 + $0x28] sm:$0xff] %v2537_v39  ;;  %v2445_v18 = vadd.f32 %v3276_v10, %v2348_v35  ;;  %v3341_v42 = vpop.f32.mrf.mxu1  ;;  %v4645_v35 = vld [vmem:[#allocation14_spill] sm:$0xff] }
 0x1c1   :  { %v3278_v62 = vpop.f32.mrf.mxu0  ;;  %v3227_v3 = vadd.f32 %v4645_v35, %v4644_v63  ;;  %v4662_v35 = vld [vmem:[#allocation28_spill] sm:$0xff] }
 0x1c2   :  { %v2542_v25 = vadd.f32 %v3340_v37, %v2445_v18  ;;  %v3279_v43 = vadd.f32 %v3278_v62, %v3277_v16  ;;  %v3342_v44 = vpop.f32.mrf.mxu1  ;;  %v4647_v16 = vld [vmem:[#allocation21_spill] sm:$0xff] }
 0x1c3   :  { %v3280_v20 = vpop.f32.mrf.mxu0  ;;  %v3343_v38 = vadd.f32 %v3342_v44, %v3341_v42  ;;  %v3169_v18 = vadd.f32 %v4647_v16, %v4646_v54  ;;  %v2367_v42 = vadd.f32 %v3227_v3, %v2270_v15  ;;  %v4649_v44 = vld [vmem:[#allocation16_spill] sm:$0xff]  ;;  %v4663_v3 = vld [vmem:[#allocation30_spill] sm:$0xff] }
 0x1c4   :  { %2586 = vst [vmem:[%s4605_s2 + $0x30] sm:$0xff] %v2542_v25  ;;  %v2448_v9 = vadd.f32 %v3279_v43, %v2351_v12  ;;  %v3344_v45 = vpop.f32.mrf.mxu1  ;;  %v4648_v12 = vld [vmem:[#allocation4_spill] sm:$0xff] }
 0x1c5   :  { %v3281_v21 = vpop.f32.mrf.mxu0  ;;  %v2275_v62 = vadd.f32 %v3166_v48, %v4648_v12  ;;  %v4661_v48 = vld [vmem:[#allocation7_spill] sm:$0xff] }
 0x1c6   :  { %v2545_v17 = vadd.f32 %v3343_v38, %v2448_v9  ;;  %v3282_v56 = vadd.f32 %v3281_v21, %v3280_v20  ;;  %v3345_v40 = vpop.f32.mrf.mxu1  ;;  %v4650_v20 = vld [vmem:[#allocation18_spill] sm:$0xff]  ;;  %v2278_v21 = vadd.f32 %v3169_v18, %v4651_v22 }
 0x1c7   :  { %v3283_v41 = vpop.f32.mrf.mxu0  ;;  %v3346_v8 = vadd.f32 %v3345_v40, %v3344_v45  ;;  %v3230_v60 = vadd.f32 %v4650_v20, %v4649_v44 }
 0x1c8   :  { %2587 = vst [vmem:[%s4605_s2 + $0x38] sm:$0xff] %v2545_v17  ;;  %v2453_v53 = vadd.f32 %v3282_v56, %v2356_v29  ;;  %v3347_v47 = vpop.f32.mrf.mxu1  ;;  %v4652_v17 = vld [vmem:[#allocation23_spill] sm:$0xff]  ;;  %v4653_v56 = vld [vmem:[#allocation25_spill] sm:$0xff] }
 0x1c9   :  { %v3284_v13 = vpop.f32.mrf.mxu0  ;;  %v2372_v5 = vadd.f32 %v3230_v60, %v2275_v62  ;;  %v3172_v40 = vadd.f32 %v4653_v56, %v4652_v17 }
 0x1ca   :  { %v2550_v19 = vadd.f32 %v3346_v8, %v2453_v53  ;;  %v3285_v50 = vadd.f32 %v3284_v13, %v3283_v41  ;;  %v3348_v26 = vpop.f32.mrf.mxu1  ;;  %v4654_v53 = vld [vmem:[#allocation20_spill] sm:$0xff]  ;;  %v4655_v8 = vld [vmem:[#allocation22_spill] sm:$0xff] }
 0x1cb   :  { %v3286_v36 = vpop.f32.mrf.mxu0  ;;  %v3349_v57 = vadd.f32 %v3348_v26, %v3347_v47  ;;  %v3233_v47 = vadd.f32 %v4655_v8, %v4654_v53  ;;  %v4658_v26 = vld [vmem:[#allocation29_spill] sm:$0xff] }
 0x1cc   :  { %2588 = vst [vmem:[%s4605_s2 + $0x40] sm:$0xff] %v2550_v19  ;;  %v2456_v33 = vadd.f32 %v3285_v50, %v2359_v23  ;;  %v3350_v34 = vpop.f32.mrf.mxu1  ;;  %v2283_v19 = vadd.f32 %v3172_v40, %v4656_v49  ;;  %v4657_v50 = vld [vmem:[#allocation27_spill] sm:$0xff] }
 0x1cd   :  { %v3287_v59 = vpop.f32.mrf.mxu0  ;;  %v2375_v1 = vadd.f32 %v3233_v47, %v2278_v21  ;;  %v3175_v51 = vadd.f32 %v4658_v26, %v4657_v50 }
 0x1ce   :  { %v2553_v52 = vadd.f32 %v3349_v57, %v2456_v33  ;;  %v3288_v6 = vadd.f32 %v3287_v59, %v3286_v36  ;;  %v3351_v30 = vpop.f32.mrf.mxu1  ;;  %v4659_v57 = vld [vmem:[#allocation24_spill] sm:$0xff] }
 0x1cf   :  { %v3289_v58 = vpop.f32.mrf.mxu0  ;;  %v3352_v10 = vadd.f32 %v3351_v30, %v3350_v34  ;;  %v4660_v34 = vld [vmem:[#allocation26_spill] sm:$0xff] }
 0x1d0   :  { %2589 = vst [vmem:[%s4605_s2 + $0x48] sm:$0xff] %v2553_v52  ;;  %v2461_v39 = vadd.f32 %v3288_v6, %v2364_v61  ;;  %v3353_v14 = vpop.f32.mrf.mxu1  ;;  %v3236_v61 = vadd.f32 %v4660_v34, %v4659_v57  ;;  %v2286_v52 = vadd.f32 %v3175_v51, %v4661_v48 }
 0x1d1   :  { %v3290_v37 = vpop.f32.mrf.mxu0 }
 0x1d2   :  { %v2558_v32 = vadd.f32 %v3352_v10, %v2461_v39  ;;  %v3291_v0 = vadd.f32 %v3290_v37, %v3289_v58  ;;  %v3354_v25 = vpop.f32.mrf.mxu1  ;;  %v2380_v27 = vadd.f32 %v3236_v61, %v2283_v19  ;;  %v3239_v39 = vadd.f32 %v4663_v3, %v4662_v35 }
 0x1d3   :  { %v3292_v43 = vpop.f32.mrf.mxu0  ;;  %v3355_v38 = vadd.f32 %v3354_v25, %v3353_v14 }
 0x1d4   :  { %2590 = vst [vmem:[%s4605_s2 + $0x50] sm:$0xff] %v2558_v32  ;;  %v2464_v9 = vadd.f32 %v3291_v0, %v2367_v42  ;;  %v3356_v45 = vpop.f32.mrf.mxu1  ;;  %v2383_v18 = vadd.f32 %v3239_v39, %v2286_v52 }
 0x1d5   :  { %v3293_v29 = vpop.f32.mrf.mxu0 }
 0x1d6   :  { %v2561_v41 = vadd.f32 %v3355_v38, %v2464_v9  ;;  %v3294_v2 = vadd.f32 %v3293_v29, %v3292_v43  ;;  %v3357_v4 = vpop.f32.mrf.mxu1 }
 0x1d7   :  { %v3295_v24 = vpop.f32.mrf.mxu0  ;;  %v3358_v13 = vadd.f32 %v3357_v4, %v3356_v45 }
 0x1d8   :  { %2591 = vst [vmem:[%s4605_s2 + $0x58] sm:$0xff] %v2561_v41  ;;  %v2469_v11 = vadd.f32 %v3294_v2, %v2372_v5  ;;  %v3359_v23 = vpop.f32.mrf.mxu1 }
 0x1d9   :  { %v3296_v31 = vpop.f32.mrf.mxu0 }
 0x1da   :  { %v2566_v46 = vadd.f32 %v3358_v13, %v2469_v11  ;;  %v3297_v7 = vadd.f32 %v3296_v31, %v3295_v24  ;;  %v3360_v36 = vpop.f32.mrf.mxu1 }
 0x1db   :  { %v3298_v33 = vpop.f32.mrf.mxu0  ;;  %v3361_v55 = vadd.f32 %v3360_v36, %v3359_v23 }
 0x1dc   :  { %2592 = vst [vmem:[%s4605_s2 + $0x60] sm:$0xff] %v2566_v46  ;;  %v2472_v59 = vadd.f32 %v3297_v7, %v2375_v1  ;;  %v3362_v15 = vpop.f32.mrf.mxu1 }
 0x1dd   :  { %v3299_v28 = vpop.f32.mrf.mxu0 }
 0x1de   :  { %v2569_v6 = vadd.f32 %v3361_v55, %v2472_v59  ;;  %v3300_v30 = vadd.f32 %v3299_v28, %v3298_v33  ;;  %v3363_v58 = vpop.f32.mrf.mxu1 }
 0x1df   :  { %v3301_v63 = vpop.f32.mrf.mxu0  ;;  %v3364_v14 = vadd.f32 %v3363_v58, %v3362_v15 }
 0x1e0   :  { %2593 = vst [vmem:[%s4605_s2 + $0x68] sm:$0xff] %v2569_v6  ;;  %v2477_v10 = vadd.f32 %v3300_v30, %v2380_v27  ;;  %v3365_v54 = vpop.f32.mrf.mxu1 }
 0x1e1   :  { %v3302_v16 = vpop.f32.mrf.mxu0 }
 0x1e2   :  { %v2574_v37 = vadd.f32 %v3364_v14, %v2477_v10  ;;  %v3303_v42 = vadd.f32 %v3302_v16, %v3301_v63  ;;  %v3366_v12 = vpop.f32.mrf.mxu1 }
 0x1e3   :  { %v3367_v32 = vadd.f32 %v3366_v12, %v3365_v54 }
 0x1e4   :  { %2594 = vst [vmem:[%s4605_s2 + $0x70] sm:$0xff] %v2574_v37  ;;  %v2480_v62 = vadd.f32 %v3303_v42, %v2383_v18 }
 0x1e6   :  { %v2577_v0 = vadd.f32 %v3367_v32, %v2480_v62 }
 0x1e8   :  { %2595 = vst [vmem:[%s4605_s2 + $0x78] sm:$0xff] %v2577_v0 }

// kernel: discriminator_forward.12
= control target key start
LH: loop header
LB: loop body
LE: loop exit
PB: predicated region body
PF: predicated region fallthrough
CT: control target
= control target key end

     0   :  { %s317_s6 = smov 0   ;;  %s319_s7 = smov 0   ;;  %s354_s0 = inlined_call_operand.vmem [shape: f32[2,4,128], index: 0, kind: input, shape index: {}]   ;;  %s355_s1 = inlined_call_operand.vmem [shape: bf16[2,4,128], index: 1, kind: output, shape index: {}]  }
   0x1   :  { %s321_s8 = smov 0  }
   0x2 LB: > { %s23_s9 = sadd.s32 1, %s301_s7  ;;  %p252_p0 = scmp.ge.s32.totalorder %s305_s8, 1  ;;  %s305_s8 = sphi %s321_s8, %s11_s8   ;;  %s301_s7 = sphi %s319_s7, %s357_s7   ;;  %s297_s6 = sphi %s317_s6, %s356_s6  }
   0x3   : > { %p25_p1 = scmp.ge.s32.totalorder %s23_s9, 2  ;;  %p105_p2 = scmp.lt.s32.totalorder %s305_s8, 3 }
   0x5   : > { %s359_s9 = smov (%p25_p1, %s23_s9), 0  ;;  %p106_p3 = pnand %p252_p0, %p105_p2 }
   0x6   : > { %p129_p4 = scmp.lt.s32.totalorder (!%p106_p3), %s297_s6, 1 }
   0x7   : > { %109 = sbr.rel (%p106_p3) target bundleno = 61 (0x3d), region = 24 }
   0xc   : > { %s361_s6 = smov (!%p129_p4, %s297_s6), 1  ;;  %vm144_vm0 = vcmask 1043456  }
   0xd   : > { %s253_s10 = sshll.u32 %s361_s6, 2  ;;  %s254_s14 = sshll.u32 %s361_s6, 1 }
   0xe   : > { %s135_s13 = scalar_lea.vmem %s354_s0, %s253_s10  ;;  %s142_s17 = scalar_lea.vmem %s355_s1, %s254_s14 }
   0xf   : > { %v143_v0 = vld [vmem:[%s135_s13] sm:$0xf] }
  0x10   : > { %v145_v1 = vsel %vm144_vm0, %v143_v0, 0.0  ;;  %v153_v2 = vmul.f32 %v143_v0, %v143_v0 }
  0x11   : > { %v146_v3 = vrot.slane %v145_v1, 4 }
  0x12   : > { %v154_v4 = vsel %vm144_vm0, %v153_v2, 0.0 }
  0x13   : > { %v147_v5 = vadd.f32 %v146_v3, %v145_v1  ;;  %v155_v6 = vrot.slane %v154_v4, 4 }
  0x15   : > { %v148_v7 = vrot.slane %v147_v5, 2  ;;  %v156_v8 = vadd.f32 %v155_v6, %v154_v4 }
  0x17   : > { %v149_v9 = vadd.f32 %v148_v7, %v147_v5  ;;  %v157_v10 = vrot.slane %v156_v8, 2 }
  0x19   : > { %v150_v11 = vrot.slane %v149_v9, 1  ;;  %v158_v12 = vadd.f32 %v157_v10, %v156_v8 }
  0x1b   : > { %v151_v13 = vadd.f32 %v150_v11, %v149_v9  ;;  %v159_v14 = vrot.slane %v158_v12, 1 }
  0x1d   : > { %v152_v15 = vmul.f32 0.25, %v151_v13  ;;  %v160_v16 = vadd.f32 %v159_v14, %v158_v12 }
  0x1f   : > { %v161_v17 = vmul.f32 0.25, %v160_v16  ;;  %v162_v18 = vmul.f32 %v152_v15, %v152_v15  ;;  %v165_v22 = vsub.f32 %v143_v0, %v152_v15 }
  0x21   : > { %v163_v19 = vsub.f32 %v161_v17, %v162_v18 }
  0x23   : > { %v164_v20 = vmax.f32 %v163_v19, 0.0 }
  0x25   : > { %v166_v21 = vadd.f32 1e-05, %v164_v20 }
  0x27   : > { %281 = vrsqrt.f32 %v166_v21 }
  0x34   : > { %v282_v23 = vpop.eup %281 }
  0x35   : > { %v168_v24 = vmul.f32 %v282_v23, %v165_v22 }
  0x37   : > { %vm169_vm1 = vcmp.gt.f32.partialorder %v168_v24, 0.0  ;;  %v170_v25 = vmul.f32 0.2, %v168_v24 }
  0x39   : > { %v171_v26 = vsel %vm169_vm1, %v168_v24, %v170_v25 }
  0x3a   : > { %v172_v27 = vpack.c.bf16 %v171_v26, %v171_v26 }
  0x3c   : > { %173 = vst [vmem:[%s142_s17] sm:$0x3] %v172_v27 }
  0x3d PF: > { %s11_s8 = sadd.s32 1, %s305_s8   ;;  %s356_s6 = smov %s301_s7 }
  0x3e   : > { %p8_p5 = scmp.ge.s32.totalorder %s11_s8, 4   ;;  %s357_s7 = smov %s359_s9 }
  0x40   :  { %10 = sbr.rel (!%p8_p5) target bundleno = 2 (0x2), region = 54 }

// kernel: discriminator_forward.13
= control target key start
LH: loop header
LB: loop body
LE: loop exit
PB: predicated region body
PF: predicated region fallthrough
CT: control target
= control target key end

     0   :  { %s483_s1 = inlined_call_operand.vmem [shape: bf16[128,128], index: 1, kind: input, shape index: {}]   ;;  %s484_s0 = inlined_call_operand.vmem [shape: bf16[128,128], index: 0, kind: input, shape index: {}]   ;;  %s485_s2 = inlined_call_operand.vmem [shape: f32[1,128], index: 2, kind: input, shape index: {}]   ;;  %s486_s3 = inlined_call_operand.vmem [shape: f32[128,128], index: 3, kind: output, shape index: {}]  }
   0x1   :  { %v348_v0 = vld [vmem:[%s483_s1 + $0x38] sm:$0xff]   ;;  %v349_v1 = vld [vmem:[%s483_s1 + $0x30] sm:$0xff]   ;;  %v350_v2 = vld [vmem:[%s483_s1 + $0x28] sm:$0xff]  }
   0x2   :  { %300 = vmatprep.subr.bf16.mxu0 %v348_v0  ;;  %332 = vmatprep.subr.bf16.mxu1 %v348_v0  ;;  %v351_v3 = vld [vmem:[%s483_s1 + $0x20] sm:$0xff]   ;;  %v352_v6 = vld [vmem:[%s483_s1 + $0x18] sm:$0xff]   ;;  %v353_v7 = vld [vmem:[%s483_s1 + $0x10] sm:$0xff]  }
   0x3   :  { %301 = vmatpush3.bf16.msra.mxu0 %v348_v0  ;;  %340 = vmatpush3.bf16.msra.mxu1 %v348_v0  ;;  %v356_v4 = vld [vmem:[%s484_s0] sm:$0xff]   ;;  %v354_v8 = vld [vmem:[%s483_s1 + $0x8] sm:$0xff]   ;;  %v360_v12 = vld [vmem:[%s484_s0 + $0x10] sm:$0xff]  }
   0x4   :  { %302 = vmatprep.subr.bf16.mxu0 %v349_v1  ;;  %333 = vmatprep.subr.bf16.mxu1 %v349_v1  ;;  %v357_v5 = vld [vmem:[%s484_s0 + $0x20] sm:$0xff]   ;;  %v358_v10 = vld [vmem:[%s484_s0 + $0x8] sm:$0xff]   ;;  %v361_v13 = vld [vmem:[%s484_s0 + $0x30] sm:$0xff]  }
   0x5   :  { %316 = vmatprep.mubr.bf16.mxu0 %v356_v4  ;;  %324 = vmatprep.mubr.bf16.mxu1 %v357_v5  ;;  %v355_v9 = vld [vmem:[%s483_s1] sm:$0xff]   ;;  %v359_v11 = vld [vmem:[%s484_s0 + $0x28] sm:$0xff]   ;;  %v362_v14 = vld [vmem:[%s484_s0 + $0x18] sm:$0xff]  }
   0x6   :  { %v363_v15 = vld [vmem:[%s484_s0 + $0x38] sm:$0xff]   ;;  %v267_v16 = vld [vmem:[%s485_s2] ss:$0 sm:$0xff] }
   0x7   :  { %303 = vmatpush3.bf16.msra.mxu0 %v349_v1  ;;  %341 = vmatpush3.bf16.msra.mxu1 %v349_v1 }
   0x8   :  { %304 = vmatprep.subr.bf16.mxu0 %v350_v2  ;;  %334 = vmatprep.subr.bf16.mxu1 %v350_v2 }
   0xb   :  { %305 = vmatpush3.bf16.msra.mxu0 %v350_v2  ;;  %342 = vmatpush3.bf16.msra.mxu1 %v350_v2 }
   0xc   :  { %306 = vmatprep.subr.bf16.mxu0 %v351_v3  ;;  %335 = vmatprep.subr.bf16.mxu1 %v351_v3 }
   0xf   :  { %307 = vmatpush3.bf16.msra.mxu0 %v351_v3  ;;  %343 = vmatpush3.bf16.msra.mxu1 %v351_v3 }
  0x10   :  { %308 = vmatprep.subr.bf16.mxu0 %v352_v6  ;;  %336 = vmatprep.subr.bf16.mxu1 %v352_v6 }
  0x13   :  { %309 = vmatpush3.bf16.msra.mxu0 %v352_v6  ;;  %344 = vmatpush3.bf16.msra.mxu1 %v352_v6 }
  0x14   :  { %310 = vmatprep.subr.bf16.mxu0 %v353_v7  ;;  %337 = vmatprep.subr.bf16.mxu1 %v353_v7 }
  0x17   :  { %311 = vmatpush3.bf16.msra.mxu0 %v353_v7  ;;  %345 = vmatpush3.bf16.msra.mxu1 %v353_v7 }
  0x18   :  { %312 = vmatprep.subr.bf16.mxu0 %v354_v8  ;;  %338 = vmatprep.subr.bf16.mxu1 %v354_v8 }
  0x1b   :  { %313 = vmatpush3.bf16.msra.mxu0 %v354_v8  ;;  %346 = vmatpush3.bf16.msra.mxu1 %v354_v8 }
  0x1c   :  { %314 = vmatprep.subr.bf16.mxu0 %v355_v9  ;;  %339 = vmatprep.subr.bf16.mxu1 %v355_v9 }
  0x1f   :  { %315 = vmatpush3.bf16.msra.mxu0 %v355_v9  ;;  %347 = vmatpush3.bf16.msra.mxu1 %v355_v9 }
  0x22   :  { %317 = vmatmul.mubr.bf16.vlgmr.msra.gmra.mxu0 %v358_v10  ;;  %325 = vmatmul.mubr.bf16.vlgmr.msra.gmra.mxu1 %v359_v11 }
  0x23   :  { %320 = vmatprep.mubr.bf16.mxu0 %v360_v12  ;;  %328 = vmatprep.mubr.bf16.mxu1 %v361_v13 }
  0x2a   :  { %321 = vmatmul.mubr.bf16.gmra.mxu0 %v362_v14  ;;  %329 = vmatmul.mubr.bf16.gmra.mxu1 %v363_v15 }
  0xe2   :  { %v318_v17 = vpop.f32.mrf.mxu0  ;;  %v326_v18 = vpop.f32.mrf.mxu1 }
  0xe3   :  { %v193_v19 = vadd.f32 %v318_v17, %v267_v16  ;;  %v225_v20 = vadd.f32 %v326_v18, %v267_v16 }
  0xe4   :  { %v184_v21 = vpop.f32.mrf.mxu0  ;;  %v216_v22 = vpop.f32.mrf.mxu1 }
  0xe5   :  { %249 = vst [vmem:[%s486_s3 + $0x10] sm:$0xff] %v193_v19  ;;  %257 = vst [vmem:[%s486_s3 + $0x50] sm:$0xff] %v225_v20  ;;  %v185_v23 = vadd.f32 %v267_v16, %v184_v21  ;;  %v217_v24 = vadd.f32 %v267_v16, %v216_v22 }
  0xe6   :  { %v319_v25 = vpop.f32.mrf.mxu0  ;;  %v327_v26 = vpop.f32.mrf.mxu1 }
  0xe7   :  { %247 = vst [vmem:[%s486_s3] sm:$0xff] %v185_v23  ;;  %255 = vst [vmem:[%s486_s3 + $0x40] sm:$0xff] %v217_v24  ;;  %v196_v27 = vadd.f32 %v319_v25, %v267_v16  ;;  %v228_v28 = vadd.f32 %v327_v26, %v267_v16 }
  0xe8   :  { %v187_v29 = vpop.f32.mrf.mxu0  ;;  %v219_v30 = vpop.f32.mrf.mxu1 }
  0xe9   :  { %250 = vst [vmem:[%s486_s3 + $0x18] sm:$0xff] %v196_v27  ;;  %258 = vst [vmem:[%s486_s3 + $0x58] sm:$0xff] %v228_v28  ;;  %v188_v31 = vadd.f32 %v267_v16, %v187_v29  ;;  %v220_v32 = vadd.f32 %v267_v16, %v219_v30 }
  0xea   :  { %v322_v33 = vpop.f32.mrf.mxu0  ;;  %v330_v34 = vpop.f32.mrf.mxu1 }
  0xeb   :  { %248 = vst [vmem:[%s486_s3 + $0x8] sm:$0xff] %v188_v31  ;;  %256 = vst [vmem:[%s486_s3 + $0x48] sm:$0xff] %v220_v32  ;;  %v209_v35 = vadd.f32 %v322_v33, %v267_v16  ;;  %v241_v36 = vadd.f32 %v330_v34, %v267_v16 }
  0xec   :  { %v200_v37 = vpop.f32.mrf.mxu0  ;;  %v232_v38 = vpop.f32.mrf.mxu1 }
  0xed   :  { %253 = vst [vmem:[%s486_s3 + $0x30] sm:$0xff] %v209_v35  ;;  %261 = vst [vmem:[%s486_s3 + $0x70] sm:$0xff] %v241_v36  ;;  %v201_v39 = vadd.f32 %v267_v16, %v200_v37  ;;  %v233_v40 = vadd.f32 %v267_v16, %v232_v38 }
  0xee   :  { %v323_v41 = vpop.f32.mrf.mxu0  ;;  %v331_v42 = vpop.f32.mrf.mxu1 }
  0xef   :  { %251 = vst [vmem:[%s486_s3 + $0x20] sm:$0xff] %v201_v39  ;;  %259 = vst [vmem:[%s486_s3 + $0x60] sm:$0xff] %v233_v40  ;;  %v212_v43 = vadd.f32 %v323_v41, %v267_v16  ;;  %v244_v44 = vadd.f32 %v331_v42, %v267_v16 }
  0xf0   :  { %v203_v45 = vpop.f32.mrf.mxu0  ;;  %v235_v46 = vpop.f32.mrf.mxu1 }
  0xf1   :  { %254 = vst [vmem:[%s486_s3 + $0x38] sm:$0xff] %v212_v43  ;;  %262 = vst [vmem:[%s486_s3 + $0x78] sm:$0xff] %v244_v44  ;;  %v204_v47 = vadd.f32 %v267_v16, %v203_v45  ;;  %v236_v48 = vadd.f32 %v267_v16, %v235_v46 }
  0xf3   :  { %252 = vst [vmem:[%s486_s3 + $0x28] sm:$0xff] %v204_v47  ;;  %260 = vst [vmem:[%s486_s3 + $0x68] sm:$0xff] %v236_v48 }

</bundles_post_ra>
